<compile_context>
chip_gen: v6e
topology: v6e:2x2x1
jax: 0.10.0
libtpu: 0.0.40
codegen_flags: <defaults>
</compile_context>

<pallas_src>
import numpy as np
import jax
import jax.numpy as jnp
from jax import lax
from jax.experimental import pallas as pl
from jax.experimental.pallas import tpu as pltpu

EMBED_DIM = 128
HIDDEN_DIM = 4 * EMBED_DIM   # 512
HIDDEN_CHUNK = 128           # hidden dim blocked inside the kernel (4 chunks of 128)
DROPOUT = 0.2  # TODO(synk): dropout is eval-mode identity here; training-mode masking would
               # use pltpu.prng_seed / pltpu.prng_random_bits with 1/(1-p) scaling.
# TODO(synk): in a full decoder this FF kernel should be fused with the preceding
# LayerNorm / residual add to amortize the (N,128) activation HBM round-trips.


def ff_kernel(x_ref, w1_ref, b1_ref, w2_ref, b2_ref, o_ref, acc_ref):
    """One (tm, 128) token tile of: Linear(128->512) -> ReLU -> Linear(512->128)."""
    x = x_ref[...]                                   # (tm, 128) in compute dtype
    acc_ref[...] = jnp.zeros_like(acc_ref)           # per-tile f32 accumulator

    n_chunks = HIDDEN_DIM // HIDDEN_CHUNK

    def body(j, carry):
        off = pl.multiple_of(j * HIDDEN_CHUNK, HIDDEN_CHUNK)
        w1c = w1_ref[:, pl.ds(off, HIDDEN_CHUNK)]    # (128, 128)
        b1c = b1_ref[:, pl.ds(off, HIDDEN_CHUNK)]    # (1, 128) f32
        h = jnp.dot(x, w1c, preferred_element_type=jnp.float32) + b1c
        h = jnp.maximum(h, 0.0)                      # ReLU on the chunk
        w2c = w2_ref[pl.ds(off, HIDDEN_CHUNK), :]    # (128, 128)
        acc_ref[...] += jnp.dot(h.astype(w2c.dtype), w2c,
                                preferred_element_type=jnp.float32)
        return carry

    lax.fori_loop(0, n_chunks, body, 0, unroll=True)

    o_ref[...] = (acc_ref[...] + b2_ref[...]).astype(o_ref.dtype)


def ff_forward(x, w1, b1, w2, b2, *, tm=512, compute_dtype=jnp.float32):
    """x: (B, T, EMBED_DIM) float32. Returns float32 of the same shape."""
    B, T, D = x.shape
    assert D == EMBED_DIM
    N = B * T

    # cast activations / weights to the compute dtype at the boundary; biases and the
    # MXU accumulation stay in f32.
    x2 = x.reshape(N, D).astype(compute_dtype)
    w1c = w1.astype(compute_dtype)
    w2c = w2.astype(compute_dtype)
    b1r = b1.reshape(1, HIDDEN_DIM).astype(jnp.float32)
    b2r = b2.reshape(1, EMBED_DIM).astype(jnp.float32)

    if N <= tm:
        tm = N                      # single full-extent block (always legal)
    assert tm == N or tm % 8 == 0

    grid = (pl.cdiv(N, tm),)

    itemsize = np.dtype(compute_dtype).itemsize
    cost = pl.CostEstimate(
        flops=4 * N * EMBED_DIM * HIDDEN_DIM,         # two matmuls, 2*M*K*N each
        transcendentals=0,
        bytes_accessed=(N * D * (itemsize + 4)        # x in + f32 out
                        + 2 * EMBED_DIM * HIDDEN_DIM * itemsize   # W1 + W2
                        + (HIDDEN_DIM + EMBED_DIM) * 4),          # biases
    )

    out = pl.pallas_call(
        ff_kernel,
        out_shape=jax.ShapeDtypeStruct((N, D), jnp.float32),
        grid_spec=pltpu.PrefetchScalarGridSpec(
            num_scalar_prefetch=0,
            grid=grid,
            in_specs=[
                pl.BlockSpec((tm, D), lambda i: (i, 0)),           # x tile
                pl.BlockSpec((D, HIDDEN_DIM), lambda i: (0, 0)),   # W1 (resident)
                pl.BlockSpec((1, HIDDEN_DIM), lambda i: (0, 0)),   # b1 (resident)
                pl.BlockSpec((HIDDEN_DIM, D), lambda i: (0, 0)),   # W2 (resident)
                pl.BlockSpec((1, D), lambda i: (0, 0)),            # b2 (resident)
            ],
            out_specs=pl.BlockSpec((tm, D), lambda i: (i, 0)),
            scratch_shapes=[pltpu.VMEM((tm, EMBED_DIM), jnp.float32)],  # f32 accumulator
        ),
        compiler_params=pltpu.CompilerParams(
            dimension_semantics=("parallel",),        # token tiles split across TCs (v7x)
            vmem_limit_bytes=32 * 1024 * 1024,        # safe on v5e/v6e/v7x; >> working set
        ),
        cost_estimate=cost,
    )(x2, w1c, b1r, w2c, b2r)
    return out.reshape(B, T, D)


def init_params(key):
    k1, k2, k3, k4 = jax.random.split(key, 4)
    # deterministic, PyTorch-Linear-like uniform init: U(-1/sqrt(fan_in), 1/sqrt(fan_in))
    lim1 = 1.0 / (EMBED_DIM ** 0.5)
    lim2 = 1.0 / (HIDDEN_DIM ** 0.5)
    w1 = jax.random.uniform(k1, (EMBED_DIM, HIDDEN_DIM), jnp.float32, -lim1, lim1)
    b1 = jax.random.uniform(k2, (HIDDEN_DIM,), jnp.float32, -lim1, lim1)
    w2 = jax.random.uniform(k3, (HIDDEN_DIM, EMBED_DIM), jnp.float32, -lim2, lim2)
    b2 = jax.random.uniform(k4, (EMBED_DIM,), jnp.float32, -lim2, lim2)
    return w1, b1, w2, b2


if __name__ == "__main__":
    key = jax.random.PRNGKey(0)
    kx, kp = jax.random.split(key)
    # batch=8, seq=block_size=256, embed=128 -> N=2048 tokens -> grid of 4 (512,128) tiles
    x = jax.random.normal(kx, (8, 256, EMBED_DIM), jnp.float32)
    w1, b1, w2, b2 = init_params(kp)

    # pure-JAX reference (eval-mode dropout = identity)
    ref = jnp.maximum(x @ w1 + b1, 0.0) @ w2 + b2

    # f32 compute path
    y = jax.block_until_ready(ff_forward(x, w1, b1, w2, b2, tm=512))
    assert y.shape == x.shape
    assert jnp.allclose(y, ref, atol=1e-4, rtol=1e-4), "f32 mismatch vs reference"

    # bf16 MXU fast path (v6e/v7x): same kernel, weights/activations cast at the boundary
    y_bf16 = jax.block_until_ready(
        ff_forward(x, w1, b1, w2, b2, tm=512, compute_dtype=jnp.bfloat16))
    assert jnp.allclose(y_bf16, ref, atol=5e-2, rtol=5e-2), "bf16 mismatch vs reference"

    print("KERNEL_OK")
</pallas_src>

<mosaic_0001>
module attributes {stable_mosaic.version = 11 : i64} {
  func.func @ff_kernel(%arg0: i32, %arg1: memref<512x128xf32, #tpu.memory_space<vmem>>, %arg2: memref<128x512xf32, #tpu.memory_space<vmem>>, %arg3: memref<1x512xf32, #tpu.memory_space<vmem>>, %arg4: memref<512x128xf32, #tpu.memory_space<vmem>>, %arg5: memref<1x128xf32, #tpu.memory_space<vmem>>, %arg6: memref<512x128xf32, #tpu.memory_space<vmem>>, %arg7: memref<512x128xf32, #tpu.memory_space<vmem>>) attributes {dimension_semantics = [#tpu.dimension_semantics<parallel>], iteration_bounds = array<i64: 4>, scalar_prefetch = 0 : i64, scratch_operands = 1 : i64, tpu.core_type = #tpu.core_type<tc>, window_params = [{transform_indices = @transform_0, window_bounds = array<i64: 512, 128>}, {pipeline_mode = #tpu.pipeline_mode<synchronous>, transform_indices = @transform_1, window_bounds = array<i64: 128, 512>}, {pipeline_mode = #tpu.pipeline_mode<synchronous>, transform_indices = @transform_2, window_bounds = array<i64: 1, 512>}, {pipeline_mode = #tpu.pipeline_mode<synchronous>, transform_indices = @transform_3, window_bounds = array<i64: 512, 128>}, {pipeline_mode = #tpu.pipeline_mode<synchronous>, transform_indices = @transform_4, window_bounds = array<i64: 1, 128>}, {transform_indices = @transform_5, window_bounds = array<i64: 512, 128>}]} {
    %c0 = arith.constant 0 : index
    %c0_0 = arith.constant 0 : index
    %0 = vector.load %arg1[%c0, %c0_0] : memref<512x128xf32, #tpu.memory_space<vmem>>, vector<512x128xf32>
    %cst = arith.constant 0.000000e+00 : f32
    %1 = vector.broadcast %cst : f32 to vector<512x128xf32>
    %c0_1 = arith.constant 0 : index
    %c0_2 = arith.constant 0 : index
    %2 = vector.load %arg7[%c0_1, %c0_2] : memref<512x128xf32, #tpu.memory_space<vmem>>, vector<512x128xf32>
    tpu.vector_store %arg7[%c0_1, %c0_2], %1 {strides = array<i32>} : memref<512x128xf32, #tpu.memory_space<vmem>>, vector<512x128xf32>,
    %c0_i32 = arith.constant 0 : i32
    %c128_i32 = arith.constant 128 : i32
    %3 = arith.muli %c0_i32, %c128_i32 : i32
    %4 = tpu.assume_multiple %3, 128 : i32
    %c0_3 = arith.constant 0 : index
    %5 = arith.index_cast %4 : i32 to index
    %6 = vector.load %arg2[%c0_3, %5] : memref<128x512xf32, #tpu.memory_space<vmem>>, vector<128x128xf32>
    %c0_4 = arith.constant 0 : index
    %7 = arith.index_cast %4 : i32 to index
    %8 = vector.load %arg3[%c0_4, %7] : memref<1x512xf32, #tpu.memory_space<vmem>>, vector<1x128xf32>
    %cst_5 = arith.constant dense<0.000000e+00> : vector<512x128xf32>
    %9 = tpu.matmul %0, %6, %cst_5 {dimension_numbers = #tpu.dot_dimension_numbers<[1], [0], [0], [1], [0, 0, 1, 1], [], []>} : vector<512x128xf32>, vector<128x128xf32>, vector<512x128xf32> -> vector<512x128xf32>
    %10 = vector.broadcast %8 : vector<1x128xf32> to vector<512x128xf32>
    %11 = arith.addf %9, %10 : vector<512x128xf32>
    %cst_6 = arith.constant 0.000000e+00 : f32
    %12 = vector.broadcast %cst_6 : f32 to vector<512x128xf32>
    %13 = arith.maximumf %11, %12 : vector<512x128xf32>
    %14 = arith.index_cast %4 : i32 to index
    %c0_7 = arith.constant 0 : index
    %15 = vector.load %arg4[%14, %c0_7] : memref<512x128xf32, #tpu.memory_space<vmem>>, vector<128x128xf32>
    %c0_8 = arith.constant 0 : index
    %c0_9 = arith.constant 0 : index
    %16 = vector.load %arg7[%c0_8, %c0_9] : memref<512x128xf32, #tpu.memory_space<vmem>>, vector<512x128xf32>
    %cst_10 = arith.constant dense<0.000000e+00> : vector<512x128xf32>
    %17 = tpu.matmul %13, %15, %cst_10 {dimension_numbers = #tpu.dot_dimension_numbers<[1], [0], [0], [1], [0, 0, 1, 1], [], []>} : vector<512x128xf32>, vector<128x128xf32>, vector<512x128xf32> -> vector<512x128xf32>
    %18 = arith.addf %16, %17 : vector<512x128xf32>
    %c0_11 = arith.constant 0 : index
    %c0_12 = arith.constant 0 : index
    %19 = vector.load %arg7[%c0_11, %c0_12] : memref<512x128xf32, #tpu.memory_space<vmem>>, vector<512x128xf32>
    tpu.vector_store %arg7[%c0_11, %c0_12], %18 {strides = array<i32>} : memref<512x128xf32, #tpu.memory_space<vmem>>, vector<512x128xf32>,
    %c1_i32 = arith.constant 1 : i32
    %c128_i32_13 = arith.constant 128 : i32
    %20 = arith.muli %c1_i32, %c128_i32_13 : i32
    %21 = tpu.assume_multiple %20, 128 : i32
    %c0_14 = arith.constant 0 : index
    %22 = arith.index_cast %21 : i32 to index
    %23 = vector.load %arg2[%c0_14, %22] : memref<128x512xf32, #tpu.memory_space<vmem>>, vector<128x128xf32>
    %c0_15 = arith.constant 0 : index
    %24 = arith.index_cast %21 : i32 to index
    %25 = vector.load %arg3[%c0_15, %24] : memref<1x512xf32, #tpu.memory_space<vmem>>, vector<1x128xf32>
    %cst_16 = arith.constant dense<0.000000e+00> : vector<512x128xf32>
    %26 = tpu.matmul %0, %23, %cst_16 {dimension_numbers = #tpu.dot_dimension_numbers<[1], [0], [0], [1], [0, 0, 1, 1], [], []>} : vector<512x128xf32>, vector<128x128xf32>, vector<512x128xf32> -> vector<512x128xf32>
    %27 = vector.broadcast %25 : vector<1x128xf32> to vector<512x128xf32>
    %28 = arith.addf %26, %27 : vector<512x128xf32>
    %cst_17 = arith.constant 0.000000e+00 : f32
    %29 = vector.broadcast %cst_17 : f32 to vector<512x128xf32>
    %30 = arith.maximumf %28, %29 : vector<512x128xf32>
    %31 = arith.index_cast %21 : i32 to index
    %c0_18 = arith.constant 0 : index
    %32 = vector.load %arg4[%31, %c0_18] : memref<512x128xf32, #tpu.memory_space<vmem>>, vector<128x128xf32>
    %c0_19 = arith.constant 0 : index
    %c0_20 = arith.constant 0 : index
    %33 = vector.load %arg7[%c0_19, %c0_20] : memref<512x128xf32, #tpu.memory_space<vmem>>, vector<512x128xf32>
    %cst_21 = arith.constant dense<0.000000e+00> : vector<512x128xf32>
    %34 = tpu.matmul %30, %32, %cst_21 {dimension_numbers = #tpu.dot_dimension_numbers<[1], [0], [0], [1], [0, 0, 1, 1], [], []>} : vector<512x128xf32>, vector<128x128xf32>, vector<512x128xf32> -> vector<512x128xf32>
    %35 = arith.addf %33, %34 : vector<512x128xf32>
    %c0_22 = arith.constant 0 : index
    %c0_23 = arith.constant 0 : index
    %36 = vector.load %arg7[%c0_22, %c0_23] : memref<512x128xf32, #tpu.memory_space<vmem>>, vector<512x128xf32>
    tpu.vector_store %arg7[%c0_22, %c0_23], %35 {strides = array<i32>} : memref<512x128xf32, #tpu.memory_space<vmem>>, vector<512x128xf32>,
    %c2_i32 = arith.constant 2 : i32
    %c128_i32_24 = arith.constant 128 : i32
    %37 = arith.muli %c2_i32, %c128_i32_24 : i32
    %38 = tpu.assume_multiple %37, 128 : i32
    %c0_25 = arith.constant 0 : index
    %39 = arith.index_cast %38 : i32 to index
    %40 = vector.load %arg2[%c0_25, %39] : memref<128x512xf32, #tpu.memory_space<vmem>>, vector<128x128xf32>
    %c0_26 = arith.constant 0 : index
    %41 = arith.index_cast %38 : i32 to index
    %42 = vector.load %arg3[%c0_26, %41] : memref<1x512xf32, #tpu.memory_space<vmem>>, vector<1x128xf32>
    %cst_27 = arith.constant dense<0.000000e+00> : vector<512x128xf32>
    %43 = tpu.matmul %0, %40, %cst_27 {dimension_numbers = #tpu.dot_dimension_numbers<[1], [0], [0], [1], [0, 0, 1, 1], [], []>} : vector<512x128xf32>, vector<128x128xf32>, vector<512x128xf32> -> vector<512x128xf32>
    %44 = vector.broadcast %42 : vector<1x128xf32> to vector<512x128xf32>
    %45 = arith.addf %43, %44 : vector<512x128xf32>
    %cst_28 = arith.constant 0.000000e+00 : f32
    %46 = vector.broadcast %cst_28 : f32 to vector<512x128xf32>
    %47 = arith.maximumf %45, %46 : vector<512x128xf32>
    %48 = arith.index_cast %38 : i32 to index
    %c0_29 = arith.constant 0 : index
    %49 = vector.load %arg4[%48, %c0_29] : memref<512x128xf32, #tpu.memory_space<vmem>>, vector<128x128xf32>
    %c0_30 = arith.constant 0 : index
    %c0_31 = arith.constant 0 : index
    %50 = vector.load %arg7[%c0_30, %c0_31] : memref<512x128xf32, #tpu.memory_space<vmem>>, vector<512x128xf32>
    %cst_32 = arith.constant dense<0.000000e+00> : vector<512x128xf32>
    %51 = tpu.matmul %47, %49, %cst_32 {dimension_numbers = #tpu.dot_dimension_numbers<[1], [0], [0], [1], [0, 0, 1, 1], [], []>} : vector<512x128xf32>, vector<128x128xf32>, vector<512x128xf32> -> vector<512x128xf32>
    %52 = arith.addf %50, %51 : vector<512x128xf32>
    %c0_33 = arith.constant 0 : index
    %c0_34 = arith.constant 0 : index
    %53 = vector.load %arg7[%c0_33, %c0_34] : memref<512x128xf32, #tpu.memory_space<vmem>>, vector<512x128xf32>
    tpu.vector_store %arg7[%c0_33, %c0_34], %52 {strides = array<i32>} : memref<512x128xf32, #tpu.memory_space<vmem>>, vector<512x128xf32>,
    %c3_i32 = arith.constant 3 : i32
    %c128_i32_35 = arith.constant 128 : i32
    %54 = arith.muli %c3_i32, %c128_i32_35 : i32
    %55 = tpu.assume_multiple %54, 128 : i32
    %c0_36 = arith.constant 0 : index
    %56 = arith.index_cast %55 : i32 to index
    %57 = vector.load %arg2[%c0_36, %56] : memref<128x512xf32, #tpu.memory_space<vmem>>, vector<128x128xf32>
    %c0_37 = arith.constant 0 : index
    %58 = arith.index_cast %55 : i32 to index
    %59 = vector.load %arg3[%c0_37, %58] : memref<1x512xf32, #tpu.memory_space<vmem>>, vector<1x128xf32>
    %cst_38 = arith.constant dense<0.000000e+00> : vector<512x128xf32>
    %60 = tpu.matmul %0, %57, %cst_38 {dimension_numbers = #tpu.dot_dimension_numbers<[1], [0], [0], [1], [0, 0, 1, 1], [], []>} : vector<512x128xf32>, vector<128x128xf32>, vector<512x128xf32> -> vector<512x128xf32>
    %61 = vector.broadcast %59 : vector<1x128xf32> to vector<512x128xf32>
    %62 = arith.addf %60, %61 : vector<512x128xf32>
    %cst_39 = arith.constant 0.000000e+00 : f32
    %63 = vector.broadcast %cst_39 : f32 to vector<512x128xf32>
    %64 = arith.maximumf %62, %63 : vector<512x128xf32>
    %65 = arith.index_cast %55 : i32 to index
    %c0_40 = arith.constant 0 : index
    %66 = vector.load %arg4[%65, %c0_40] : memref<512x128xf32, #tpu.memory_space<vmem>>, vector<128x128xf32>
    %c0_41 = arith.constant 0 : index
    %c0_42 = arith.constant 0 : index
    %67 = vector.load %arg7[%c0_41, %c0_42] : memref<512x128xf32, #tpu.memory_space<vmem>>, vector<512x128xf32>
    %cst_43 = arith.constant dense<0.000000e+00> : vector<512x128xf32>
    %68 = tpu.matmul %64, %66, %cst_43 {dimension_numbers = #tpu.dot_dimension_numbers<[1], [0], [0], [1], [0, 0, 1, 1], [], []>} : vector<512x128xf32>, vector<128x128xf32>, vector<512x128xf32> -> vector<512x128xf32>
    %69 = arith.addf %67, %68 : vector<512x128xf32>
    %c0_44 = arith.constant 0 : index
    %c0_45 = arith.constant 0 : index
    %70 = vector.load %arg7[%c0_44, %c0_45] : memref<512x128xf32, #tpu.memory_space<vmem>>, vector<512x128xf32>
    tpu.vector_store %arg7[%c0_44, %c0_45], %69 {strides = array<i32>} : memref<512x128xf32, #tpu.memory_space<vmem>>, vector<512x128xf32>,
    %c4_i32 = arith.constant 4 : i32
    %c0_46 = arith.constant 0 : index
    %c0_47 = arith.constant 0 : index
    %71 = vector.load %arg7[%c0_46, %c0_47] : memref<512x128xf32, #tpu.memory_space<vmem>>, vector<512x128xf32>
    %c0_48 = arith.constant 0 : index
    %c0_49 = arith.constant 0 : index
    %72 = vector.load %arg5[%c0_48, %c0_49] : memref<1x128xf32, #tpu.memory_space<vmem>>, vector<1x128xf32>
    %73 = vector.broadcast %72 : vector<1x128xf32> to vector<512x128xf32>
    %74 = arith.addf %71, %73 : vector<512x128xf32>
    %c0_50 = arith.constant 0 : index
    %c0_51 = arith.constant 0 : index
    %75 = vector.load %arg6[%c0_50, %c0_51] : memref<512x128xf32, #tpu.memory_space<vmem>>, vector<512x128xf32>
    tpu.vector_store %arg6[%c0_50, %c0_51], %74 {strides = array<i32>} : memref<512x128xf32, #tpu.memory_space<vmem>>, vector<512x128xf32>,
    return
  }
  func.func @transform_0(%arg0: i32) -> (i32, i32) {
    %c0_i32 = arith.constant 0 : i32
    %c0_i32_0 = arith.constant 0 : i32
    return %arg0, %c0_i32 : i32, i32
  }
  func.func @transform_1(%arg0: i32) -> (i32, i32) {
    %c0_i32 = arith.constant 0 : i32
    %c0_i32_0 = arith.constant 0 : i32
    %c0_i32_1 = arith.constant 0 : i32
    return %c0_i32, %c0_i32_0 : i32, i32
  }
  func.func @transform_2(%arg0: i32) -> (i32, i32) {
    %c0_i32 = arith.constant 0 : i32
    %c0_i32_0 = arith.constant 0 : i32
    %c0_i32_1 = arith.constant 0 : i32
    return %c0_i32, %c0_i32_0 : i32, i32
  }
  func.func @transform_3(%arg0: i32) -> (i32, i32) {
    %c0_i32 = arith.constant 0 : i32
    %c0_i32_0 = arith.constant 0 : i32
    %c0_i32_1 = arith.constant 0 : i32
    return %c0_i32, %c0_i32_0 : i32, i32
  }
  func.func @transform_4(%arg0: i32) -> (i32, i32) {
    %c0_i32 = arith.constant 0 : i32
    %c0_i32_0 = arith.constant 0 : i32
    %c0_i32_1 = arith.constant 0 : i32
    return %c0_i32, %c0_i32_0 : i32, i32
  }
  func.func @transform_5(%arg0: i32) -> (i32, i32) {
    %c0_i32 = arith.constant 0 : i32
    %c0_i32_0 = arith.constant 0 : i32
    return %arg0, %c0_i32 : i32, i32
  }
}

</mosaic_0001>

<bundles_post_ra>
// kernel: tpu_custom_call.1
= control target key start
LH: loop header
LB: loop body
LE: loop exit
PB: predicated region body
PF: predicated region fallthrough
CT: control target
= control target key end

     0   :  { %10 = vsyncpa [#allocation4], 0  ;;  %s8904_s0 = inlined_call_operand.hbm [shape: f32[2048,128], index: 0, kind: input, shape index: {}]   ;;  %s8905_s1 = inlined_call_operand.hbm [shape: f32[128,512], index: 1, kind: input, shape index: {}]   ;;  %s8906_s2 = inlined_call_operand.hbm [shape: f32[1,512], index: 2, kind: input, shape index: {}]   ;;  %s8907_s3 = inlined_call_operand.hbm [shape: f32[512,128], index: 3, kind: input, shape index: {}]   ;;  %s8908_s4 = inlined_call_operand.vmem [shape: f32[1,128], index: 4, kind: input, shape index: {}]   ;;  %s8909_s5 = inlined_call_operand.hbm [shape: f32[2048,128], index: 5, kind: output, shape index: {}]  }
   0x1   :  { %12 = vsyncpa [#allocation4 + $0x1], 0 }
   0x2   :  { %13 = vsyncpa [#allocation7], 0 }
   0x3   :  { %14 = vsyncpa [#allocation10], 0 }
   0x4   :  { %15 = vsyncpa [#allocation5], 0 }
   0x5   :  { %17 = vsyncpa [#allocation5 + $0x1], 0  ;;  %s7058_s18 = smov 0   ;;  %s7060_s19 = smov 0  }
   0x6   :  { %s7062_s20 = smov 0   ;;  %s7064_s21 = smov 0  }
   0x7 LB: > { %s7079_s22 = sadd.s32 4294967295, %s7015_s21   ;;  %s4999_s23 = sadd.s32 4294967294, %s7015_s21   ;;  %s7015_s21 = sphi %s7064_s21, %s9184_s21   ;;  %s7011_s20 = sphi %s7062_s20, %s9183_s20   ;;  %s7007_s19 = sphi %s7060_s19, %s9182_s19   ;;  %s7003_s18 = sphi %s7058_s18, %s9181_s18  }
   0x8   : > { %p43_p0 = scmp.ne.s32.totalorder %s7007_s19, %s7003_s18  ;;  %p8910_p1 = scmp.eq.s32.totalorder %s7079_s22, 0 }
   0x9   : > { %p157_p3 = scmp.eq.s32.totalorder %s4999_s23, 3  ;;  %p5000_p5 = scmp.ge.s32.totalorder %s7015_s21, 1 }
   0xa   : > { %p7088_p4 = por %p8910_p1, %p43_p0  ;;  %p164_p7 = scmp.lt.s32.totalorder %s7015_s21, 5 }
   0xb   : > { %p7093_p6 = por %p157_p3, %p43_p0  ;;  %s7017_s27 = smov [#allocation6]  }
   0xc   : > { %s8935_s24 = scalar_select %p7088_p4, 1, 0 }
   0xd   : > { %s8936_s25 = scalar_select %p7093_p6, 1, 0 }
   0xe   : > { %p7098_p8 = pnand %p5000_p5, %p164_p7  ;;  %s176_s28 = sshll.u32 %s7017_s27, 4  ;;  %s177_s28 = int_to_ptr.vmem [resolvable:$true] %s176_s28 }
   0xf   : > { %s7018_s30 = smov [#allocation8]   ;;  %s7019_s7 = smov [#allocation9]  }
  0x10   : > { %s8937_s26 = scalar_select %p7098_p8, 1, 0 }
  0x11   : > { %p6706_p9 = pneg %p7098_p8  ;;  %s190_s6 = sshll.u32 %s7018_s30, 4  ;;  %s191_s6 = int_to_ptr.vmem [resolvable:$true] %s190_s6 }
  0x12   : > { %s200_s8 = sshll.u32 %s7019_s7, 4  ;;  %s6848_s9 = scalar_lea.vmem %s177_s28, 8192  ;;  %s201_s8 = int_to_ptr.vmem [resolvable:$true] %s200_s8 }
  0x13   : > { %p7106_p10 = pnand %p6706_p9, %p8910_p1  ;;  %p6849_p12 = scmp.ne.s32.totalorder %s177_s28, %s6848_s9 }
  0x14   : > { %p6856_p3 = scmp.lt.s32.totalorder %s177_s28, %s177_s28  ;;  %p6857_p5 = scmp.lt.s32.totalorder %s6848_s9, %s6848_s9 }
  0x15   : > { %p6839_p11 = pneg %p7106_p10 }
  0x16   : > { %p6858_p7 = por %p6857_p5, %p6856_p3 }
  0x17   : > { %p6851_p13 = pnand %p6849_p12, %p6839_p11 }
  0x19   : > { %p6852_p0 = pneg %p6851_p13 }
  0x1b   : > { %p6859_p9 = pnand %p6858_p7, %p6852_p0 }
  0x1d   : > { %6862 = shalt.err (!%p6859_p9)
}
  0x1e   : > { %s7020_s10 = smov 512   ;;  %s7021_s11 = smov 32  }
  0x1f   : > { %6709 = dma.hbm_to_vmem [thread:$0]  (!%p7106_p10), %s8905_s1, 8192, %s177_s28, [#allocation7], %s7020_s10, %s7020_s10, %s7021_s11  }
  0x20   : > { %s6874_s14 = scalar_lea.vmem %s191_s6, 64  ;;  %p6882_p2 = scmp.lt.s32.totalorder %s191_s6, %s191_s6 }
  0x21   : > { %p6875_p1 = scmp.ne.s32.totalorder %s191_s6, %s6874_s14  ;;  %p6883_p6 = scmp.lt.s32.totalorder %s6874_s14, %s6874_s14 }
  0x23   : > { %p6877_p12 = pnand %p6875_p1, %p6839_p11  ;;  %p6884_p3 = por %p6883_p6, %p6882_p2 }
  0x25   : > { %p6878_p13 = pneg %p6877_p12 }
  0x27   : > { %p6885_p0 = pnand %p6884_p3, %p6878_p13 }
  0x29   : > { %6888 = shalt.err (!%p6885_p0)
}
  0x2a   : > { %6712 = dma.hbm_to_vmem [thread:$0]  (!%p7106_p10), %s8906_s2, 64, %s191_s6, [#allocation7]  }
  0x2b   : > { %s6900_s17 = scalar_lea.vmem %s201_s8, 8192  ;;  %p6908_p9 = scmp.lt.s32.totalorder %s201_s8, %s201_s8 }
  0x2c   : > { %p6901_p5 = scmp.ne.s32.totalorder %s201_s8, %s6900_s17  ;;  %p6909_p12 = scmp.lt.s32.totalorder %s6900_s17, %s6900_s17 }
  0x2e   : > { %p6903_p7 = pnand %p6901_p5, %p6839_p11  ;;  %p6910_p4 = por %p6909_p12, %p6908_p9 }
  0x30   : > { %p6904_p1 = pneg %p6903_p7 }
  0x32   : > { %p6911_p2 = pnand %p6910_p4, %p6904_p1 }
  0x34   : > { %6914 = shalt.err (!%p6911_p2)
}
  0x35   : > { %s8912_s23 = smov 128   ;;  %s7023_s27 = smov 8  }
  0x36   : > { %6715 = dma.hbm_to_vmem [thread:$0]  (!%p7106_p10), %s8907_s3, 8192, %s201_s8, [#allocation10], %s8912_s23, %s8912_s23, %s7023_s27  }
  0x37   : > { %s7140_s6 = sadd.s32 1, %s7015_s21   ;;  %s30_s9 = sadd.s32 1, %s7011_s20 }
  0x38   : > { %s27_s7 = ssub.s32 %s7015_s21, %s7140_s6  ;;  %p37_p6 = scmp.ne.s32.totalorder %s7011_s20, %s7007_s19 }
  0x39   : > { %p28_p4 = scmp.eq.s32.totalorder %s27_s7, 0  ;;  %p38_p11 = scmp.eq.s32.totalorder %s7015_s21, 0 }
  0x3a   : > { %p6727_p13 = scmp.lt.s32.totalorder %s7015_s21, 4  ;;  %p8939_p0 = scmp.eq.s32.totalorder %s7079_s22, 3 }
  0x3b   : > { %s7150_s10 = scalar_select %p28_p4, %s7011_s20, %s30_s9  }
  0x3c   : > { %p39_p3 = por %p38_p11, %p37_p6  ;;  %p7154_p5 = por %p8939_p0, %p37_p6 }
  0x3d   : > { %s217_s11 = sand.u32 1, %s7011_s20   ;;  %s5024_s12 = sshll.u32 %s7015_s21, 13 }
  0x3e   : > { %s8940_s29 = scalar_select %p7154_p5, 1, 0 }
  0x3f   : > { %s5005_s8 = sshll.u32 %s217_s11, 9  ;;  %s7163_s15 = scalar_lea.hbm %s8904_s0, %s5024_s12 }
  0x40   : > { %s221_s16 = scalar_lea.vmem [#allocation3], %s5005_s8  ;;  %p7165_p10 = pnand %p6727_p13, %p39_p3 }
  0x41   : > { %s228_s17 = sshll.u32 %s221_s16, 4  ;;  %s7171_s30 = scalar_lea.sflag [#allocation4], %s217_s11  ;;  %s7169_s17 = int_to_ptr.vmem [resolvable:$true] %s228_s17 }
  0x42   : > { %s6915_s7 = scalar_lea.hbm %s7163_s15, 8192  ;;  %p6917_p1 = pneg %p7165_p10 }
  0x43   : > { %p6916_p7 = scmp.ne.s32.totalorder %s7163_s15, %s6915_s7  ;;  %s6920_s8 = scalar_lea.hbm %s8904_s0, 32768 }
  0x44   : > { %p6921_p2 = scmp.lt.s32.totalorder %s7163_s15, %s8904_s0  ;;  %p6922_p4 = scmp.lt.s32.totalorder %s6920_s8, %s6915_s7 }
  0x45   : > { %p6918_p9 = pnand %p6917_p1, %p6916_p7 }
  0x46   : > { %p6923_p6 = por %p6922_p4, %p6921_p2 }
  0x47   : > { %p6919_p12 = pneg %p6918_p9 }
  0x49   : > { %p6924_p11 = pnand %p6923_p6, %p6919_p12 }
  0x4b   : > { %6927 = shalt.err (!%p6924_p11)
}
  0x4c   : > { %s6928_s11 = scalar_lea.vmem %s7169_s17, 8192  ;;  %s7024_s16 = smov [#allocation3]  }
  0x4d   : > { %p6929_p13 = scmp.ne.s32.totalorder %s7169_s17, %s6928_s11  ;;  %s6933_s23 = sshll.u32 %s7024_s16, 4  ;;  %s6934_s23 = int_to_ptr.vmem [resolvable:$false] %s6933_s23 }
  0x4e   : > { %s6935_s9 = scalar_lea.vmem %s6934_s23, 16384  ;;  %p6936_p7 = scmp.lt.s32.totalorder %s7169_s17, %s6934_s23 }
  0x4f   : > { %p6931_p3 = pnand %p6929_p13, %p6917_p1  ;;  %p6937_p9 = scmp.lt.s32.totalorder %s6935_s9, %s6928_s11 }
  0x51   : > { %p6932_p0 = pneg %p6931_p3  ;;  %p6938_p5 = por %p6937_p9, %p6936_p7 }
  0x53   : > { %p6939_p8 = pnand %p6938_p5, %p6932_p0 }
  0x55   : > { %6942 = shalt.err (!%p6939_p8)
}
  0x56   : > { %s8942_s7 = smov 128   ;;  %p8943_p1 = scmp.ne.s32.totalorder %s8937_s26, 0 }
  0x57   : > { %6719 = dma.hbm_to_vmem [thread:$0]  (!%p7165_p10), %s7163_s15, 8192, %s7169_s17, %s7171_s30, %s8942_s7, %s8942_s7, %s7023_s27  }
  0x58   : > { %240 = sbr.rel (%p8943_p1) target bundleno = 1057 (0x421), region = 40 }
  0x5d   : > { %s7198_s12 = sand.u32 1, %s7007_s19   ;;  %p8944_p8 = scmp.ne.s32.totalorder %s8935_s24, 0 }
  0x5e   : > { %s5009_s23 = sshll.u32 %s7198_s12, 9  ;;  %s243_s8 = scalar_lea.sflag [#allocation4], %s7198_s12 }
  0x5f   : > { %s7204_s28 = scalar_lea.vmem [#allocation3], %s5009_s23 }
  0x60   : > { %6986 = dma.done.wait (%p8944_p8), %s243_s8, 8192  }
  0x61   : > { %6988 = vsyncadd (%p8944_p8), %s243_s8, 4294959104  ;;  %p8945_p5 = scmp.eq.s32.totalorder %s7079_s22, 0 }
  0x63   : > { %6990 = dma.done.wait (%p8945_p5), [#allocation7], 8256   ;;  %p8946_p10 = pmov %p8945_p5 }
  0x64   : > { %p8947_p12 = pmov %p8945_p5 }
  0x65   : > { %6992 = vsyncadd (%p8946_p10), [#allocation7], 4294959040 }
  0x66   : > { %6994 = dma.done.wait (%p8947_p12), [#allocation10], 8192   ;;  %p8948_p2 = pmov %p8945_p5 }
  0x67   : > { %v430_v0 = vld [vmem:[#allocation6 + $0x1e0] sm:$0xff]  ;;  %v7223_v17 = vld [vmem:[%s7204_s28 + $0x8] sm:$0xff]  ;;  %v7226_v19 = vld [vmem:[%s7204_s28 + $0x10] sm:$0xff]  ;;  %s8664_s27 = scalar_lea.vmem [#allocation11], %s5009_s23  ;;  %s5025_s15 = sshll.u32 %s7079_s22, 13 }
  0x68   : > { %6996 = vsyncadd (%p8948_p2), [#allocation10], 4294959104  ;;  %v429_v1 = vld [vmem:[#allocation6 + $0x1c0] sm:$0xff]  ;;  %5666 = vmatprep.subr.mxu0 %v430_v0  ;;  %v1496_v18 = vld [vmem:[#allocation6 + $0x1e8] sm:$0xff]  ;;  %s4897_s17 = sshll.u32 %s8664_s27, 4  ;;  %s8857_s14 = scalar_lea.hbm %s8909_s5, %s5025_s15  ;;  %s8859_s17 = int_to_ptr.vmem [resolvable:$true] %s4897_s17 }
  0x69   : > { %5667 = vmatpush3.msra.mxu0 %v430_v0  ;;  %v428_v2 = vld [vmem:[#allocation6 + $0x1a0] sm:$0xff]  ;;  %v1495_v20 = vld [vmem:[#allocation6 + $0x1c8] sm:$0xff]  ;;  %v7231_v21 = vld [vmem:[%s7204_s28 + $0x18] sm:$0xff]  ;;  %s4884_s22 = scalar_lea.sflag [#allocation5], %s7198_s12  ;;  %s6943_s11 = scalar_lea.vmem %s8859_s17, 8192 }
  0x6a   : > { %5668 = vmatprep.subr.mxu0 %v429_v1  ;;  %v427_v3 = vld [vmem:[#allocation6 + $0x180] sm:$0xff]  ;;  %v1494_v22 = vld [vmem:[#allocation6 + $0x1a8] sm:$0xff]  ;;  %v7242_v27 = vld [vmem:[%s7204_s28 + $0x30] sm:$0xff]  ;;  %p6944_p4 = scmp.ne.s32.totalorder %s8859_s17, %s6943_s11  ;;  %p9179_p6 = scmp.ne.s32.totalorder %s8940_s29, 0 }
  0x6b   : > { %5669 = vmatpush3.msra.mxu0 %v429_v1  ;;  %v7219_v4 = vld [vmem:[%s7204_s28] sm:$0xff]  ;;  %v1493_v24 = vld [vmem:[#allocation6 + $0x188] sm:$0xff]  ;;  %v7247_v29 = vld [vmem:[%s7204_s28 + $0x38] sm:$0xff]  ;;  %s7025_s16 = smov [#allocation11]  }
  0x6c   : > { %5670 = vmatprep.subr.mxu0 %v428_v2  ;;  %v426_v5 = vld [vmem:[#allocation6 + $0x160] sm:$0xff]  ;;  %5698 = vmatprep.mubr.f32.mxu0 %v7219_v4  ;;  %v7239_v25 = vld [vmem:[%s7204_s28 + $0x28] sm:$0xff]  ;;  %v7258_v35 = vld [vmem:[%s7204_s28 + $0x50] sm:$0xff]  ;;  %p6945_p11 = pnand %p6944_p4, %p9179_p6  ;;  %s6947_s9 = sshll.u32 %s7025_s16, 4  ;;  %s6948_s9 = int_to_ptr.vmem [resolvable:$false] %s6947_s9 }
  0x6d   : > { %5671 = vmatpush3.msra.mxu0 %v428_v2  ;;  %v425_v6 = vld [vmem:[#allocation6 + $0x140] sm:$0xff]  ;;  %v1492_v26 = vld [vmem:[#allocation6 + $0x168] sm:$0xff]  ;;  %v7263_v37 = vld [vmem:[%s7204_s28 + $0x58] sm:$0xff]  ;;  %s6949_s7 = scalar_lea.vmem %s6948_s9, 16384  ;;  %p6950_p3 = scmp.lt.s32.totalorder %s8859_s17, %s6948_s9 }
  0x6e   : > { %5672 = vmatprep.subr.mxu0 %v427_v3  ;;  %v424_v7 = vld [vmem:[#allocation6 + $0x120] sm:$0xff]  ;;  %v1491_v28 = vld [vmem:[#allocation6 + $0x148] sm:$0xff]  ;;  %v7274_v43 = vld [vmem:[%s7204_s28 + $0x70] sm:$0xff]  ;;  %p6946_p13 = pneg %p6945_p11  ;;  %p6951_p0 = scmp.lt.s32.totalorder %s6949_s7, %s6943_s11 }
  0x6f   : > { %5673 = vmatpush3.msra.mxu0 %v427_v3  ;;  %v423_v8 = vld [vmem:[#allocation6 + $0x100] sm:$0xff]  ;;  %v1490_v30 = vld [vmem:[#allocation6 + $0x128] sm:$0xff]  ;;  %v7279_v45 = vld [vmem:[%s7204_s28 + $0x78] sm:$0xff] }
  0x70   : > { %5674 = vmatprep.subr.mxu0 %v426_v5  ;;  %v422_v9 = vld [vmem:[#allocation6 + $0xe0] sm:$0xff]  ;;  %v1489_v32 = vld [vmem:[#allocation6 + $0x108] sm:$0xff]  ;;  %v7289_v50 = vld [vmem:[#allocation6 + $0x1f0] sm:$0xff]  ;;  %p6952_p7 = por %p6951_p0, %p6950_p3 }
  0x71   : > { %5675 = vmatpush3.msra.mxu0 %v426_v5  ;;  %v421_v10 = vld [vmem:[#allocation6 + $0xc0] sm:$0xff]  ;;  %v7255_v33 = vld [vmem:[%s7204_s28 + $0x48] sm:$0xff]  ;;  %v7292_v51 = vld [vmem:[%s7204_s28 + $0x90] sm:$0xff] }
  0x72   : > { %5676 = vmatprep.subr.mxu0 %v425_v6  ;;  %v420_v11 = vld [vmem:[#allocation6 + $0xa0] sm:$0xff]  ;;  %v1488_v34 = vld [vmem:[#allocation6 + $0xe8] sm:$0xff]  ;;  %v7298_v52 = vld [vmem:[%s7204_s28 + $0x98] sm:$0xff]  ;;  %p6953_p9 = pnand %p6952_p7, %p6946_p13 }
  0x73   : > { %5677 = vmatpush3.msra.mxu0 %v425_v6  ;;  %v419_v12 = vld [vmem:[#allocation6 + $0x80] sm:$0xff]  ;;  %v1487_v36 = vld [vmem:[#allocation6 + $0xc8] sm:$0xff]  ;;  %v7309_v56 = vld [vmem:[%s7204_s28 + $0xb0] sm:$0xff] }
  0x74   : > { %5678 = vmatprep.subr.mxu0 %v424_v7  ;;  %v418_v13 = vld [vmem:[#allocation6 + $0x60] sm:$0xff]  ;;  %v1486_v38 = vld [vmem:[#allocation6 + $0xa8] sm:$0xff]  ;;  %v901_v57 = vld [vmem:[#allocation9 + $0x70] sm:$0xff] }
  0x75   : > { %5679 = vmatpush3.msra.mxu0 %v424_v7  ;;  %v417_v14 = vld [vmem:[#allocation6 + $0x40] sm:$0xff]  ;;  %v1485_v40 = vld [vmem:[#allocation6 + $0x88] sm:$0xff]  ;;  %v7314_v58 = vld [vmem:[%s7204_s28 + $0xb8] sm:$0xff] }
  0x76   : > { %5680 = vmatprep.subr.mxu0 %v423_v8  ;;  %v416_v15 = vld [vmem:[#allocation6 + $0x20] sm:$0xff]  ;;  %v7271_v41 = vld [vmem:[%s7204_s28 + $0x68] sm:$0xff]  ;;  %v7325_v0 = vld [vmem:[%s7204_s28 + $0xd0] sm:$0xff] }
  0x77   : > { %5681 = vmatpush3.msra.mxu0 %v423_v8  ;;  %v415_v16 = vld [vmem:[#allocation6] sm:$0xff]  ;;  %v1484_v42 = vld [vmem:[#allocation6 + $0x68] sm:$0xff]  ;;  %v897_v1 = vld [vmem:[#allocation9 + $0x50] sm:$0xff] }
  0x78   : > { %5682 = vmatprep.subr.mxu0 %v422_v9  ;;  %v7234_v23 = vld [vmem:[%s7204_s28 + $0x20] sm:$0xff]  ;;  %v1483_v44 = vld [vmem:[#allocation6 + $0x48] sm:$0xff]  ;;  %v7330_v2 = vld [vmem:[%s7204_s28 + $0xd8] sm:$0xff] }
  0x79   : > { %5683 = vmatpush3.msra.mxu0 %v422_v9  ;;  %v7250_v31 = vld [vmem:[%s7204_s28 + $0x40] sm:$0xff]  ;;  %v1482_v46 = vld [vmem:[#allocation6 + $0x28] sm:$0xff]  ;;  %v7341_v9 = vld [vmem:[%s7204_s28 + $0xf0] sm:$0xff] }
  0x7a   : > { %5684 = vmatprep.subr.mxu0 %v421_v10  ;;  %v7266_v39 = vld [vmem:[%s7204_s28 + $0x60] sm:$0xff]  ;;  %v1481_v48 = vld [vmem:[#allocation6 + $0x8] sm:$0xff] }
  0x7b   : > { %5685 = vmatpush3.msra.mxu0 %v421_v10  ;;  %v7282_v47 = vld [vmem:[%s7204_s28 + $0x80] sm:$0xff]  ;;  %v7287_v49 = vld [vmem:[%s7204_s28 + $0x88] sm:$0xff]  ;;  %v893_v10 = vld [vmem:[#allocation9 + $0x30] sm:$0xff] }
  0x7c   : > { %5686 = vmatprep.subr.mxu0 %v420_v11  ;;  %v7301_v53 = vld [vmem:[%s7204_s28 + $0xa0] sm:$0xff]  ;;  %v7306_v54 = vld [vmem:[%s7204_s28 + $0xa8] sm:$0xff] }
  0x7d   : > { %5687 = vmatpush3.msra.mxu0 %v420_v11  ;;  %v902_v55 = vld [vmem:[#allocation9 + $0x78] sm:$0xff]  ;;  %v900_v59 = vld [vmem:[#allocation9 + $0x68] sm:$0xff]  ;;  %v899_v61 = vld [vmem:[#allocation9 + $0x60] sm:$0xff] }
  0x7e   : > { %5688 = vmatprep.subr.mxu0 %v419_v12  ;;  %5794 = vmatprep.subr.mxu1 %v902_v55  ;;  %v7317_v60 = vld [vmem:[%s7204_s28 + $0xc0] sm:$0xff]  ;;  %v7322_v62 = vld [vmem:[%s7204_s28 + $0xc8] sm:$0xff]  ;;  %v7346_v11 = vld [vmem:[%s7204_s28 + $0xf8] sm:$0xff] }
  0x7f   : > { %5689 = vmatpush3.msra.mxu0 %v419_v12  ;;  %5795 = vmatpush3.msra.mxu1 %v902_v55  ;;  %v898_v63 = vld [vmem:[#allocation9 + $0x58] sm:$0xff]  ;;  %v896_v3 = vld [vmem:[#allocation9 + $0x48] sm:$0xff]  ;;  %v895_v6 = vld [vmem:[#allocation9 + $0x40] sm:$0xff] }
  0x80   : > { %5690 = vmatprep.subr.mxu0 %v418_v13  ;;  %5796 = vmatprep.subr.mxu1 %v901_v57  ;;  %v7333_v5 = vld [vmem:[%s7204_s28 + $0xe0] sm:$0xff]  ;;  %v7338_v7 = vld [vmem:[%s7204_s28 + $0xe8] sm:$0xff]  ;;  %v7408_v55 = vld [vmem:[%s7204_s28 + $0x170] sm:$0xff] }
  0x81   : > { %5691 = vmatpush3.msra.mxu0 %v418_v13  ;;  %5797 = vmatpush3.msra.mxu1 %v901_v57  ;;  %v894_v8 = vld [vmem:[#allocation9 + $0x38] sm:$0xff]  ;;  %v892_v12 = vld [vmem:[#allocation9 + $0x28] sm:$0xff] }
  0x82   : > { %5692 = vmatprep.subr.mxu0 %v417_v14  ;;  %5798 = vmatprep.subr.mxu1 %v900_v59  ;;  %v7349_v13 = vld [vmem:[%s7204_s28 + $0x100] sm:$0xff]  ;;  %v7413_v57 = vld [vmem:[%s7204_s28 + $0x178] sm:$0xff] }
  0x83   : > { %5693 = vmatpush3.msra.mxu0 %v417_v14  ;;  %5799 = vmatpush3.msra.mxu1 %v900_v59  ;;  %v891_v14 = vld [vmem:[#allocation9 + $0x20] sm:$0xff] }
  0x84   : > { %5694 = vmatprep.subr.mxu0 %v416_v15  ;;  %5800 = vmatprep.subr.mxu1 %v899_v61  ;;  %v7416_v59 = vld [vmem:[%s7204_s28 + $0x180] sm:$0xff] }
  0x85   : > { %5695 = vmatpush3.msra.mxu0 %v416_v15  ;;  %5801 = vmatpush3.msra.mxu1 %v899_v61  ;;  %v7354_v15 = vld [vmem:[%s7204_s28 + $0x108] sm:$0xff] }
  0x86   : > { %5696 = vmatprep.subr.mxu0 %v415_v16  ;;  %5802 = vmatprep.subr.mxu1 %v898_v63  ;;  %v7421_v61 = vld [vmem:[%s7204_s28 + $0x188] sm:$0xff] }
  0x87   : > { %5697 = vmatpush3.msra.mxu0 %v415_v16  ;;  %5803 = vmatpush3.msra.mxu1 %v898_v63  ;;  %v7357_v16 = vld [vmem:[%s7204_s28 + $0x110] sm:$0xff] }
  0x88   : > { %5699 = vmatmul.mubr.f32.vlgmr.msra.gmra.mxu0 %v7223_v17  ;;  %5922 = vmatprep.subr.mxu0 %v1496_v18  ;;  %v7424_v63 = vld [vmem:[%s7204_s28 + $0x190] sm:$0xff] }
  0x89   : > { %5923 = vmatpush3.msra.mxu0 %v1496_v18  ;;  %5701 = vmatprep.mubr.f32.mxu0 %v7226_v19  ;;  %v890_v18 = vld [vmem:[#allocation9 + $0x18] sm:$0xff] }
  0x8a   : > { %5924 = vmatprep.subr.mxu0 %v1495_v20  ;;  %5804 = vmatprep.subr.mxu1 %v897_v1 }
  0x8b   : > { %5925 = vmatpush3.msra.mxu0 %v1495_v20  ;;  %5805 = vmatpush3.msra.mxu1 %v897_v1  ;;  %v7362_v20 = vld [vmem:[%s7204_s28 + $0x118] sm:$0xff] }
  0x8c   : > { %5702 = vmatmul.mubr.f32.gmra.mxu0 %v7231_v21  ;;  %5926 = vmatprep.subr.mxu0 %v1494_v22  ;;  %v7429_v1 = vld [vmem:[%s7204_s28 + $0x198] sm:$0xff] }
  0x8d   : > { %5704 = vmatprep.mubr.f32.mxu0 %v7234_v23  ;;  %5927 = vmatpush3.msra.mxu0 %v1494_v22  ;;  %v889_v22 = vld [vmem:[#allocation9 + $0x10] sm:$0xff] }
  0x8e   : > { %5928 = vmatprep.subr.mxu0 %v1493_v24  ;;  %5806 = vmatprep.subr.mxu1 %v896_v3 }
  0x8f   : > { %5929 = vmatpush3.msra.mxu0 %v1493_v24  ;;  %5807 = vmatpush3.msra.mxu1 %v896_v3  ;;  %v7365_v24 = vld [vmem:[%s7204_s28 + $0x120] sm:$0xff] }
  0x90   : > { %5705 = vmatmul.mubr.f32.gmra.mxu0 %v7239_v25  ;;  %5930 = vmatprep.subr.mxu0 %v1492_v26  ;;  %v7432_v3 = vld [vmem:[%s7204_s28 + $0x1a0] sm:$0xff] }
  0x91   : > { %5707 = vmatprep.mubr.f32.mxu0 %v7242_v27  ;;  %5931 = vmatpush3.msra.mxu0 %v1492_v26  ;;  %v888_v26 = vld [vmem:[#allocation9 + $0x8] sm:$0xff] }
  0x92   : > { %5932 = vmatprep.subr.mxu0 %v1491_v28  ;;  %5808 = vmatprep.subr.mxu1 %v895_v6 }
  0x93   : > { %5933 = vmatpush3.msra.mxu0 %v1491_v28  ;;  %5809 = vmatpush3.msra.mxu1 %v895_v6  ;;  %v7370_v28 = vld [vmem:[%s7204_s28 + $0x128] sm:$0xff] }
  0x94   : > { %5708 = vmatmul.mubr.f32.gmra.mxu0 %v7247_v29  ;;  %5934 = vmatprep.subr.mxu0 %v1490_v30  ;;  %v7437_v6 = vld [vmem:[%s7204_s28 + $0x1a8] sm:$0xff] }
  0x95   : > { %5710 = vmatprep.mubr.f32.mxu0 %v7250_v31  ;;  %5935 = vmatpush3.msra.mxu0 %v1490_v30  ;;  %v887_v30 = vld [vmem:[#allocation9] sm:$0xff] }
  0x96   : > { %5936 = vmatprep.subr.mxu0 %v1489_v32  ;;  %5810 = vmatprep.subr.mxu1 %v894_v8 }
  0x97   : > { %5937 = vmatpush3.msra.mxu0 %v1489_v32  ;;  %5811 = vmatpush3.msra.mxu1 %v894_v8  ;;  %v7373_v32 = vld [vmem:[%s7204_s28 + $0x130] sm:$0xff] }
  0x98   : > { %5711 = vmatmul.mubr.f32.gmra.mxu0 %v7255_v33  ;;  %5938 = vmatprep.subr.mxu0 %v1488_v34  ;;  %v7440_v8 = vld [vmem:[%s7204_s28 + $0x1b0] sm:$0xff] }
  0x99   : > { %5713 = vmatprep.mubr.f32.mxu0 %v7258_v35  ;;  %5939 = vmatpush3.msra.mxu0 %v1488_v34  ;;  %v7378_v34 = vld [vmem:[%s7204_s28 + $0x138] sm:$0xff] }
  0x9a   : > { %5940 = vmatprep.subr.mxu0 %v1487_v36  ;;  %5812 = vmatprep.subr.mxu1 %v893_v10 }
  0x9b   : > { %5941 = vmatpush3.msra.mxu0 %v1487_v36  ;;  %5813 = vmatpush3.msra.mxu1 %v893_v10  ;;  %v7381_v36 = vld [vmem:[%s7204_s28 + $0x140] sm:$0xff]  ;;  %v7445_v10 = vld [vmem:[%s7204_s28 + $0x1b8] sm:$0xff] }
  0x9c   : > { %5714 = vmatmul.mubr.f32.gmra.mxu0 %v7263_v37  ;;  %5942 = vmatprep.subr.mxu0 %v1486_v38  ;;  %8949 = vst [vmem:[#allocation16_spill] sm:$0xff] %v7445_v10 }
  0x9d   : > { %5716 = vmatprep.mubr.f32.mxu0 %v7266_v39  ;;  %5943 = vmatpush3.msra.mxu0 %v1486_v38  ;;  %v7383_v38 = vld [vmem:[#allocation9 + $0xf8] sm:$0xff] }
  0x9e   : > { %5944 = vmatprep.subr.mxu0 %v1485_v40  ;;  %5814 = vmatprep.subr.mxu1 %v892_v12 }
  0x9f   : > { %5945 = vmatpush3.msra.mxu0 %v1485_v40  ;;  %5815 = vmatpush3.msra.mxu1 %v892_v12  ;;  %v7389_v40 = vld [vmem:[%s7204_s28 + $0x148] sm:$0xff]  ;;  %v7448_v12 = vld [vmem:[%s7204_s28 + $0x1c0] sm:$0xff] }
  0xa0   : > { %5717 = vmatmul.mubr.f32.gmra.mxu0 %v7271_v41  ;;  %5946 = vmatprep.subr.mxu0 %v1484_v42  ;;  %8950 = vst [vmem:[#allocation17_spill] sm:$0xff] %v7448_v12 }
  0xa1   : > { %5719 = vmatprep.mubr.f32.mxu0 %v7274_v43  ;;  %5947 = vmatpush3.msra.mxu0 %v1484_v42  ;;  %v7392_v42 = vld [vmem:[%s7204_s28 + $0x150] sm:$0xff] }
  0xa2   : > { %5948 = vmatprep.subr.mxu0 %v1483_v44  ;;  %5816 = vmatprep.subr.mxu1 %v891_v14 }
  0xa3   : > { %5949 = vmatpush3.msra.mxu0 %v1483_v44  ;;  %5817 = vmatpush3.msra.mxu1 %v891_v14  ;;  %v7397_v44 = vld [vmem:[%s7204_s28 + $0x158] sm:$0xff]  ;;  %v7453_v14 = vld [vmem:[%s7204_s28 + $0x1c8] sm:$0xff] }
  0xa4   : > { %5720 = vmatmul.mubr.f32.gmra.mxu0 %v7279_v45  ;;  %5950 = vmatprep.subr.mxu0 %v1482_v46 }
  0xa5   : > { %5722 = vmatprep.mubr.f32.mxu0 %v7282_v47  ;;  %5951 = vmatpush3.msra.mxu0 %v1482_v46  ;;  %v7400_v46 = vld [vmem:[%s7204_s28 + $0x160] sm:$0xff] }
  0xa6   : > { %5952 = vmatprep.subr.mxu0 %v1481_v48  ;;  %5818 = vmatprep.subr.mxu1 %v890_v18 }
  0xa7   : > { %5953 = vmatpush3.msra.mxu0 %v1481_v48  ;;  %5819 = vmatpush3.msra.mxu1 %v890_v18  ;;  %v7405_v48 = vld [vmem:[%s7204_s28 + $0x168] sm:$0xff]  ;;  %v7456_v18 = vld [vmem:[%s7204_s28 + $0x1d0] sm:$0xff] }
  0xa8   : > { %5723 = vmatmul.mubr.f32.gmra.mxu0 %v7287_v49  ;;  %6178 = vmatprep.subr.mxu0 %v7289_v50  ;;  %8951 = vst [vmem:[#allocation18_spill] sm:$0xff] %v7456_v18 }
  0xa9   : > { %5725 = vmatprep.mubr.f32.mxu0 %v7292_v51  ;;  %5820 = vmatprep.subr.mxu1 %v889_v22 }
  0xaa   : > { %5821 = vmatpush3.msra.mxu1 %v889_v22  ;;  %v7461_v22 = vld [vmem:[%s7204_s28 + $0x1d8] sm:$0xff] }
  0xab   : > { %5822 = vmatprep.subr.mxu1 %v888_v26  ;;  %8952 = vst [vmem:[#allocation19_spill] sm:$0xff] %v7461_v22 }
  0xac   : > { %5726 = vmatmul.mubr.f32.gmra.mxu0 %v7298_v52  ;;  %5823 = vmatpush3.msra.mxu1 %v888_v26  ;;  %v7464_v26 = vld [vmem:[%s7204_s28 + $0x1e0] sm:$0xff] }
  0xad   : > { %5728 = vmatprep.mubr.f32.mxu0 %v7301_v53  ;;  %5824 = vmatprep.subr.mxu1 %v887_v30  ;;  %8953 = vst [vmem:[#allocation20_spill] sm:$0xff] %v7464_v26 }
  0xae   : > { %5825 = vmatpush3.msra.mxu1 %v887_v30  ;;  %v7469_v30 = vld [vmem:[%s7204_s28 + $0x1e8] sm:$0xff] }
  0xaf   : > { %6050 = vmatprep.subr.mxu1 %v7383_v38 }
  0xb0   : > { %5729 = vmatmul.mubr.f32.gmra.mxu0 %v7306_v54 }
  0xb1   : > { %5731 = vmatprep.mubr.f32.mxu0 %v7309_v56 }
  0xb4   : > { %5732 = vmatmul.mubr.f32.gmra.mxu0 %v7314_v58 }
  0xb5   : > { %5734 = vmatprep.mubr.f32.mxu0 %v7317_v60 }
  0xb8   : > { %5735 = vmatmul.mubr.f32.gmra.mxu0 %v7322_v62 }
  0xb9   : > { %5737 = vmatprep.mubr.f32.mxu0 %v7325_v0 }
  0xbc   : > { %5738 = vmatmul.mubr.f32.gmra.mxu0 %v7330_v2 }
  0xbd   : > { %5740 = vmatprep.mubr.f32.mxu0 %v7333_v5 }
  0xc0   : > { %5741 = vmatmul.mubr.f32.gmra.mxu0 %v7338_v7 }
  0xc1   : > { %5743 = vmatprep.mubr.f32.mxu0 %v7341_v9 }
  0xc4   : > { %5744 = vmatmul.mubr.f32.gmra.mxu0 %v7346_v11 }
  0xc5   : > { %5746 = vmatprep.mubr.f32.mxu0 %v7349_v13 }
  0xc8   : > { %5747 = vmatmul.mubr.f32.gmra.mxu0 %v7354_v15 }
  0xc9   : > { %5749 = vmatprep.mubr.f32.mxu0 %v7357_v16 }
  0xcc   : > { %5750 = vmatmul.mubr.f32.gmra.mxu0 %v7362_v20 }
  0xcd   : > { %5752 = vmatprep.mubr.f32.mxu0 %v7365_v24 }
  0xd0   : > { %5753 = vmatmul.mubr.f32.gmra.mxu0 %v7370_v28 }
  0xd1   : > { %5755 = vmatprep.mubr.f32.mxu0 %v7373_v32 }
  0xd4   : > { %5756 = vmatmul.mubr.f32.gmra.mxu0 %v7378_v34 }
  0xd5   : > { %5758 = vmatprep.mubr.f32.mxu0 %v7381_v36 }
  0xd8   : > { %5759 = vmatmul.mubr.f32.gmra.mxu0 %v7389_v40 }
  0xd9   : > { %5761 = vmatprep.mubr.f32.mxu0 %v7392_v42 }
  0xdc   : > { %5762 = vmatmul.mubr.f32.gmra.mxu0 %v7397_v44 }
  0xdd   : > { %5764 = vmatprep.mubr.f32.mxu0 %v7400_v46 }
  0xe0   : > { %5765 = vmatmul.mubr.f32.gmra.mxu0 %v7405_v48 }
  0xe1   : > { %5767 = vmatprep.mubr.f32.mxu0 %v7408_v55 }
  0xe4   : > { %5768 = vmatmul.mubr.f32.gmra.mxu0 %v7413_v57 }
  0xe5   : > { %5770 = vmatprep.mubr.f32.mxu0 %v7416_v59 }
  0xe8   : > { %5771 = vmatmul.mubr.f32.gmra.mxu0 %v7421_v61 }
  0xe9   : > { %5773 = vmatprep.mubr.f32.mxu0 %v7424_v63 }
  0xec   : > { %5774 = vmatmul.mubr.f32.gmra.mxu0 %v7429_v1 }
  0xed   : > { %5776 = vmatprep.mubr.f32.mxu0 %v7432_v3 }
  0xf0   : > { %5777 = vmatmul.mubr.f32.gmra.mxu0 %v7437_v6 }
  0xf1   : > { %5779 = vmatprep.mubr.f32.mxu0 %v7440_v8 }
  0xf4   : > { %5780 = vmatmul.mubr.f32.gmra.mxu0 %v7445_v10  ;;  %v7472_v10 = vld [vmem:[%s7204_s28 + $0x1f0] sm:$0xff] }
  0xf5   : > { %5782 = vmatprep.mubr.f32.mxu0 %v7448_v12  ;;  %v7477_v12 = vld [vmem:[%s7204_s28 + $0x1f8] sm:$0xff] }
  0xf6   : > { %8954 = vst [vmem:[#allocation21_spill] sm:$0xff] %v7477_v12 }
  0xf8   : > { %5783 = vmatmul.mubr.f32.gmra.mxu0 %v7453_v14 }
  0xf9   : > { %5785 = vmatprep.mubr.f32.mxu0 %v7456_v18  ;;  %v2563_v18 = vld [vmem:[#allocation6 + $0x1d0] sm:$0xff] }
  0xfc   : > { %5786 = vmatmul.mubr.f32.gmra.mxu0 %v7461_v22  ;;  %v2561_v22 = vld [vmem:[#allocation6 + $0x190] sm:$0xff] }
  0xfd   : > { %5788 = vmatprep.mubr.f32.mxu0 %v7464_v26  ;;  %v2562_v26 = vld [vmem:[#allocation6 + $0x1b0] sm:$0xff] }
 0x100   : > { %5789 = vmatmul.mubr.f32.gmra.mxu0 %v7469_v30 }
 0x101   : > { %5791 = vmatprep.mubr.f32.mxu0 %v7472_v10 }
 0x104   : > { %5792 = vmatmul.mubr.f32.gmra.mxu0 %v7477_v12  ;;  %v2560_v12 = vld [vmem:[#allocation6 + $0x170] sm:$0xff] }
 0x105   : > { %5954 = vmatprep.mubr.f32.mxu0 %v7219_v4  ;;  %v2559_v4 = vld [vmem:[#allocation6 + $0x150] sm:$0xff] }
 0x108   : > { %5955 = vmatmul.mubr.f32.vlgmr.msra.gmra.mxu0 %v7223_v17  ;;  %v2558_v17 = vld [vmem:[#allocation6 + $0x130] sm:$0xff] }
 0x109   : > { %6179 = vmatpush3.msra.mxu0 %v7289_v50  ;;  %5957 = vmatprep.mubr.f32.mxu0 %v7226_v19  ;;  %v2557_v19 = vld [vmem:[#allocation6 + $0x110] sm:$0xff] }
 0x10a   : > { %6180 = vmatprep.subr.mxu0 %v2563_v18 }
 0x10b   : > { %6181 = vmatpush3.msra.mxu0 %v2563_v18  ;;  %v1965_v18 = vld [vmem:[#allocation9 + $0xd0] sm:$0xff] }
 0x10c   : > { %5958 = vmatmul.mubr.f32.gmra.mxu0 %v7231_v21  ;;  %6182 = vmatprep.subr.mxu0 %v2562_v26  ;;  %v2556_v21 = vld [vmem:[#allocation6 + $0xf0] sm:$0xff] }
 0x10d   : > { %5960 = vmatprep.mubr.f32.mxu0 %v7234_v23  ;;  %6183 = vmatpush3.msra.mxu0 %v2562_v26  ;;  %v2555_v23 = vld [vmem:[#allocation6 + $0xd0] sm:$0xff] }
 0x10e   : > { %6184 = vmatprep.subr.mxu0 %v2561_v22 }
 0x10f   : > { %6185 = vmatpush3.msra.mxu0 %v2561_v22 }
 0x110   : > { %5961 = vmatmul.mubr.f32.gmra.mxu0 %v7239_v25  ;;  %6186 = vmatprep.subr.mxu0 %v2560_v12  ;;  %v2554_v25 = vld [vmem:[#allocation6 + $0xb0] sm:$0xff] }
 0x111   : > { %5963 = vmatprep.mubr.f32.mxu0 %v7242_v27  ;;  %6187 = vmatpush3.msra.mxu0 %v2560_v12  ;;  %v2553_v27 = vld [vmem:[#allocation6 + $0x90] sm:$0xff] }
 0x112   : > { %6188 = vmatprep.subr.mxu0 %v2559_v4 }
 0x113   : > { %6189 = vmatpush3.msra.mxu0 %v2559_v4  ;;  %v1964_v4 = vld [vmem:[#allocation9 + $0xc8] sm:$0xff] }
 0x114   : > { %5964 = vmatmul.mubr.f32.gmra.mxu0 %v7247_v29  ;;  %6190 = vmatprep.subr.mxu0 %v2558_v17  ;;  %v2552_v29 = vld [vmem:[#allocation6 + $0x70] sm:$0xff] }
 0x115   : > { %5966 = vmatprep.mubr.f32.mxu0 %v7250_v31  ;;  %6191 = vmatpush3.msra.mxu0 %v2558_v17  ;;  %v2551_v31 = vld [vmem:[#allocation6 + $0x50] sm:$0xff] }
 0x116   : > { %6192 = vmatprep.subr.mxu0 %v2557_v19 }
 0x117   : > { %6193 = vmatpush3.msra.mxu0 %v2557_v19 }
 0x118   : > { %5967 = vmatmul.mubr.f32.gmra.mxu0 %v7255_v33  ;;  %6194 = vmatprep.subr.mxu0 %v2556_v21  ;;  %v2550_v33 = vld [vmem:[#allocation6 + $0x30] sm:$0xff] }
 0x119   : > { %5969 = vmatprep.mubr.f32.mxu0 %v7258_v35  ;;  %6195 = vmatpush3.msra.mxu0 %v2556_v21  ;;  %v2549_v35 = vld [vmem:[#allocation6 + $0x10] sm:$0xff] }
 0x11a   : > { %6196 = vmatprep.subr.mxu0 %v2555_v23 }
 0x11b   : > { %6197 = vmatpush3.msra.mxu0 %v2555_v23  ;;  %v1963_v23 = vld [vmem:[#allocation9 + $0xc0] sm:$0xff] }
 0x11c   : > { %5970 = vmatmul.mubr.f32.gmra.mxu0 %v7263_v37  ;;  %6198 = vmatprep.subr.mxu0 %v2554_v25  ;;  %v7498_v37 = vld [vmem:[#allocation6 + $0x1f8] sm:$0xff] }
 0x11d   : > { %5972 = vmatprep.mubr.f32.mxu0 %v7266_v39  ;;  %6199 = vmatpush3.msra.mxu0 %v2554_v25  ;;  %v7517_v39 = vld [vmem:[#allocation8] ss:$0 sm:$0xff] }
 0x11e   : > { %6200 = vmatprep.subr.mxu0 %v2553_v27 }
 0x11f   : > { %6201 = vmatpush3.msra.mxu0 %v2553_v27 }
 0x120   : > { %5973 = vmatmul.mubr.f32.gmra.mxu0 %v7271_v41  ;;  %6202 = vmatprep.subr.mxu0 %v2552_v29 }
 0x121   : > { %5975 = vmatprep.mubr.f32.mxu0 %v7274_v43  ;;  %6203 = vmatpush3.msra.mxu0 %v2552_v29 }
 0x122   : > { %6204 = vmatprep.subr.mxu0 %v2551_v31 }
 0x123   : > { %6205 = vmatpush3.msra.mxu0 %v2551_v31  ;;  %v1962_v31 = vld [vmem:[#allocation9 + $0xb8] sm:$0xff] }
 0x124   : > { %5976 = vmatmul.mubr.f32.gmra.mxu0 %v7279_v45  ;;  %6206 = vmatprep.subr.mxu0 %v2550_v33 }
 0x125   : > { %5978 = vmatprep.mubr.f32.mxu0 %v7282_v47  ;;  %6207 = vmatpush3.msra.mxu0 %v2550_v33 }
 0x126   : > { %6208 = vmatprep.subr.mxu0 %v2549_v35 }
 0x127   : > { %6209 = vmatpush3.msra.mxu0 %v2549_v35 }
 0x128   : > { %5979 = vmatmul.mubr.f32.gmra.mxu0 %v7287_v49  ;;  %6434 = vmatprep.subr.mxu0 %v7498_v37 }
 0x129   : > { %5981 = vmatprep.mubr.f32.mxu0 %v7292_v51 }
 0x12c   : > { %5982 = vmatmul.mubr.f32.gmra.mxu0 %v7298_v52 }
 0x12d   : > { %5984 = vmatprep.mubr.f32.mxu0 %v7301_v53 }
 0x130   : > { %5985 = vmatmul.mubr.f32.gmra.mxu0 %v7306_v54 }
 0x131   : > { %5987 = vmatprep.mubr.f32.mxu0 %v7309_v56  ;;  %v1969_v56 = vld [vmem:[#allocation9 + $0xf0] sm:$0xff] }
 0x134   : > { %5988 = vmatmul.mubr.f32.gmra.mxu0 %v7314_v58 }
 0x135   : > { %5990 = vmatprep.mubr.f32.mxu0 %v7317_v60 }
 0x138   : > { %5991 = vmatmul.mubr.f32.gmra.mxu0 %v7322_v62 }
 0x139   : > { %5993 = vmatprep.mubr.f32.mxu0 %v7325_v0 }
 0x13c   : > { %5994 = vmatmul.mubr.f32.gmra.mxu0 %v7330_v2 }
 0x13d   : > { %5996 = vmatprep.mubr.f32.mxu0 %v7333_v5  ;;  %v1968_v5 = vld [vmem:[#allocation9 + $0xe8] sm:$0xff] }
 0x140   : > { %5997 = vmatmul.mubr.f32.gmra.mxu0 %v7338_v7 }
 0x141   : > { %5999 = vmatprep.mubr.f32.mxu0 %v7341_v9 }
 0x144   : > { %6000 = vmatmul.mubr.f32.gmra.mxu0 %v7346_v11  ;;  %v1967_v11 = vld [vmem:[#allocation9 + $0xe0] sm:$0xff] }
 0x145   : > { %6002 = vmatprep.mubr.f32.mxu0 %v7349_v13 }
 0x148   : > { %v5700_v41 = vpop.f32.mrf.mxu0  ;;  %6003 = vmatmul.mubr.f32.gmra.mxu0 %v7354_v15 }
 0x149   : > { %6005 = vmatprep.mubr.f32.mxu0 %v7357_v16  ;;  %v510_v43 = vadd.f32 %v5700_v41, %v7517_v39  ;;  %v1961_v41 = vld [vmem:[#allocation9 + $0xb0] sm:$0xff] }
 0x14a   : > { %v504_v45 = vpop.f32.mrf.mxu0 }
 0x14b   : > { %v505_v47 = vadd.f32 %v7517_v39, %v504_v45  ;;  %v824_v51 = vmax.f32 %v510_v43, 0.0 }
 0x14c   : > { %v5703_v49 = vpop.f32.mrf.mxu0  ;;  %6006 = vmatmul.mubr.f32.gmra.mxu0 %v7362_v20 }
 0x14d   : > { %v823_v50 = vmax.f32 %v505_v47, 0.0  ;;  %6008 = vmatprep.mubr.f32.mxu0 %v7365_v24  ;;  %v520_v52 = vadd.f32 %v5703_v49, %v7517_v39  ;;  %v1960_v49 = vld [vmem:[#allocation9 + $0xa8] sm:$0xff] }
 0x14e   : > { %v514_v53 = vpop.f32.mrf.mxu0 }
 0x14f   : > { %v515_v54 = vadd.f32 %v7517_v39, %v514_v53  ;;  %5826 = vmatprep.mubr.f32.mxu1 %v823_v50  ;;  %v826_v62 = vmax.f32 %v520_v52, 0.0  ;;  %v1959_v53 = vld [vmem:[#allocation9 + $0xa0] sm:$0xff] }
 0x150   : > { %v5706_v58 = vpop.f32.mrf.mxu0  ;;  %5827 = vmatmul.mubr.f32.vlgmr.msra.gmra.mxu1 %v824_v51  ;;  %6009 = vmatmul.mubr.f32.gmra.mxu0 %v7370_v28  ;;  %v1966_v28 = vld [vmem:[#allocation9 + $0xd8] sm:$0xff] }
 0x151   : > { %v825_v60 = vmax.f32 %v515_v54, 0.0  ;;  %6051 = vmatpush3.msra.mxu1 %v7383_v38  ;;  %6011 = vmatprep.mubr.f32.mxu0 %v7373_v32  ;;  %v530_v0 = vadd.f32 %v5706_v58, %v7517_v39  ;;  %v1958_v58 = vld [vmem:[#allocation9 + $0x98] sm:$0xff] }
 0x152   : > { %v524_v2 = vpop.f32.mrf.mxu0  ;;  %6052 = vmatprep.subr.mxu1 %v1969_v56 }
 0x153   : > { %v525_v7 = vadd.f32 %v7517_v39, %v524_v2  ;;  %5829 = vmatprep.mubr.f32.mxu1 %v825_v60  ;;  %6053 = vmatpush3.msra.mxu1 %v1969_v56  ;;  %v828_v15 = vmax.f32 %v530_v0, 0.0  ;;  %v1957_v2 = vld [vmem:[#allocation9 + $0x90] sm:$0xff] }
 0x154   : > { %v5709_v9 = vpop.f32.mrf.mxu0  ;;  %5830 = vmatmul.mubr.f32.gmra.mxu1 %v826_v62  ;;  %6012 = vmatmul.mubr.f32.gmra.mxu0 %v7378_v34 }
 0x155   : > { %v827_v13 = vmax.f32 %v525_v7, 0.0  ;;  %6014 = vmatprep.mubr.f32.mxu0 %v7381_v36  ;;  %6054 = vmatprep.subr.mxu1 %v1968_v5  ;;  %v540_v16 = vadd.f32 %v5709_v9, %v7517_v39 }
 0x156   : > { %v534_v20 = vpop.f32.mrf.mxu0  ;;  %6055 = vmatpush3.msra.mxu1 %v1968_v5 }
 0x157   : > { %v535_v24 = vadd.f32 %v7517_v39, %v534_v20  ;;  %5832 = vmatprep.mubr.f32.mxu1 %v827_v13  ;;  %6056 = vmatprep.subr.mxu1 %v1967_v11  ;;  %v830_v36 = vmax.f32 %v540_v16, 0.0  ;;  %v8955_v16 = vld [vmem:[#allocation16_spill] sm:$0xff] }
 0x158   : > { %v5712_v32 = vpop.f32.mrf.mxu0  ;;  %5833 = vmatmul.mubr.f32.gmra.mxu1 %v828_v15  ;;  %6015 = vmatmul.mubr.f32.gmra.mxu0 %v7389_v40  ;;  %v1955_v20 = vld [vmem:[#allocation9 + $0x80] sm:$0xff] }
 0x159   : > { %v829_v34 = vmax.f32 %v535_v24, 0.0  ;;  %6017 = vmatprep.mubr.f32.mxu0 %v7392_v42  ;;  %6057 = vmatpush3.msra.mxu1 %v1967_v11  ;;  %v550_v38 = vadd.f32 %v5712_v32, %v7517_v39  ;;  %v1956_v11 = vld [vmem:[#allocation9 + $0x88] sm:$0xff] }
 0x15a   : > { %v544_v12 = vpop.f32.mrf.mxu0  ;;  %6058 = vmatprep.subr.mxu1 %v1966_v28  ;;  %v8956_v24 = vld [vmem:[#allocation17_spill] sm:$0xff] }
 0x15b   : > { %v545_v22 = vadd.f32 %v7517_v39, %v544_v12  ;;  %5835 = vmatprep.mubr.f32.mxu1 %v829_v34  ;;  %6059 = vmatpush3.msra.mxu1 %v1966_v28  ;;  %v832_v42 = vmax.f32 %v550_v38, 0.0 }
 0x15c   : > { %v5715_v26 = vpop.f32.mrf.mxu0  ;;  %5836 = vmatmul.mubr.f32.gmra.mxu1 %v830_v36  ;;  %6018 = vmatmul.mubr.f32.gmra.mxu0 %v7397_v44  ;;  %v7568_v36 = vld [vmem:[#allocation9 + $0x178] sm:$0xff] }
 0x15d   : > { %v831_v40 = vmax.f32 %v545_v22, 0.0  ;;  %6020 = vmatprep.mubr.f32.mxu0 %v7400_v46  ;;  %6060 = vmatprep.subr.mxu1 %v1965_v18  ;;  %v560_v17 = vadd.f32 %v5715_v26, %v7517_v39 }
 0x15e   : > { %v554_v19 = vpop.f32.mrf.mxu0  ;;  %6061 = vmatpush3.msra.mxu1 %v1965_v18  ;;  %v8957_v18 = vld [vmem:[#allocation18_spill] sm:$0xff] }
 0x15f   : > { %v555_v21 = vadd.f32 %v7517_v39, %v554_v19  ;;  %5838 = vmatprep.mubr.f32.mxu1 %v831_v40  ;;  %6062 = vmatprep.subr.mxu1 %v1964_v4  ;;  %v834_v46 = vmax.f32 %v560_v17, 0.0  ;;  %v8958_v17 = vld [vmem:[#allocation19_spill] sm:$0xff] }
 0x160   : > { %v5718_v25 = vpop.f32.mrf.mxu0  ;;  %5839 = vmatmul.mubr.f32.gmra.mxu1 %v832_v42  ;;  %6021 = vmatmul.mubr.f32.gmra.mxu0 %v7405_v48 }
 0x161   : > { %v833_v44 = vmax.f32 %v555_v21, 0.0  ;;  %6023 = vmatprep.mubr.f32.mxu0 %v7408_v55  ;;  %6063 = vmatpush3.msra.mxu1 %v1964_v4  ;;  %v570_v27 = vadd.f32 %v5718_v25, %v7517_v39  ;;  %v8959_v21 = vld [vmem:[#allocation20_spill] sm:$0xff] }
 0x162   : > { %v564_v29 = vpop.f32.mrf.mxu0  ;;  %6064 = vmatprep.subr.mxu1 %v1963_v23 }
 0x163   : > { %v565_v33 = vadd.f32 %v7517_v39, %v564_v29  ;;  %5841 = vmatprep.mubr.f32.mxu1 %v833_v44  ;;  %6065 = vmatpush3.msra.mxu1 %v1963_v23  ;;  %v836_v55 = vmax.f32 %v570_v27, 0.0 }
 0x164   : > { %v5721_v35 = vpop.f32.mrf.mxu0  ;;  %5842 = vmatmul.mubr.f32.gmra.mxu1 %v834_v46  ;;  %6024 = vmatmul.mubr.f32.gmra.mxu0 %v7413_v57 }
 0x165   : > { %v835_v48 = vmax.f32 %v565_v33, 0.0  ;;  %6026 = vmatprep.mubr.f32.mxu0 %v7416_v59  ;;  %6066 = vmatprep.subr.mxu1 %v1962_v31  ;;  %v580_v43 = vadd.f32 %v5721_v35, %v7517_v39 }
 0x166   : > { %v574_v45 = vpop.f32.mrf.mxu0  ;;  %6067 = vmatpush3.msra.mxu1 %v1962_v31 }
 0x167   : > { %v575_v47 = vadd.f32 %v7517_v39, %v574_v45  ;;  %5844 = vmatprep.mubr.f32.mxu1 %v835_v48  ;;  %6068 = vmatprep.subr.mxu1 %v1961_v41  ;;  %v838_v59 = vmax.f32 %v580_v43, 0.0  ;;  %v8960_v48 = vld [vmem:[#allocation21_spill] sm:$0xff]  ;;  %v7585_v43 = vld [vmem:[%s7204_s28] sm:$0xff] }
 0x168   : > { %v5724_v50 = vpop.f32.mrf.mxu0  ;;  %5845 = vmatmul.mubr.f32.gmra.mxu1 %v836_v55  ;;  %6027 = vmatmul.mubr.f32.gmra.mxu0 %v7421_v61 }
 0x169   : > { %v837_v57 = vmax.f32 %v575_v47, 0.0  ;;  %6029 = vmatprep.mubr.f32.mxu0 %v7424_v63  ;;  %6069 = vmatpush3.msra.mxu1 %v1961_v41  ;;  %v590_v51 = vadd.f32 %v5724_v50, %v7517_v39 }
 0x16a   : > { %v584_v52 = vpop.f32.mrf.mxu0  ;;  %6070 = vmatprep.subr.mxu1 %v1960_v49 }
 0x16b   : > { %v585_v54 = vadd.f32 %v7517_v39, %v584_v52  ;;  %5847 = vmatprep.mubr.f32.mxu1 %v837_v57  ;;  %6071 = vmatpush3.msra.mxu1 %v1960_v49  ;;  %v840_v63 = vmax.f32 %v590_v51, 0.0  ;;  %v3631_v49 = vld [vmem:[#allocation6 + $0x1d8] sm:$0xff]  ;;  %v7591_v57 = vld [vmem:[%s7204_s28 + $0x8] sm:$0xff]  ;;  %v7596_v51 = vld [vmem:[%s7204_s28 + $0x10] sm:$0xff] }
 0x16c   : > { %v5727_v56 = vpop.f32.mrf.mxu0  ;;  %5848 = vmatmul.mubr.f32.gmra.mxu1 %v838_v59  ;;  %6030 = vmatmul.mubr.f32.gmra.mxu0 %v7429_v1 }
 0x16d   : > { %v839_v61 = vmax.f32 %v585_v54, 0.0  ;;  %6032 = vmatprep.mubr.f32.mxu0 %v7432_v3  ;;  %6072 = vmatprep.subr.mxu1 %v1959_v53  ;;  %v600_v60 = vadd.f32 %v5727_v56, %v7517_v39  ;;  %v3630_v56 = vld [vmem:[#allocation6 + $0x1b8] sm:$0xff] }
 0x16e   : > { %v594_v62 = vpop.f32.mrf.mxu0  ;;  %6073 = vmatpush3.msra.mxu1 %v1959_v53 }
 0x16f   : > { %v595_v0 = vadd.f32 %v7517_v39, %v594_v62  ;;  %5850 = vmatprep.mubr.f32.mxu1 %v839_v61  ;;  %6074 = vmatprep.subr.mxu1 %v1958_v58  ;;  %v842_v3 = vmax.f32 %v600_v60, 0.0  ;;  %v7606_v62 = vld [vmem:[%s7204_s28 + $0x20] sm:$0xff] }
 0x170   : > { %v5730_v5 = vpop.f32.mrf.mxu0  ;;  %5851 = vmatmul.mubr.f32.gmra.mxu1 %v840_v63  ;;  %6033 = vmatmul.mubr.f32.gmra.mxu0 %v7437_v6  ;;  %v7602_v63 = vld [vmem:[%s7204_s28 + $0x18] sm:$0xff] }
 0x171   : > { %v841_v1 = vmax.f32 %v595_v0, 0.0  ;;  %6035 = vmatprep.mubr.f32.mxu0 %v7440_v8  ;;  %6075 = vmatpush3.msra.mxu1 %v1958_v58  ;;  %v610_v7 = vadd.f32 %v5730_v5, %v7517_v39 }
 0x172   : > { %v604_v9 = vpop.f32.mrf.mxu0  ;;  %6076 = vmatprep.subr.mxu1 %v1957_v2 }
 0x173   : > { %v605_v13 = vadd.f32 %v7517_v39, %v604_v9  ;;  %5853 = vmatprep.mubr.f32.mxu1 %v841_v1  ;;  %6077 = vmatpush3.msra.mxu1 %v1957_v2  ;;  %v844_v8 = vmax.f32 %v610_v7, 0.0  ;;  %v7612_v9 = vld [vmem:[%s7204_s28 + $0x28] sm:$0xff] }
 0x174   : > { %v5733_v15 = vpop.f32.mrf.mxu0  ;;  %5854 = vmatmul.mubr.f32.gmra.mxu1 %v842_v3  ;;  %6036 = vmatmul.mubr.f32.gmra.mxu0 %v8955_v16  ;;  %v3628_v3 = vld [vmem:[#allocation6 + $0x178] sm:$0xff] }
 0x175   : > { %v843_v6 = vmax.f32 %v605_v13, 0.0  ;;  %6038 = vmatprep.mubr.f32.mxu0 %v8956_v24  ;;  %6078 = vmatprep.subr.mxu1 %v1956_v11  ;;  %v620_v28 = vadd.f32 %v5733_v15, %v7517_v39  ;;  %v7616_v13 = vld [vmem:[%s7204_s28 + $0x30] sm:$0xff] }
 0x176   : > { %v614_v32 = vpop.f32.mrf.mxu0  ;;  %6079 = vmatpush3.msra.mxu1 %v1956_v11 }
 0x177   : > { %v615_v34 = vadd.f32 %v7517_v39, %v614_v32  ;;  %5856 = vmatprep.mubr.f32.mxu1 %v843_v6  ;;  %6080 = vmatprep.subr.mxu1 %v1955_v20  ;;  %v846_v22 = vmax.f32 %v620_v28, 0.0  ;;  %v3627_v6 = vld [vmem:[#allocation6 + $0x158] sm:$0xff] }
 0x178   : > { %v5736_v38 = vpop.f32.mrf.mxu0  ;;  %5857 = vmatmul.mubr.f32.gmra.mxu1 %v844_v8  ;;  %6039 = vmatmul.mubr.f32.gmra.mxu0 %v7453_v14  ;;  %v7622_v28 = vld [vmem:[%s7204_s28 + $0x38] sm:$0xff] }
 0x179   : > { %v845_v12 = vmax.f32 %v615_v34, 0.0  ;;  %6041 = vmatprep.mubr.f32.mxu0 %v8957_v18  ;;  %6081 = vmatpush3.msra.mxu1 %v1955_v20  ;;  %v630_v26 = vadd.f32 %v5736_v38, %v7517_v39  ;;  %v3626_v32 = vld [vmem:[#allocation6 + $0x138] sm:$0xff]  ;;  %v7626_v38 = vld [vmem:[%s7204_s28 + $0x40] sm:$0xff] }
 0x17a   : > { %v624_v4 = vpop.f32.mrf.mxu0  ;;  %6306 = vmatprep.subr.mxu1 %v7568_v36 }
 0x17b   : > { %v625_v40 = vadd.f32 %v7517_v39, %v624_v4  ;;  %5859 = vmatprep.mubr.f32.mxu1 %v845_v12  ;;  %v848_v14 = vmax.f32 %v630_v26, 0.0  ;;  %v3625_v4 = vld [vmem:[#allocation6 + $0x118] sm:$0xff] }
 0x17c   : > { %v5739_v42 = vpop.f32.mrf.mxu0  ;;  %5860 = vmatmul.mubr.f32.gmra.mxu1 %v846_v22  ;;  %6042 = vmatmul.mubr.f32.gmra.mxu0 %v8958_v17 }
 0x17d   : > { %v847_v19 = vmax.f32 %v625_v40, 0.0  ;;  %6044 = vmatprep.mubr.f32.mxu0 %v8959_v21  ;;  %v640_v23 = vadd.f32 %v5739_v42, %v7517_v39  ;;  %v7632_v42 = vld [vmem:[%s7204_s28 + $0x48] sm:$0xff] }
 0x17e   : > { %v634_v25 = vpop.f32.mrf.mxu0 }
 0x17f   : > { %v635_v44 = vadd.f32 %v7517_v39, %v634_v25  ;;  %5862 = vmatprep.mubr.f32.mxu1 %v847_v19  ;;  %v850_v29 = vmax.f32 %v640_v23, 0.0  ;;  %v7636_v19 = vld [vmem:[%s7204_s28 + $0x50] sm:$0xff]  ;;  %v3624_v25 = vld [vmem:[#allocation6 + $0xf8] sm:$0xff] }
 0x180   : > { %v5742_v46 = vpop.f32.mrf.mxu0  ;;  %5863 = vmatmul.mubr.f32.gmra.mxu1 %v848_v14  ;;  %6045 = vmatmul.mubr.f32.gmra.mxu0 %v7469_v30 }
 0x181   : > { %v849_v27 = vmax.f32 %v635_v44, 0.0  ;;  %6047 = vmatprep.mubr.f32.mxu0 %v7472_v10  ;;  %v650_v31 = vadd.f32 %v5742_v46, %v7517_v39 }
 0x182   : > { %v644_v33 = vpop.f32.mrf.mxu0 }
 0x183   : > { %v645_v35 = vadd.f32 %v7517_v39, %v644_v33  ;;  %5865 = vmatprep.mubr.f32.mxu1 %v849_v27  ;;  %v852_v30 = vmax.f32 %v650_v31, 0.0  ;;  %v7642_v27 = vld [vmem:[%s7204_s28 + $0x58] sm:$0xff]  ;;  %v7646_v33 = vld [vmem:[%s7204_s28 + $0x60] sm:$0xff] }
 0x184   : > { %v5745_v41 = vpop.f32.mrf.mxu0  ;;  %5866 = vmatmul.mubr.f32.gmra.mxu1 %v850_v29  ;;  %6048 = vmatmul.mubr.f32.gmra.mxu0 %v8960_v48  ;;  %v3623_v29 = vld [vmem:[#allocation6 + $0xd8] sm:$0xff] }
 0x185   : > { %v851_v55 = vmax.f32 %v645_v35, 0.0  ;;  %6210 = vmatprep.mubr.f32.mxu0 %v7585_v43  ;;  %v660_v10 = vadd.f32 %v5745_v41, %v7517_v39 }
 0x186   : > { %v654_v45 = vpop.f32.mrf.mxu0 }
 0x187   : > { %v655_v47 = vadd.f32 %v7517_v39, %v654_v45  ;;  %5868 = vmatprep.mubr.f32.mxu1 %v851_v55  ;;  %v854_v52 = vmax.f32 %v660_v10, 0.0  ;;  %v7652_v45 = vld [vmem:[%s7204_s28 + $0x68] sm:$0xff] }
 0x188   : > { %v5748_v50 = vpop.f32.mrf.mxu0  ;;  %5869 = vmatmul.mubr.f32.gmra.mxu1 %v852_v30  ;;  %6211 = vmatmul.mubr.f32.vlgmr.msra.gmra.mxu0 %v7591_v57  ;;  %v3622_v30 = vld [vmem:[#allocation6 + $0xb8] sm:$0xff] }
 0x189   : > { %v853_v59 = vmax.f32 %v655_v47, 0.0  ;;  %6435 = vmatpush3.msra.mxu0 %v7498_v37  ;;  %6213 = vmatprep.mubr.f32.mxu0 %v7596_v51  ;;  %v670_v53 = vadd.f32 %v5748_v50, %v7517_v39  ;;  %v3629_v37 = vld [vmem:[#allocation6 + $0x198] sm:$0xff] }
 0x18a   : > { %v664_v54 = vpop.f32.mrf.mxu0  ;;  %6436 = vmatprep.subr.mxu0 %v3631_v49 }
 0x18b   : > { %v665_v58 = vadd.f32 %v7517_v39, %v664_v54  ;;  %5871 = vmatprep.mubr.f32.mxu1 %v853_v59  ;;  %6437 = vmatpush3.msra.mxu0 %v3631_v49  ;;  %v856_v0 = vmax.f32 %v670_v53, 0.0  ;;  %v7656_v49 = vld [vmem:[%s7204_s28 + $0x70] sm:$0xff]  ;;  %v3621_v53 = vld [vmem:[#allocation6 + $0x98] sm:$0xff] }
 0x18c   : > { %v5751_v61 = vpop.f32.mrf.mxu0  ;;  %5872 = vmatmul.mubr.f32.gmra.mxu1 %v854_v52  ;;  %6214 = vmatmul.mubr.f32.gmra.mxu0 %v7602_v63 }
 0x18d   : > { %v855_v60 = vmax.f32 %v665_v58, 0.0  ;;  %6216 = vmatprep.mubr.f32.mxu0 %v7606_v62  ;;  %6438 = vmatprep.subr.mxu0 %v3630_v56  ;;  %v680_v2 = vadd.f32 %v5751_v61, %v7517_v39  ;;  %v7662_v58 = vld [vmem:[%s7204_s28 + $0x78] sm:$0xff] }
 0x18e   : > { %v674_v5 = vpop.f32.mrf.mxu0  ;;  %6439 = vmatpush3.msra.mxu0 %v3630_v56  ;;  %v3620_v61 = vld [vmem:[#allocation6 + $0x78] sm:$0xff] }
 0x18f   : > { %v675_v1 = vadd.f32 %v7517_v39, %v674_v5  ;;  %5874 = vmatprep.mubr.f32.mxu1 %v855_v60  ;;  %6440 = vmatprep.subr.mxu0 %v3629_v37  ;;  %v858_v15 = vmax.f32 %v680_v2, 0.0  ;;  %v7666_v60 = vld [vmem:[%s7204_s28 + $0x80] sm:$0xff] }
 0x190   : > { %v5754_v7 = vpop.f32.mrf.mxu0  ;;  %5875 = vmatmul.mubr.f32.gmra.mxu1 %v856_v0  ;;  %6217 = vmatmul.mubr.f32.gmra.mxu0 %v7612_v9 }
 0x191   : > { %v857_v11 = vmax.f32 %v675_v1, 0.0  ;;  %6219 = vmatprep.mubr.f32.mxu0 %v7616_v13  ;;  %6441 = vmatpush3.msra.mxu0 %v3629_v37  ;;  %v690_v16 = vadd.f32 %v5754_v7, %v7517_v39 }
 0x192   : > { %v684_v20 = vpop.f32.mrf.mxu0  ;;  %6442 = vmatprep.subr.mxu0 %v3628_v3 }
 0x193   : > { %v685_v24 = vadd.f32 %v7517_v39, %v684_v20  ;;  %5877 = vmatprep.mubr.f32.mxu1 %v857_v11  ;;  %6443 = vmatpush3.msra.mxu0 %v3628_v3  ;;  %v860_v12 = vmax.f32 %v690_v16, 0.0  ;;  %v3619_v3 = vld [vmem:[#allocation6 + $0x58] sm:$0xff]  ;;  %v7672_v11 = vld [vmem:[%s7204_s28 + $0x88] sm:$0xff]  ;;  %v7676_v16 = vld [vmem:[%s7204_s28 + $0x90] sm:$0xff] }
 0x194   : > { %v5757_v8 = vpop.f32.mrf.mxu0  ;;  %5878 = vmatmul.mubr.f32.gmra.mxu1 %v858_v15  ;;  %6220 = vmatmul.mubr.f32.gmra.mxu0 %v7622_v28 }
 0x195   : > { %v859_v34 = vmax.f32 %v685_v24, 0.0  ;;  %6222 = vmatprep.mubr.f32.mxu0 %v7626_v38  ;;  %6444 = vmatprep.subr.mxu0 %v3627_v6  ;;  %v700_v18 = vadd.f32 %v5757_v8, %v7517_v39  ;;  %v3618_v8 = vld [vmem:[#allocation6 + $0x38] sm:$0xff] }
 0x196   : > { %v694_v22 = vpop.f32.mrf.mxu0  ;;  %6445 = vmatpush3.msra.mxu0 %v3627_v6 }
 0x197   : > { %v695_v26 = vadd.f32 %v7517_v39, %v694_v22  ;;  %5880 = vmatprep.mubr.f32.mxu1 %v859_v34  ;;  %6446 = vmatprep.subr.mxu0 %v3626_v32  ;;  %v862_v21 = vmax.f32 %v700_v18, 0.0  ;;  %v3617_v18 = vld [vmem:[#allocation6 + $0x18] sm:$0xff] }
 0x198   : > { %v5760_v40 = vpop.f32.mrf.mxu0  ;;  %5881 = vmatmul.mubr.f32.gmra.mxu1 %v860_v12  ;;  %6223 = vmatmul.mubr.f32.gmra.mxu0 %v7632_v42  ;;  %v7682_v12 = vld [vmem:[%s7204_s28 + $0x98] sm:$0xff] }
 0x199   : > { %v861_v17 = vmax.f32 %v695_v26, 0.0  ;;  %6225 = vmatprep.mubr.f32.mxu0 %v7636_v19  ;;  %6447 = vmatpush3.msra.mxu0 %v3626_v32  ;;  %v710_v14 = vadd.f32 %v5760_v40, %v7517_v39  ;;  %v7686_v26 = vld [vmem:[%s7204_s28 + $0xa0] sm:$0xff] }
 0x19a   : > { %v704_v23 = vpop.f32.mrf.mxu0  ;;  %6448 = vmatprep.subr.mxu0 %v3625_v4 }
 0x19b   : > { %v705_v44 = vadd.f32 %v7517_v39, %v704_v23  ;;  %5883 = vmatprep.mubr.f32.mxu1 %v861_v17  ;;  %6449 = vmatpush3.msra.mxu0 %v3625_v4  ;;  %v864_v35 = vmax.f32 %v710_v14, 0.0  ;;  %v7692_v23 = vld [vmem:[%s7204_s28 + $0xa8] sm:$0xff] }
 0x19c   : > { %v5763_v46 = vpop.f32.mrf.mxu0  ;;  %5884 = vmatmul.mubr.f32.gmra.mxu1 %v862_v21  ;;  %6226 = vmatmul.mubr.f32.gmra.mxu0 %v7642_v27 }
 0x19d   : > { %v863_v31 = vmax.f32 %v705_v44, 0.0  ;;  %6228 = vmatprep.mubr.f32.mxu0 %v7646_v33  ;;  %6450 = vmatprep.subr.mxu0 %v3624_v25  ;;  %v720_v41 = vadd.f32 %v5763_v46, %v7517_v39  ;;  %v7696_v44 = vld [vmem:[%s7204_s28 + $0xb0] sm:$0xff] }
 0x19e   : > { %v714_v48 = vpop.f32.mrf.mxu0  ;;  %6451 = vmatpush3.msra.mxu0 %v3624_v25 }
 0x19f   : > { %v715_v55 = vadd.f32 %v7517_v39, %v714_v48  ;;  %5886 = vmatprep.mubr.f32.mxu1 %v863_v31  ;;  %6452 = vmatprep.subr.mxu0 %v3623_v29  ;;  %v866_v50 = vmax.f32 %v720_v41, 0.0  ;;  %v7702_v48 = vld [vmem:[%s7204_s28 + $0xb8] sm:$0xff] }
 0x1a0   : > { %v5766_v10 = vpop.f32.mrf.mxu0  ;;  %5887 = vmatmul.mubr.f32.gmra.mxu1 %v864_v35  ;;  %6229 = vmatmul.mubr.f32.gmra.mxu0 %v7652_v45 }
 0x1a1   : > { %v865_v47 = vmax.f32 %v715_v55, 0.0  ;;  %6231 = vmatprep.mubr.f32.mxu0 %v7656_v49  ;;  %6453 = vmatpush3.msra.mxu0 %v3623_v29  ;;  %v730_v59 = vadd.f32 %v5766_v10, %v7517_v39 }
 0x1a2   : > { %v724_v52 = vpop.f32.mrf.mxu0  ;;  %6454 = vmatprep.subr.mxu0 %v3622_v30 }
 0x1a3   : > { %v725_v54 = vadd.f32 %v7517_v39, %v724_v52  ;;  %5889 = vmatprep.mubr.f32.mxu1 %v865_v47  ;;  %6455 = vmatpush3.msra.mxu0 %v3622_v30  ;;  %v868_v0 = vmax.f32 %v730_v59, 0.0  ;;  %v7706_v30 = vld [vmem:[%s7204_s28 + $0xc0] sm:$0xff] }
 0x1a4   : > { %v5769_v56 = vpop.f32.mrf.mxu0  ;;  %5890 = vmatmul.mubr.f32.gmra.mxu1 %v866_v50  ;;  %6232 = vmatmul.mubr.f32.gmra.mxu0 %v7662_v58 }
 0x1a5   : > { %v867_v37 = vmax.f32 %v725_v54, 0.0  ;;  %6234 = vmatprep.mubr.f32.mxu0 %v7666_v60  ;;  %6456 = vmatprep.subr.mxu0 %v3621_v53  ;;  %v740_v2 = vadd.f32 %v5769_v56, %v7517_v39  ;;  %v7716_v56 = vld [vmem:[%s7204_s28 + $0xd0] sm:$0xff] }
 0x1a6   : > { %v734_v5 = vpop.f32.mrf.mxu0  ;;  %6457 = vmatpush3.msra.mxu0 %v3621_v53  ;;  %v7712_v53 = vld [vmem:[%s7204_s28 + $0xc8] sm:$0xff] }
 0x1a7   : > { %v735_v1 = vadd.f32 %v7517_v39, %v734_v5  ;;  %5892 = vmatprep.mubr.f32.mxu1 %v867_v37  ;;  %6458 = vmatprep.subr.mxu0 %v3620_v61  ;;  %v870_v20 = vmax.f32 %v740_v2, 0.0 }
 0x1a8   : > { %v5772_v7 = vpop.f32.mrf.mxu0  ;;  %5893 = vmatmul.mubr.f32.gmra.mxu1 %v868_v0  ;;  %6235 = vmatmul.mubr.f32.gmra.mxu0 %v7672_v11 }
 0x1a9   : > { %v869_v15 = vmax.f32 %v735_v1, 0.0  ;;  %6237 = vmatprep.mubr.f32.mxu0 %v7676_v16  ;;  %6459 = vmatpush3.msra.mxu0 %v3620_v61  ;;  %v750_v6 = vadd.f32 %v5772_v7, %v7517_v39  ;;  %v7722_v1 = vld [vmem:[%s7204_s28 + $0xd8] sm:$0xff]  ;;  %v7726_v7 = vld [vmem:[%s7204_s28 + $0xe0] sm:$0xff] }
 0x1aa   : > { %v744_v24 = vpop.f32.mrf.mxu0  ;;  %6460 = vmatprep.subr.mxu0 %v3619_v3 }
 0x1ab   : > { %v745_v32 = vadd.f32 %v7517_v39, %v744_v24  ;;  %5895 = vmatprep.mubr.f32.mxu1 %v869_v15  ;;  %6461 = vmatpush3.msra.mxu0 %v3619_v3  ;;  %v872_v4 = vmax.f32 %v750_v6, 0.0 }
 0x1ac   : > { %v5775_v34 = vpop.f32.mrf.mxu0  ;;  %5896 = vmatmul.mubr.f32.gmra.mxu1 %v870_v20  ;;  %6238 = vmatmul.mubr.f32.gmra.mxu0 %v7682_v12 }
 0x1ad   : > { %v871_v22 = vmax.f32 %v745_v32, 0.0  ;;  %6240 = vmatprep.mubr.f32.mxu0 %v7686_v26  ;;  %6462 = vmatprep.subr.mxu0 %v3618_v8  ;;  %v760_v40 = vadd.f32 %v5775_v34, %v7517_v39  ;;  %v7732_v32 = vld [vmem:[%s7204_s28 + $0xe8] sm:$0xff] }
 0x1ae   : > { %v754_v17 = vpop.f32.mrf.mxu0  ;;  %6463 = vmatpush3.msra.mxu0 %v3618_v8 }
 0x1af   : > { %v755_v21 = vadd.f32 %v7517_v39, %v754_v17  ;;  %5898 = vmatprep.mubr.f32.mxu1 %v871_v22  ;;  %6464 = vmatprep.subr.mxu0 %v3617_v18  ;;  %v874_v46 = vmax.f32 %v760_v40, 0.0 }
 0x1b0   : > { %v5778_v14 = vpop.f32.mrf.mxu0  ;;  %5899 = vmatmul.mubr.f32.gmra.mxu1 %v872_v4  ;;  %6241 = vmatmul.mubr.f32.gmra.mxu0 %v7692_v23 }
 0x1b1   : > { %v873_v25 = vmax.f32 %v755_v21, 0.0  ;;  %6243 = vmatprep.mubr.f32.mxu0 %v7696_v44  ;;  %6465 = vmatpush3.msra.mxu0 %v3617_v18  ;;  %v770_v29 = vadd.f32 %v5778_v14, %v7517_v39  ;;  %v7736_v18 = vld [vmem:[%s7204_s28 + $0xf0] sm:$0xff]  ;;  %v7742_v14 = vld [vmem:[%s7204_s28 + $0xf8] sm:$0xff] }
 0x1b2   : > { %v764_v31 = vpop.f32.mrf.mxu0 }
 0x1b3   : > { %v765_v35 = vadd.f32 %v7517_v39, %v764_v31  ;;  %5901 = vmatprep.mubr.f32.mxu1 %v873_v25  ;;  %v876_v10 = vmax.f32 %v770_v29, 0.0 }
 0x1b4   : > { %v5781_v41 = vpop.f32.mrf.mxu0  ;;  %5902 = vmatmul.mubr.f32.gmra.mxu1 %v874_v46  ;;  %6244 = vmatmul.mubr.f32.gmra.mxu0 %v7702_v48  ;;  %v7746_v46 = vld [vmem:[%s7204_s28 + $0x100] sm:$0xff] }
 0x1b5   : > { %v875_v55 = vmax.f32 %v765_v35, 0.0  ;;  %6246 = vmatprep.mubr.f32.mxu0 %v7706_v30  ;;  %v780_v47 = vadd.f32 %v5781_v41, %v7517_v39 }
 0x1b6   : > { %v774_v50 = vpop.f32.mrf.mxu0 }
 0x1b7   : > { %v775_v59 = vadd.f32 %v7517_v39, %v774_v50  ;;  %5904 = vmatprep.mubr.f32.mxu1 %v875_v55  ;;  %v878_v61 = vmax.f32 %v780_v47, 0.0  ;;  %v7751_v55 = vld [vmem:[#allocation8 + $0x1] ss:$0 sm:$0xff]  ;;  %v7754_v47 = vld [vmem:[%s7204_s28 + $0x108] sm:$0xff] }
 0x1b8   : > { %v5784_v52 = vpop.f32.mrf.mxu0  ;;  %5905 = vmatmul.mubr.f32.gmra.mxu1 %v876_v10  ;;  %6247 = vmatmul.mubr.f32.gmra.mxu0 %v7712_v53 }
 0x1b9   : > { %v877_v54 = vmax.f32 %v775_v59, 0.0  ;;  %6249 = vmatprep.mubr.f32.mxu0 %v7716_v56  ;;  %v790_v37 = vadd.f32 %v5784_v52, %v7517_v39  ;;  %v7758_v59 = vld [vmem:[%s7204_s28 + $0x110] sm:$0xff] }
 0x1ba   : > { %v784_v0 = vpop.f32.mrf.mxu0 }
 0x1bb   : > { %v785_v2 = vadd.f32 %v7517_v39, %v784_v0  ;;  %5907 = vmatprep.mubr.f32.mxu1 %v877_v54  ;;  %v880_v15 = vmax.f32 %v790_v37, 0.0  ;;  %v7764_v0 = vld [vmem:[%s7204_s28 + $0x118] sm:$0xff] }
 0x1bc   : > { %v5787_v5 = vpop.f32.mrf.mxu0  ;;  %5908 = vmatmul.mubr.f32.gmra.mxu1 %v878_v61  ;;  %6250 = vmatmul.mubr.f32.gmra.mxu0 %v7722_v1 }
 0x1bd   : > { %v879_v3 = vmax.f32 %v785_v2, 0.0  ;;  %6252 = vmatprep.mubr.f32.mxu0 %v7726_v7  ;;  %v800_v20 = vadd.f32 %v5787_v5, %v7517_v39  ;;  %v7768_v5 = vld [vmem:[%s7204_s28 + $0x120] sm:$0xff] }
 0x1be   : > { %v794_v6 = vpop.f32.mrf.mxu0 }
 0x1bf   : > { %v795_v24 = vadd.f32 %v7517_v39, %v794_v6  ;;  %5910 = vmatprep.mubr.f32.mxu1 %v879_v3  ;;  %v882_v22 = vmax.f32 %v800_v20, 0.0 }
 0x1c0   : > { %v5790_v8 = vpop.f32.mrf.mxu0  ;;  %5911 = vmatmul.mubr.f32.gmra.mxu1 %v880_v15  ;;  %6253 = vmatmul.mubr.f32.gmra.mxu0 %v7732_v32 }
 0x1c1   : > { %v881_v34 = vmax.f32 %v795_v24, 0.0  ;;  %6255 = vmatprep.mubr.f32.mxu0 %v7736_v18  ;;  %v810_v4 = vadd.f32 %v5790_v8, %v7517_v39  ;;  %v3037_v24 = vld [vmem:[#allocation9 + $0x170] sm:$0xff] }
 0x1c2   : > { %v804_v40 = vpop.f32.mrf.mxu0 }
 0x1c3   : > { %v805_v17 = vadd.f32 %v7517_v39, %v804_v40  ;;  %5913 = vmatprep.mubr.f32.mxu1 %v881_v34  ;;  %v884_v29 = vmax.f32 %v810_v4, 0.0  ;;  %v7774_v34 = vld [vmem:[%s7204_s28 + $0x128] sm:$0xff]  ;;  %v7779_v4 = vld [vmem:[%s7204_s28 + $0x130] sm:$0xff] }
 0x1c4   : > { %v5793_v21 = vpop.f32.mrf.mxu0  ;;  %5914 = vmatmul.mubr.f32.gmra.mxu1 %v882_v22  ;;  %6256 = vmatmul.mubr.f32.gmra.mxu0 %v7742_v14 }
 0x1c5   : > { %v883_v25 = vmax.f32 %v805_v17, 0.0  ;;  %6258 = vmatprep.mubr.f32.mxu0 %v7746_v46  ;;  %v820_v31 = vadd.f32 %v5793_v21, %v7517_v39 }
 0x1c6   : > { %v814_v35 = vpop.f32.mrf.mxu0 }
 0x1c7   : > { %v815_v41 = vadd.f32 %v7517_v39, %v814_v35  ;;  %5916 = vmatprep.mubr.f32.mxu1 %v883_v25  ;;  %v886_v52 = vmax.f32 %v820_v31, 0.0  ;;  %v3036_v25 = vld [vmem:[#allocation9 + $0x168] sm:$0xff]  ;;  %v7785_v35 = vld [vmem:[%s7204_s28 + $0x138] sm:$0xff] }
 0x1c8   : > { %5917 = vmatmul.mubr.f32.gmra.mxu1 %v884_v29  ;;  %v5956_v10 = vpop.f32.mrf.mxu0  ;;  %6259 = vmatmul.mubr.f32.gmra.mxu0 %v7754_v47 }
 0x1c9   : > { %v885_v50 = vmax.f32 %v815_v41, 0.0  ;;  %6261 = vmatprep.mubr.f32.mxu0 %v7758_v59  ;;  %v1577_v54 = vadd.f32 %v5956_v10, %v7751_v55  ;;  %v7789_v10 = vld [vmem:[%s7204_s28 + $0x140] sm:$0xff] }
 0x1ca   : > { %v1571_v39 = vpop.f32.mrf.mxu0 }
 0x1cb   : > { %v1572_v61 = vadd.f32 %v7751_v55, %v1571_v39  ;;  %5919 = vmatprep.mubr.f32.mxu1 %v885_v50  ;;  %v1891_v3 = vmax.f32 %v1577_v54, 0.0 }
 0x1cc   : > { %5920 = vmatmul.mubr.f32.gmra.mxu1 %v886_v52  ;;  %v5959_v37 = vpop.f32.mrf.mxu0  ;;  %6262 = vmatmul.mubr.f32.gmra.mxu0 %v7764_v0 }
 0x1cd   : > { %v1890_v2 = vmax.f32 %v1572_v61, 0.0  ;;  %6264 = vmatprep.mubr.f32.mxu0 %v7768_v5  ;;  %v1587_v15 = vadd.f32 %v5959_v37, %v7751_v55  ;;  %v3034_v61 = vld [vmem:[#allocation9 + $0x158] sm:$0xff] }
 0x1ce   : > { %v1581_v20 = vpop.f32.mrf.mxu0 }
 0x1cf   : > { %v1582_v6 = vadd.f32 %v7751_v55, %v1581_v20  ;;  %6082 = vmatprep.mubr.f32.mxu1 %v1890_v2  ;;  %v1893_v40 = vmax.f32 %v1587_v15, 0.0  ;;  %v7795_v2 = vld [vmem:[%s7204_s28 + $0x148] sm:$0xff]  ;;  %v7799_v15 = vld [vmem:[%s7204_s28 + $0x150] sm:$0xff] }
 0x1d0   : > { %v5962_v8 = vpop.f32.mrf.mxu0  ;;  %6083 = vmatmul.mubr.f32.vlgmr.msra.gmra.mxu1 %v1891_v3  ;;  %6265 = vmatmul.mubr.f32.gmra.mxu0 %v7774_v34 }
 0x1d1   : > { %v1892_v22 = vmax.f32 %v1582_v6, 0.0  ;;  %6307 = vmatpush3.msra.mxu1 %v7568_v36  ;;  %6267 = vmatprep.mubr.f32.mxu0 %v7779_v4  ;;  %v1597_v17 = vadd.f32 %v5962_v8, %v7751_v55  ;;  %v3035_v36 = vld [vmem:[#allocation9 + $0x160] sm:$0xff]  ;;  %v3033_v8 = vld [vmem:[#allocation9 + $0x150] sm:$0xff] }
 0x1d2   : > { %v1591_v21 = vpop.f32.mrf.mxu0  ;;  %6308 = vmatprep.subr.mxu1 %v3037_v24 }
 0x1d3   : > { %v1592_v29 = vadd.f32 %v7751_v55, %v1591_v21  ;;  %6085 = vmatprep.mubr.f32.mxu1 %v1892_v22  ;;  %6309 = vmatpush3.msra.mxu1 %v3037_v24  ;;  %v1895_v50 = vmax.f32 %v1597_v17, 0.0  ;;  %v7805_v17 = vld [vmem:[%s7204_s28 + $0x158] sm:$0xff]  ;;  %v3032_v21 = vld [vmem:[#allocation9 + $0x148] sm:$0xff] }
 0x1d4   : > { %v5965_v31 = vpop.f32.mrf.mxu0  ;;  %6086 = vmatmul.mubr.f32.gmra.mxu1 %v1893_v40  ;;  %6268 = vmatmul.mubr.f32.gmra.mxu0 %v7785_v35 }
 0x1d5   : > { %v1894_v41 = vmax.f32 %v1592_v29, 0.0  ;;  %6270 = vmatprep.mubr.f32.mxu0 %v7789_v10  ;;  %6310 = vmatprep.subr.mxu1 %v3036_v25  ;;  %v1607_v52 = vadd.f32 %v5965_v31, %v7751_v55  ;;  %v7809_v29 = vld [vmem:[%s7204_s28 + $0x160] sm:$0xff] }
 0x1d6   : > { %v1601_v54 = vpop.f32.mrf.mxu0  ;;  %6311 = vmatpush3.msra.mxu1 %v3036_v25 }
 0x1d7   : > { %v1602_v39 = vadd.f32 %v7751_v55, %v1601_v54  ;;  %6088 = vmatprep.mubr.f32.mxu1 %v1894_v41  ;;  %6312 = vmatprep.subr.mxu1 %v3035_v36  ;;  %v1897_v20 = vmax.f32 %v1607_v52, 0.0  ;;  %v3031_v52 = vld [vmem:[#allocation9 + $0x140] sm:$0xff] }
 0x1d8   : > { %v5968_v37 = vpop.f32.mrf.mxu0  ;;  %6089 = vmatmul.mubr.f32.gmra.mxu1 %v1895_v50  ;;  %6271 = vmatmul.mubr.f32.gmra.mxu0 %v7795_v2 }
 0x1d9   : > { %v1896_v3 = vmax.f32 %v1602_v39, 0.0  ;;  %6273 = vmatprep.mubr.f32.mxu0 %v7799_v15  ;;  %6313 = vmatpush3.msra.mxu1 %v3035_v36  ;;  %v1617_v6 = vadd.f32 %v5968_v37, %v7751_v55  ;;  %v7815_v39 = vld [vmem:[%s7204_s28 + $0x168] sm:$0xff]  ;;  %v7819_v37 = vld [vmem:[%s7204_s28 + $0x170] sm:$0xff] }
 0x1da   : > { %v1611_v24 = vpop.f32.mrf.mxu0  ;;  %6314 = vmatprep.subr.mxu1 %v3034_v61 }
 0x1db   : > { %v1612_v22 = vadd.f32 %v7751_v55, %v1611_v24  ;;  %6091 = vmatprep.mubr.f32.mxu1 %v1896_v3  ;;  %6315 = vmatpush3.msra.mxu1 %v3034_v61  ;;  %v1899_v31 = vmax.f32 %v1617_v6, 0.0  ;;  %v3030_v24 = vld [vmem:[#allocation9 + $0x138] sm:$0xff] }
 0x1dc   : > { %v5971_v40 = vpop.f32.mrf.mxu0  ;;  %6092 = vmatmul.mubr.f32.gmra.mxu1 %v1897_v20  ;;  %6274 = vmatmul.mubr.f32.gmra.mxu0 %v7805_v17 }
 0x1dd   : > { %v1898_v25 = vmax.f32 %v1612_v22, 0.0  ;;  %6276 = vmatprep.mubr.f32.mxu0 %v7809_v29  ;;  %6316 = vmatprep.subr.mxu1 %v3033_v8  ;;  %v1627_v36 = vadd.f32 %v5971_v40, %v7751_v55  ;;  %v7825_v40 = vld [vmem:[%s7204_s28 + $0x178] sm:$0xff] }
 0x1de   : > { %v1621_v41 = vpop.f32.mrf.mxu0  ;;  %6317 = vmatpush3.msra.mxu1 %v3033_v8 }
 0x1df   : > { %v1622_v50 = vadd.f32 %v7751_v55, %v1621_v41  ;;  %6094 = vmatprep.mubr.f32.mxu1 %v1898_v25  ;;  %6318 = vmatprep.subr.mxu1 %v3032_v21  ;;  %v1901_v3 = vmax.f32 %v1627_v36, 0.0  ;;  %v3029_v25 = vld [vmem:[#allocation9 + $0x130] sm:$0xff] }
 0x1e0   : > { %v5974_v54 = vpop.f32.mrf.mxu0  ;;  %6095 = vmatmul.mubr.f32.gmra.mxu1 %v1899_v31  ;;  %6277 = vmatmul.mubr.f32.gmra.mxu0 %v7815_v39 }
 0x1e1   : > { %v1900_v61 = vmax.f32 %v1622_v50, 0.0  ;;  %6279 = vmatprep.mubr.f32.mxu0 %v7819_v37  ;;  %6319 = vmatpush3.msra.mxu1 %v3032_v21  ;;  %v1637_v20 = vadd.f32 %v5974_v54, %v7751_v55  ;;  %v7829_v21 = vld [vmem:[%s7204_s28 + $0x180] sm:$0xff]  ;;  %v3028_v54 = vld [vmem:[#allocation9 + $0x128] sm:$0xff] }
 0x1e2   : > { %v1631_v6 = vpop.f32.mrf.mxu0  ;;  %6320 = vmatprep.subr.mxu1 %v3031_v52 }
 0x1e3   : > { %v1632_v8 = vadd.f32 %v7751_v55, %v1631_v6  ;;  %6097 = vmatprep.mubr.f32.mxu1 %v1900_v61  ;;  %6321 = vmatpush3.msra.mxu1 %v3031_v52  ;;  %v1903_v36 = vmax.f32 %v1637_v20, 0.0 }
 0x1e4   : > { %v5977_v22 = vpop.f32.mrf.mxu0  ;;  %6098 = vmatmul.mubr.f32.gmra.mxu1 %v1901_v3  ;;  %6280 = vmatmul.mubr.f32.gmra.mxu0 %v7825_v40  ;;  %v7835_v3 = vld [vmem:[%s7204_s28 + $0x188] sm:$0xff] }
 0x1e5   : > { %v1902_v31 = vmax.f32 %v1632_v8, 0.0  ;;  %6282 = vmatprep.mubr.f32.mxu0 %v7829_v21  ;;  %6322 = vmatprep.subr.mxu1 %v3030_v24  ;;  %v1647_v41 = vadd.f32 %v5977_v22, %v7751_v55  ;;  %8961 = vst [vmem:[#allocation16_spill] sm:$0xff] %v7835_v3  ;;  %v7839_v8 = vld [vmem:[%s7204_s28 + $0x190] sm:$0xff] }
 0x1e6   : > { %v1641_v50 = vpop.f32.mrf.mxu0  ;;  %6323 = vmatpush3.msra.mxu1 %v3030_v24  ;;  %8962 = vst [vmem:[#allocation17_spill] sm:$0xff] %v7839_v8 }
 0x1e7   : > { %v1642_v52 = vadd.f32 %v7751_v55, %v1641_v50  ;;  %6100 = vmatprep.mubr.f32.mxu1 %v1902_v31  ;;  %6324 = vmatprep.subr.mxu1 %v3029_v25  ;;  %v1905_v20 = vmax.f32 %v1647_v41, 0.0  ;;  %v3027_v31 = vld [vmem:[#allocation9 + $0x120] sm:$0xff] }
 0x1e8   : > { %v5980_v61 = vpop.f32.mrf.mxu0  ;;  %6101 = vmatmul.mubr.f32.gmra.mxu1 %v1903_v36  ;;  %6283 = vmatmul.mubr.f32.gmra.mxu0 %v7835_v3  ;;  %v7845_v3 = vld [vmem:[%s7204_s28 + $0x198] sm:$0xff] }
 0x1e9   : > { %v1904_v6 = vmax.f32 %v1642_v52, 0.0  ;;  %6285 = vmatprep.mubr.f32.mxu0 %v7839_v8  ;;  %6325 = vmatpush3.msra.mxu1 %v3029_v25  ;;  %v1657_v24 = vadd.f32 %v5980_v61, %v7751_v55  ;;  %8963 = vst [vmem:[#allocation18_spill] sm:$0xff] %v7845_v3  ;;  %v3026_v52 = vld [vmem:[#allocation9 + $0x118] sm:$0xff] }
 0x1ea   : > { %v1651_v22 = vpop.f32.mrf.mxu0  ;;  %6326 = vmatprep.subr.mxu1 %v3028_v54  ;;  %v7849_v25 = vld [vmem:[%s7204_s28 + $0x1a0] sm:$0xff] }
 0x1eb   : > { %v1652_v36 = vadd.f32 %v7751_v55, %v1651_v22  ;;  %6103 = vmatprep.mubr.f32.mxu1 %v1904_v6  ;;  %6327 = vmatpush3.msra.mxu1 %v3028_v54  ;;  %8964 = vst [vmem:[#allocation19_spill] sm:$0xff] %v7849_v25  ;;  %v1907_v41 = vmax.f32 %v1657_v24, 0.0 }
 0x1ec   : > { %v5983_v50 = vpop.f32.mrf.mxu0  ;;  %6104 = vmatmul.mubr.f32.gmra.mxu1 %v1905_v20  ;;  %6286 = vmatmul.mubr.f32.gmra.mxu0 %v7845_v3  ;;  %v3025_v20 = vld [vmem:[#allocation9 + $0x110] sm:$0xff]  ;;  %v7855_v3 = vld [vmem:[%s7204_s28 + $0x1a8] sm:$0xff] }
 0x1ed   : > { %v1906_v8 = vmax.f32 %v1652_v36, 0.0  ;;  %6288 = vmatprep.mubr.f32.mxu0 %v7849_v25  ;;  %6328 = vmatprep.subr.mxu1 %v3027_v31  ;;  %v1667_v61 = vadd.f32 %v5983_v50, %v7751_v55  ;;  %8965 = vst [vmem:[#allocation20_spill] sm:$0xff] %v7855_v3  ;;  %v7859_v25 = vld [vmem:[%s7204_s28 + $0x1b0] sm:$0xff] }
 0x1ee   : > { %v1661_v6 = vpop.f32.mrf.mxu0  ;;  %6329 = vmatpush3.msra.mxu1 %v3027_v31  ;;  %8966 = vst [vmem:[#allocation21_spill] sm:$0xff] %v7859_v25  ;;  %v3024_v50 = vld [vmem:[#allocation9 + $0x108] sm:$0xff] }
 0x1ef   : > { %v1662_v54 = vadd.f32 %v7751_v55, %v1661_v6  ;;  %6106 = vmatprep.mubr.f32.mxu1 %v1906_v8  ;;  %6330 = vmatprep.subr.mxu1 %v3026_v52  ;;  %v1909_v24 = vmax.f32 %v1667_v61, 0.0 }
 0x1f0   : > { %v5986_v22 = vpop.f32.mrf.mxu0  ;;  %6107 = vmatmul.mubr.f32.gmra.mxu1 %v1907_v41  ;;  %6289 = vmatmul.mubr.f32.gmra.mxu0 %v7855_v3  ;;  %v7865_v3 = vld [vmem:[%s7204_s28 + $0x1b8] sm:$0xff] }
 0x1f1   : > { %v1908_v36 = vmax.f32 %v1662_v54, 0.0  ;;  %6291 = vmatprep.mubr.f32.mxu0 %v7859_v25  ;;  %6331 = vmatpush3.msra.mxu1 %v3026_v52  ;;  %v1677_v31 = vadd.f32 %v5986_v22, %v7751_v55  ;;  %8967 = vst [vmem:[#allocation22_spill] sm:$0xff] %v7865_v3  ;;  %v3023_v54 = vld [vmem:[#allocation9 + $0x100] sm:$0xff] }
 0x1f2   : > { %v1671_v8 = vpop.f32.mrf.mxu0  ;;  %6332 = vmatprep.subr.mxu1 %v3025_v20  ;;  %v7869_v52 = vld [vmem:[%s7204_s28 + $0x1c0] sm:$0xff] }
 0x1f3   : > { %v1672_v41 = vadd.f32 %v7751_v55, %v1671_v8  ;;  %6109 = vmatprep.mubr.f32.mxu1 %v1908_v36  ;;  %6333 = vmatpush3.msra.mxu1 %v3025_v20  ;;  %8968 = vst [vmem:[#allocation23_spill] sm:$0xff] %v7869_v52  ;;  %v1911_v61 = vmax.f32 %v1677_v31, 0.0  ;;  %v7881_v31 = vld [vmem:[%s7204_s28 + $0x1d0] sm:$0xff] }
 0x1f4   : > { %v5989_v6 = vpop.f32.mrf.mxu0  ;;  %6110 = vmatmul.mubr.f32.gmra.mxu1 %v1909_v24  ;;  %6292 = vmatmul.mubr.f32.gmra.mxu0 %v7865_v3  ;;  %v7874_v24 = vld [vmem:[#allocation9 + $0x1f8] sm:$0xff]  ;;  %8970 = vst [vmem:[#allocation25_spill] sm:$0xff] %v7881_v31 }
 0x1f5   : > { %v1910_v25 = vmax.f32 %v1672_v41, 0.0  ;;  %6294 = vmatprep.mubr.f32.mxu0 %v7869_v52  ;;  %6334 = vmatprep.subr.mxu1 %v3024_v50  ;;  %v1687_v22 = vadd.f32 %v5989_v6, %v7751_v55  ;;  %v7877_v41 = vld [vmem:[%s7204_s28 + $0x1c8] sm:$0xff] }
 0x1f6   : > { %v1681_v36 = vpop.f32.mrf.mxu0  ;;  %6335 = vmatpush3.msra.mxu1 %v3024_v50  ;;  %8969 = vst [vmem:[#allocation24_spill] sm:$0xff] %v7877_v41 }
 0x1f7   : > { %v1682_v20 = vadd.f32 %v7751_v55, %v1681_v36  ;;  %6112 = vmatprep.mubr.f32.mxu1 %v1910_v25  ;;  %6336 = vmatprep.subr.mxu1 %v3023_v54  ;;  %v1913_v50 = vmax.f32 %v1687_v22, 0.0 }
 0x1f8   : > { %v5992_v8 = vpop.f32.mrf.mxu0  ;;  %6113 = vmatmul.mubr.f32.gmra.mxu1 %v1911_v61  ;;  %6295 = vmatmul.mubr.f32.gmra.mxu0 %v7877_v41  ;;  %v7888_v41 = vld [vmem:[%s7204_s28 + $0x1d8] sm:$0xff] }
 0x1f9   : > { %v1912_v52 = vmax.f32 %v1682_v20, 0.0  ;;  %6297 = vmatprep.mubr.f32.mxu0 %v7881_v31  ;;  %6337 = vmatpush3.msra.mxu1 %v3023_v54  ;;  %v1697_v25 = vadd.f32 %v5992_v8, %v7751_v55  ;;  %8971 = vst [vmem:[#allocation26_spill] sm:$0xff] %v7888_v41  ;;  %v7892_v31 = vld [vmem:[%s7204_s28 + $0x1e0] sm:$0xff] }
 0x1fa   : > { %v1691_v6 = vpop.f32.mrf.mxu0  ;;  %6562 = vmatprep.subr.mxu1 %v7874_v24  ;;  %8972 = vst [vmem:[#allocation27_spill] sm:$0xff] %v7892_v31 }
 0x1fb   : > { %v1692_v36 = vadd.f32 %v7751_v55, %v1691_v6  ;;  %6115 = vmatprep.mubr.f32.mxu1 %v1912_v52  ;;  %v1915_v54 = vmax.f32 %v1697_v25, 0.0 }
 0x1fc   : > { %v5995_v61 = vpop.f32.mrf.mxu0  ;;  %6116 = vmatmul.mubr.f32.gmra.mxu1 %v1913_v50  ;;  %6298 = vmatmul.mubr.f32.gmra.mxu0 %v7888_v41  ;;  %v7898_v50 = vld [vmem:[%s7204_s28 + $0x1e8] sm:$0xff] }
 0x1fd   : > { %v1914_v20 = vmax.f32 %v1692_v36, 0.0  ;;  %6300 = vmatprep.mubr.f32.mxu0 %v7892_v31  ;;  %v1707_v22 = vadd.f32 %v5995_v61, %v7751_v55  ;;  %8973 = vst [vmem:[#allocation28_spill] sm:$0xff] %v7898_v50  ;;  %v7902_v36 = vld [vmem:[%s7204_s28 + $0x1f0] sm:$0xff] }
 0x1fe   : > { %v1701_v8 = vpop.f32.mrf.mxu0  ;;  %8974 = vst [vmem:[#allocation29_spill] sm:$0xff] %v7902_v36 }
 0x1ff   : > { %v1702_v6 = vadd.f32 %v7751_v55, %v1701_v8  ;;  %6118 = vmatprep.mubr.f32.mxu1 %v1914_v20  ;;  %v1917_v31 = vmax.f32 %v1707_v22, 0.0  ;;  %v7908_v20 = vld [vmem:[%s7204_s28 + $0x1f8] sm:$0xff] }
 0x200   : > { %v5998_v52 = vpop.f32.mrf.mxu0  ;;  %6119 = vmatmul.mubr.f32.gmra.mxu1 %v1915_v54  ;;  %6301 = vmatmul.mubr.f32.gmra.mxu0 %v7898_v50 }
 0x201   : > { %v1916_v41 = vmax.f32 %v1702_v6, 0.0  ;;  %6303 = vmatprep.mubr.f32.mxu0 %v7902_v36  ;;  %v1717_v25 = vadd.f32 %v5998_v52, %v7751_v55 }
 0x202   : > { %v1711_v61 = vpop.f32.mrf.mxu0 }
 0x203   : > { %v1712_v3 = vadd.f32 %v7751_v55, %v1711_v61  ;;  %6121 = vmatprep.mubr.f32.mxu1 %v1916_v41  ;;  %v1919_v6 = vmax.f32 %v1717_v25, 0.0 }
 0x204   : > { %v6001_v8 = vpop.f32.mrf.mxu0  ;;  %6122 = vmatmul.mubr.f32.gmra.mxu1 %v1917_v31  ;;  %6304 = vmatmul.mubr.f32.gmra.mxu0 %v7908_v20 }
 0x205   : > { %v1918_v54 = vmax.f32 %v1712_v3, 0.0  ;;  %6466 = vmatprep.mubr.f32.mxu0 %v7585_v43  ;;  %v1727_v50 = vadd.f32 %v6001_v8, %v7751_v55 }
 0x206   : > { %v1721_v36 = vpop.f32.mrf.mxu0 }
 0x207   : > { %v1722_v22 = vadd.f32 %v7751_v55, %v1721_v36  ;;  %6124 = vmatprep.mubr.f32.mxu1 %v1918_v54  ;;  %v1921_v31 = vmax.f32 %v1727_v50, 0.0 }
 0x208   : > { %v6004_v52 = vpop.f32.mrf.mxu0  ;;  %6125 = vmatmul.mubr.f32.gmra.mxu1 %v1919_v6  ;;  %6467 = vmatmul.mubr.f32.vlgmr.msra.gmra.mxu0 %v7591_v57 }
 0x209   : > { %v1920_v41 = vmax.f32 %v1722_v22, 0.0  ;;  %6469 = vmatprep.mubr.f32.mxu0 %v7596_v51  ;;  %v1737_v61 = vadd.f32 %v6004_v52, %v7751_v55 }
 0x20a   : > { %v1731_v3 = vpop.f32.mrf.mxu0 }
 0x20b   : > { %v1732_v43 = vadd.f32 %v7751_v55, %v1731_v3  ;;  %6127 = vmatprep.mubr.f32.mxu1 %v1920_v41  ;;  %v1923_v8 = vmax.f32 %v1737_v61, 0.0 }
 0x20c   : > { %v6007_v25 = vpop.f32.mrf.mxu0  ;;  %6128 = vmatmul.mubr.f32.gmra.mxu1 %v1921_v31  ;;  %6470 = vmatmul.mubr.f32.gmra.mxu0 %v7602_v63 }
 0x20d   : > { %v1922_v36 = vmax.f32 %v1732_v43, 0.0  ;;  %6472 = vmatprep.mubr.f32.mxu0 %v7606_v62  ;;  %v1747_v57 = vadd.f32 %v6007_v25, %v7751_v55 }
 0x20e   : > { %v1741_v54 = vpop.f32.mrf.mxu0 }
 0x20f   : > { %v1742_v51 = vadd.f32 %v7751_v55, %v1741_v54  ;;  %6130 = vmatprep.mubr.f32.mxu1 %v1922_v36  ;;  %v1925_v63 = vmax.f32 %v1747_v57, 0.0 }
 0x210   : > { %v7922_v50 = vpop.f32.mrf.mxu1  ;;  %v6010_v6 = vpop.f32.mrf.mxu0  ;;  %6131 = vmatmul.mubr.f32.gmra.mxu1 %v1923_v8  ;;  %6473 = vmatmul.mubr.f32.gmra.mxu0 %v7612_v9 }
 0x211   : > { %v1924_v22 = vmax.f32 %v1742_v51, 0.0  ;;  %6475 = vmatprep.mubr.f32.mxu0 %v7616_v13  ;;  %v1757_v52 = vadd.f32 %v6010_v6, %v7751_v55 }
 0x212   : > { %v7927_v62 = vpop.f32.mrf.mxu1  ;;  %v1751_v41 = vpop.f32.mrf.mxu0 }
 0x213   : > { %v1752_v31 = vadd.f32 %v7751_v55, %v1751_v41  ;;  %6133 = vmatprep.mubr.f32.mxu1 %v1924_v22  ;;  %v1927_v9 = vmax.f32 %v1757_v52, 0.0 }
 0x214   : > { %v7930_v61 = vpop.f32.mrf.mxu1  ;;  %v6013_v3 = vpop.f32.mrf.mxu0  ;;  %6134 = vmatmul.mubr.f32.gmra.mxu1 %v1925_v63  ;;  %6476 = vmatmul.mubr.f32.gmra.mxu0 %v7622_v28 }
 0x215   : > { %v1926_v43 = vmax.f32 %v1752_v31, 0.0  ;;  %6478 = vmatprep.mubr.f32.mxu0 %v7626_v38  ;;  %v1767_v13 = vadd.f32 %v6013_v3, %v7751_v55 }
 0x216   : > { %v7935_v25 = vpop.f32.mrf.mxu1  ;;  %v1761_v36 = vpop.f32.mrf.mxu0 }
 0x217   : > { %v1762_v8 = vadd.f32 %v7751_v55, %v1761_v36  ;;  %6136 = vmatprep.mubr.f32.mxu1 %v1926_v43  ;;  %v1929_v28 = vmax.f32 %v1767_v13, 0.0 }
 0x218   : > { %v7938_v57 = vpop.f32.mrf.mxu1  ;;  %v6016_v54 = vpop.f32.mrf.mxu0  ;;  %6137 = vmatmul.mubr.f32.gmra.mxu1 %v1927_v9  ;;  %6479 = vmatmul.mubr.f32.gmra.mxu0 %v7632_v42 }
 0x219   : > { %v1928_v51 = vmax.f32 %v1762_v8, 0.0  ;;  %6481 = vmatprep.mubr.f32.mxu0 %v7636_v19  ;;  %v1777_v38 = vadd.f32 %v6016_v54, %v7751_v55 }
 0x21a   : > { %v7943_v6 = vpop.f32.mrf.mxu1  ;;  %v1771_v22 = vpop.f32.mrf.mxu0 }
 0x21b   : > { %v1772_v63 = vadd.f32 %v7751_v55, %v1771_v22  ;;  %6139 = vmatprep.mubr.f32.mxu1 %v1928_v51  ;;  %v1931_v42 = vmax.f32 %v1777_v38, 0.0 }
 0x21c   : > { %v7946_v52 = vpop.f32.mrf.mxu1  ;;  %v6019_v41 = vpop.f32.mrf.mxu0  ;;  %6140 = vmatmul.mubr.f32.gmra.mxu1 %v1929_v28  ;;  %6482 = vmatmul.mubr.f32.gmra.mxu0 %v7642_v27 }
 0x21d   : > { %v1930_v31 = vmax.f32 %v1772_v63, 0.0  ;;  %6484 = vmatprep.mubr.f32.mxu0 %v7646_v33  ;;  %v1787_v19 = vadd.f32 %v6019_v41, %v7751_v55 }
 0x21e   : > { %v7951_v3 = vpop.f32.mrf.mxu1  ;;  %v1781_v43 = vpop.f32.mrf.mxu0 }
 0x21f   : > { %v1782_v9 = vadd.f32 %v7751_v55, %v1781_v43  ;;  %6142 = vmatprep.mubr.f32.mxu1 %v1930_v31  ;;  %v1933_v27 = vmax.f32 %v1787_v19, 0.0 }
 0x220   : > { %v7954_v13 = vpop.f32.mrf.mxu1  ;;  %v6022_v36 = vpop.f32.mrf.mxu0  ;;  %6143 = vmatmul.mubr.f32.gmra.mxu1 %v1931_v42  ;;  %6485 = vmatmul.mubr.f32.gmra.mxu0 %v7652_v45 }
 0x221   : > { %v1932_v8 = vmax.f32 %v1782_v9, 0.0  ;;  %6487 = vmatprep.mubr.f32.mxu0 %v7656_v49  ;;  %v1797_v33 = vadd.f32 %v6022_v36, %v7751_v55 }
 0x222   : > { %v7959_v54 = vpop.f32.mrf.mxu1  ;;  %v1791_v51 = vpop.f32.mrf.mxu0 }
 0x223   : > { %v1792_v28 = vadd.f32 %v7751_v55, %v1791_v51  ;;  %6145 = vmatprep.mubr.f32.mxu1 %v1932_v8  ;;  %v1935_v45 = vmax.f32 %v1797_v33, 0.0 }
 0x224   : > { %v7962_v38 = vpop.f32.mrf.mxu1  ;;  %v6025_v22 = vpop.f32.mrf.mxu0  ;;  %6146 = vmatmul.mubr.f32.gmra.mxu1 %v1933_v27  ;;  %6488 = vmatmul.mubr.f32.gmra.mxu0 %v7662_v58 }
 0x225   : > { %v1934_v63 = vmax.f32 %v1792_v28, 0.0  ;;  %6490 = vmatprep.mubr.f32.mxu0 %v7666_v60  ;;  %v1807_v49 = vadd.f32 %v6025_v22, %v7751_v55 }
 0x226   : > { %v7967_v41 = vpop.f32.mrf.mxu1  ;;  %v1801_v31 = vpop.f32.mrf.mxu0 }
 0x227   : > { %v1802_v42 = vadd.f32 %v7751_v55, %v1801_v31  ;;  %6148 = vmatprep.mubr.f32.mxu1 %v1934_v63  ;;  %v1937_v58 = vmax.f32 %v1807_v49, 0.0 }
 0x228   : > { %v7970_v19 = vpop.f32.mrf.mxu1  ;;  %v6028_v43 = vpop.f32.mrf.mxu0  ;;  %6149 = vmatmul.mubr.f32.gmra.mxu1 %v1935_v45  ;;  %6491 = vmatmul.mubr.f32.gmra.mxu0 %v7672_v11 }
 0x229   : > { %v1936_v9 = vmax.f32 %v1802_v42, 0.0  ;;  %6493 = vmatprep.mubr.f32.mxu0 %v7676_v16  ;;  %v1817_v60 = vadd.f32 %v6028_v43, %v7751_v55 }
 0x22a   : > { %v7975_v36 = vpop.f32.mrf.mxu1  ;;  %v1811_v8 = vpop.f32.mrf.mxu0 }
 0x22b   : > { %v1812_v27 = vadd.f32 %v7751_v55, %v1811_v8  ;;  %6151 = vmatprep.mubr.f32.mxu1 %v1936_v9  ;;  %v1939_v11 = vmax.f32 %v1817_v60, 0.0 }
 0x22c   : > { %v7978_v33 = vpop.f32.mrf.mxu1  ;;  %v6031_v51 = vpop.f32.mrf.mxu0  ;;  %6152 = vmatmul.mubr.f32.gmra.mxu1 %v1937_v58  ;;  %6494 = vmatmul.mubr.f32.gmra.mxu0 %v7682_v12 }
 0x22d   : > { %v1938_v28 = vmax.f32 %v1812_v27, 0.0  ;;  %6496 = vmatprep.mubr.f32.mxu0 %v7686_v26  ;;  %v1827_v16 = vadd.f32 %v6031_v51, %v7751_v55 }
 0x22e   : > { %v7983_v22 = vpop.f32.mrf.mxu1  ;;  %v1821_v63 = vpop.f32.mrf.mxu0 }
 0x22f   : > { %v1822_v45 = vadd.f32 %v7751_v55, %v1821_v63  ;;  %6154 = vmatprep.mubr.f32.mxu1 %v1938_v28  ;;  %v1941_v12 = vmax.f32 %v1827_v16, 0.0 }
 0x230   : > { %v7986_v49 = vpop.f32.mrf.mxu1  ;;  %v6034_v31 = vpop.f32.mrf.mxu0  ;;  %6155 = vmatmul.mubr.f32.gmra.mxu1 %v1939_v11  ;;  %6497 = vmatmul.mubr.f32.gmra.mxu0 %v7692_v23 }
 0x231   : > { %v1940_v42 = vmax.f32 %v1822_v45, 0.0  ;;  %6499 = vmatprep.mubr.f32.mxu0 %v7696_v44  ;;  %v1837_v26 = vadd.f32 %v6034_v31, %v7751_v55 }
 0x232   : > { %v7991_v43 = vpop.f32.mrf.mxu1  ;;  %v1831_v9 = vpop.f32.mrf.mxu0 }
 0x233   : > { %v1832_v58 = vadd.f32 %v7751_v55, %v1831_v9  ;;  %6157 = vmatprep.mubr.f32.mxu1 %v1940_v42  ;;  %v1943_v23 = vmax.f32 %v1837_v26, 0.0 }
 0x234   : > { %v7994_v60 = vpop.f32.mrf.mxu1  ;;  %v6037_v8 = vpop.f32.mrf.mxu0  ;;  %6158 = vmatmul.mubr.f32.gmra.mxu1 %v1941_v12  ;;  %6500 = vmatmul.mubr.f32.gmra.mxu0 %v7702_v48 }
 0x235   : > { %v1942_v27 = vmax.f32 %v1832_v58, 0.0  ;;  %6502 = vmatprep.mubr.f32.mxu0 %v7706_v30  ;;  %v1847_v44 = vadd.f32 %v6037_v8, %v7751_v55 }
 0x236   : > { %v7999_v51 = vpop.f32.mrf.mxu1  ;;  %v1841_v28 = vpop.f32.mrf.mxu0 }
 0x237   : > { %v1842_v11 = vadd.f32 %v7751_v55, %v1841_v28  ;;  %6160 = vmatprep.mubr.f32.mxu1 %v1942_v27  ;;  %v1945_v48 = vmax.f32 %v1847_v44, 0.0 }
 0x238   : > { %v8002_v16 = vpop.f32.mrf.mxu1  ;;  %v6040_v63 = vpop.f32.mrf.mxu0  ;;  %6161 = vmatmul.mubr.f32.gmra.mxu1 %v1943_v23  ;;  %6503 = vmatmul.mubr.f32.gmra.mxu0 %v7712_v53 }
 0x239   : > { %v1944_v45 = vmax.f32 %v1842_v11, 0.0  ;;  %6505 = vmatprep.mubr.f32.mxu0 %v7716_v56  ;;  %v1857_v30 = vadd.f32 %v6040_v63, %v7751_v55 }
 0x23a   : > { %v8007_v31 = vpop.f32.mrf.mxu1  ;;  %v1851_v42 = vpop.f32.mrf.mxu0 }
 0x23b   : > { %v1852_v12 = vadd.f32 %v7751_v55, %v1851_v42  ;;  %6163 = vmatprep.mubr.f32.mxu1 %v1944_v45  ;;  %v1947_v53 = vmax.f32 %v1857_v30, 0.0 }
 0x23c   : > { %v8010_v26 = vpop.f32.mrf.mxu1  ;;  %v6043_v9 = vpop.f32.mrf.mxu0  ;;  %6164 = vmatmul.mubr.f32.gmra.mxu1 %v1945_v48  ;;  %6506 = vmatmul.mubr.f32.gmra.mxu0 %v7722_v1 }
 0x23d   : > { %v1946_v58 = vmax.f32 %v1852_v12, 0.0  ;;  %6508 = vmatprep.mubr.f32.mxu0 %v7726_v7  ;;  %v1867_v56 = vadd.f32 %v6043_v9, %v7751_v55 }
 0x23e   : > { %v8015_v8 = vpop.f32.mrf.mxu1  ;;  %v1861_v27 = vpop.f32.mrf.mxu0 }
 0x23f   : > { %v1862_v23 = vadd.f32 %v7751_v55, %v1861_v27  ;;  %6166 = vmatprep.mubr.f32.mxu1 %v1946_v58  ;;  %v1949_v1 = vmax.f32 %v1867_v56, 0.0  ;;  %v8034_v56 = vld [vmem:[#allocation8 + $0x2] ss:$0 sm:$0xff] }
 0x240   : > { %v8018_v44 = vpop.f32.mrf.mxu1  ;;  %v6046_v28 = vpop.f32.mrf.mxu0  ;;  %6167 = vmatmul.mubr.f32.gmra.mxu1 %v1947_v53  ;;  %6509 = vmatmul.mubr.f32.gmra.mxu0 %v7732_v32 }
 0x241   : > { %8975 = vst [vmem:[#allocation30_spill] sm:$0xff] %v8018_v44  ;;  %v1948_v11 = vmax.f32 %v1862_v23, 0.0  ;;  %6511 = vmatprep.mubr.f32.mxu0 %v7736_v18  ;;  %v1877_v7 = vadd.f32 %v6046_v28, %v7751_v55 }
 0x242   : > { %v8023_v63 = vpop.f32.mrf.mxu1  ;;  %v1871_v45 = vpop.f32.mrf.mxu0 }
 0x243   : > { %8976 = vst [vmem:[#allocation31_spill] sm:$0xff] %v8023_v63  ;;  %v1872_v48 = vadd.f32 %v7751_v55, %v1871_v45  ;;  %6169 = vmatprep.mubr.f32.mxu1 %v1948_v11  ;;  %v1951_v32 = vmax.f32 %v1877_v7, 0.0 }
 0x244   : > { %v8026_v30 = vpop.f32.mrf.mxu1  ;;  %v6049_v42 = vpop.f32.mrf.mxu0  ;;  %6170 = vmatmul.mubr.f32.gmra.mxu1 %v1949_v1  ;;  %6512 = vmatmul.mubr.f32.gmra.mxu0 %v7742_v14 }
 0x245   : > { %8977 = vst [vmem:[#allocation32_spill] sm:$0xff] %v8026_v30  ;;  %v1950_v12 = vmax.f32 %v1872_v48, 0.0  ;;  %6514 = vmatprep.mubr.f32.mxu0 %v7746_v46  ;;  %v1887_v18 = vadd.f32 %v6049_v42, %v7751_v55 }
 0x246   : > { %v8031_v9 = vpop.f32.mrf.mxu1  ;;  %v1881_v58 = vpop.f32.mrf.mxu0 }
 0x247   : > { %8978 = vst [vmem:[#allocation33_spill] sm:$0xff] %v8031_v9  ;;  %v1882_v53 = vadd.f32 %v7751_v55, %v1881_v58  ;;  %6172 = vmatprep.mubr.f32.mxu1 %v1950_v12  ;;  %v1953_v46 = vmax.f32 %v1887_v18, 0.0  ;;  %v4105_v18 = vld [vmem:[#allocation9 + $0x1f0] sm:$0xff] }
 0x248   : > { %v8036_v27 = vpop.f32.mrf.mxu1  ;;  %6173 = vmatmul.mubr.f32.gmra.mxu1 %v1951_v32  ;;  %v6212_v23 = vpop.f32.mrf.mxu0  ;;  %6515 = vmatmul.mubr.f32.gmra.mxu0 %v7754_v47 }
 0x249   : > { %8979 = vst [vmem:[#allocation34_spill] sm:$0xff] %v8036_v27  ;;  %v1952_v14 = vmax.f32 %v1882_v53, 0.0  ;;  %6517 = vmatprep.mubr.f32.mxu0 %v7758_v59  ;;  %v2645_v28 = vadd.f32 %v6212_v23, %v8034_v56 }
 0x24a   : > { %v8041_v11 = vpop.f32.mrf.mxu1  ;;  %v2639_v1 = vpop.f32.mrf.mxu0 }
 0x24b   : > { %8980 = vst [vmem:[#allocation35_spill] sm:$0xff] %v8041_v11  ;;  %v2640_v55 = vadd.f32 %v8034_v56, %v2639_v1  ;;  %6175 = vmatprep.mubr.f32.mxu1 %v1952_v14  ;;  %v2959_v47 = vmax.f32 %v2645_v28, 0.0  ;;  %v4104_v28 = vld [vmem:[#allocation9 + $0x1e8] sm:$0xff] }
 0x24c   : > { %v8044_v7 = vpop.f32.mrf.mxu1  ;;  %6176 = vmatmul.mubr.f32.gmra.mxu1 %v1953_v46  ;;  %v6215_v45 = vpop.f32.mrf.mxu0  ;;  %6518 = vmatmul.mubr.f32.gmra.mxu0 %v7764_v0 }
 0x24d   : > { %8981 = vst [vmem:[#allocation36_spill] sm:$0xff] %v8044_v7  ;;  %v2958_v48 = vmax.f32 %v2640_v55, 0.0  ;;  %6520 = vmatprep.mubr.f32.mxu0 %v7768_v5  ;;  %v2655_v59 = vadd.f32 %v6215_v45, %v8034_v56 }
 0x24e   : > { %v8049_v42 = vpop.f32.mrf.mxu1  ;;  %v2649_v12 = vpop.f32.mrf.mxu0 }
 0x24f   : > { %8982 = vst [vmem:[#allocation37_spill] sm:$0xff] %v8049_v42  ;;  %v2650_v32 = vadd.f32 %v8034_v56, %v2649_v12  ;;  %6338 = vmatprep.mubr.f32.mxu1 %v2958_v48  ;;  %v2961_v5 = vmax.f32 %v2655_v59, 0.0 }
 0x250   : > { %v8052_v58 = vpop.f32.mrf.mxu1  ;;  %v6218_v53 = vpop.f32.mrf.mxu0  ;;  %6339 = vmatmul.mubr.f32.vlgmr.msra.gmra.mxu1 %v2959_v47  ;;  %6521 = vmatmul.mubr.f32.gmra.mxu0 %v7774_v34 }
 0x251   : > { %8983 = vst [vmem:[#allocation38_spill] sm:$0xff] %v8052_v58  ;;  %v2960_v0 = vmax.f32 %v2650_v32, 0.0  ;;  %6563 = vmatpush3.msra.mxu1 %v7874_v24  ;;  %6523 = vmatprep.mubr.f32.mxu0 %v7779_v4  ;;  %v2665_v23 = vadd.f32 %v6218_v53, %v8034_v56  ;;  %v4103_v24 = vld [vmem:[#allocation9 + $0x1e0] sm:$0xff]  ;;  %v4102_v32 = vld [vmem:[#allocation9 + $0x1d8] sm:$0xff] }
 0x252   : > { %v8058_v14 = vpop.f32.mrf.mxu1  ;;  %v2659_v46 = vpop.f32.mrf.mxu0  ;;  %6564 = vmatprep.subr.mxu1 %v4105_v18 }
 0x253   : > { %8984 = vst [vmem:[#allocation39_spill] sm:$0xff] %v8058_v14  ;;  %v2660_v1 = vadd.f32 %v8034_v56, %v2659_v46  ;;  %6341 = vmatprep.mubr.f32.mxu1 %v2960_v0  ;;  %6565 = vmatpush3.msra.mxu1 %v4105_v18  ;;  %v2963_v45 = vmax.f32 %v2665_v23, 0.0  ;;  %v4101_v46 = vld [vmem:[#allocation9 + $0x1d0] sm:$0xff] }
 0x254   : > { %v8061_v55 = vpop.f32.mrf.mxu1  ;;  %v6221_v34 = vpop.f32.mrf.mxu0  ;;  %6342 = vmatmul.mubr.f32.gmra.mxu1 %v2961_v5  ;;  %6524 = vmatmul.mubr.f32.gmra.mxu0 %v7785_v35 }
 0x255   : > { %8985 = vst [vmem:[#allocation40_spill] sm:$0xff] %v8061_v55  ;;  %v2962_v4 = vmax.f32 %v2660_v1, 0.0  ;;  %6526 = vmatprep.mubr.f32.mxu0 %v7789_v10  ;;  %6566 = vmatprep.subr.mxu1 %v4104_v28  ;;  %v2675_v48 = vadd.f32 %v6221_v34, %v8034_v56 }
 0x256   : > { %v8066_v47 = vpop.f32.mrf.mxu1  ;;  %v2669_v59 = vpop.f32.mrf.mxu0  ;;  %6567 = vmatpush3.msra.mxu1 %v4104_v28 }
 0x257   : > { %8986 = vst [vmem:[#allocation41_spill] sm:$0xff] %v8066_v47  ;;  %v2670_v12 = vadd.f32 %v8034_v56, %v2669_v59  ;;  %6344 = vmatprep.mubr.f32.mxu1 %v2962_v4  ;;  %6568 = vmatprep.subr.mxu1 %v4103_v24  ;;  %v2965_v53 = vmax.f32 %v2675_v48, 0.0 }
 0x258   : > { %v8069_v18 = vpop.f32.mrf.mxu1  ;;  %v6224_v35 = vpop.f32.mrf.mxu0  ;;  %6345 = vmatmul.mubr.f32.gmra.mxu1 %v2963_v45  ;;  %6527 = vmatmul.mubr.f32.gmra.mxu0 %v7795_v2  ;;  %v4100_v2 = vld [vmem:[#allocation9 + $0x1c8] sm:$0xff] }
 0x259   : > { %8987 = vst [vmem:[#allocation42_spill] sm:$0xff] %v8069_v18  ;;  %v2964_v10 = vmax.f32 %v2670_v12, 0.0  ;;  %6529 = vmatprep.mubr.f32.mxu0 %v7799_v15  ;;  %6569 = vmatpush3.msra.mxu1 %v4103_v24  ;;  %v2685_v0 = vadd.f32 %v6224_v35, %v8034_v56  ;;  %v4099_v12 = vld [vmem:[#allocation9 + $0x1c0] sm:$0xff] }
 0x25a   : > { %v8074_v5 = vpop.f32.mrf.mxu1  ;;  %v2679_v23 = vpop.f32.mrf.mxu0  ;;  %6570 = vmatprep.subr.mxu1 %v4102_v32 }
 0x25b   : > { %8988 = vst [vmem:[#allocation43_spill] sm:$0xff] %v8074_v5  ;;  %v2680_v28 = vadd.f32 %v8034_v56, %v2679_v23  ;;  %6347 = vmatprep.mubr.f32.mxu1 %v2964_v10  ;;  %6571 = vmatpush3.msra.mxu1 %v4102_v32  ;;  %v2967_v24 = vmax.f32 %v2685_v0, 0.0  ;;  %v4098_v23 = vld [vmem:[#allocation9 + $0x1b8] sm:$0xff] }
 0x25c   : > { %v8077_v1 = vpop.f32.mrf.mxu1  ;;  %v6227_v34 = vpop.f32.mrf.mxu0  ;;  %6348 = vmatmul.mubr.f32.gmra.mxu1 %v2965_v53  ;;  %6530 = vmatmul.mubr.f32.gmra.mxu0 %v7805_v17 }
 0x25d   : > { %8989 = vst [vmem:[#allocation44_spill] sm:$0xff] %v8077_v1  ;;  %v2966_v15 = vmax.f32 %v2680_v28, 0.0  ;;  %6532 = vmatprep.mubr.f32.mxu0 %v7809_v29  ;;  %6572 = vmatprep.subr.mxu1 %v4101_v46  ;;  %v2695_v4 = vadd.f32 %v6227_v34, %v8034_v56 }
 0x25e   : > { %v8082_v45 = vpop.f32.mrf.mxu1  ;;  %v2689_v48 = vpop.f32.mrf.mxu0  ;;  %6573 = vmatpush3.msra.mxu1 %v4101_v46 }
 0x25f   : > { %8990 = vst [vmem:[#allocation45_spill] sm:$0xff] %v8082_v45  ;;  %v2690_v59 = vadd.f32 %v8034_v56, %v2689_v48  ;;  %6350 = vmatprep.mubr.f32.mxu1 %v2966_v15  ;;  %6574 = vmatprep.subr.mxu1 %v4100_v2  ;;  %v2969_v35 = vmax.f32 %v2695_v4, 0.0 }
 0x260   : > { %v8085_v32 = vpop.f32.mrf.mxu1  ;;  %v6230_v17 = vpop.f32.mrf.mxu0  ;;  %6351 = vmatmul.mubr.f32.gmra.mxu1 %v2967_v24  ;;  %6533 = vmatmul.mubr.f32.gmra.mxu0 %v7815_v39  ;;  %v4097_v39 = vld [vmem:[#allocation9 + $0x1b0] sm:$0xff] }
 0x261   : > { %8991 = vst [vmem:[#allocation46_spill] sm:$0xff] %v8085_v32  ;;  %v2968_v29 = vmax.f32 %v2690_v59, 0.0  ;;  %6535 = vmatprep.mubr.f32.mxu0 %v7819_v37  ;;  %6575 = vmatpush3.msra.mxu1 %v4100_v2  ;;  %v2705_v10 = vadd.f32 %v6230_v17, %v8034_v56  ;;  %v4096_v59 = vld [vmem:[#allocation9 + $0x1a8] sm:$0xff]  ;;  %v8996_v17 = vld [vmem:[#allocation16_spill] sm:$0xff] }
 0x262   : > { %v8090_v53 = vpop.f32.mrf.mxu1  ;;  %v2699_v0 = vpop.f32.mrf.mxu0  ;;  %6576 = vmatprep.subr.mxu1 %v4099_v12 }
 0x263   : > { %8992 = vst [vmem:[#allocation47_spill] sm:$0xff] %v8090_v53  ;;  %v2700_v46 = vadd.f32 %v8034_v56, %v2699_v0  ;;  %6353 = vmatprep.mubr.f32.mxu1 %v2968_v29  ;;  %6577 = vmatpush3.msra.mxu1 %v4099_v12  ;;  %v2971_v2 = vmax.f32 %v2705_v10, 0.0  ;;  %v8997_v29 = vld [vmem:[#allocation17_spill] sm:$0xff] }
 0x264   : > { %v8093_v28 = vpop.f32.mrf.mxu1  ;;  %v6233_v34 = vpop.f32.mrf.mxu0  ;;  %6354 = vmatmul.mubr.f32.gmra.mxu1 %v2969_v35  ;;  %6536 = vmatmul.mubr.f32.gmra.mxu0 %v7825_v40 }
 0x265   : > { %8993 = vst [vmem:[#allocation48_spill] sm:$0xff] %v8093_v28  ;;  %v2970_v37 = vmax.f32 %v2700_v46, 0.0  ;;  %6538 = vmatprep.mubr.f32.mxu0 %v7829_v21  ;;  %6578 = vmatprep.subr.mxu1 %v4098_v23  ;;  %v2715_v15 = vadd.f32 %v6233_v34, %v8034_v56  ;;  %v4095_v46 = vld [vmem:[#allocation9 + $0x1a0] sm:$0xff] }
 0x266   : > { %v8098_v24 = vpop.f32.mrf.mxu1  ;;  %v2709_v4 = vpop.f32.mrf.mxu0  ;;  %6579 = vmatpush3.msra.mxu1 %v4098_v23 }
 0x267   : > { %8994 = vst [vmem:[#allocation49_spill] sm:$0xff] %v8098_v24  ;;  %v2710_v48 = vadd.f32 %v8034_v56, %v2709_v4  ;;  %6356 = vmatprep.mubr.f32.mxu1 %v2970_v37  ;;  %6580 = vmatprep.subr.mxu1 %v4097_v39  ;;  %v2973_v35 = vmax.f32 %v2715_v15, 0.0  ;;  %v9000_v4 = vld [vmem:[#allocation18_spill] sm:$0xff]  ;;  %v9001_v15 = vld [vmem:[#allocation19_spill] sm:$0xff] }
 0x268   : > { %v8101_v12 = vpop.f32.mrf.mxu1  ;;  %v6236_v40 = vpop.f32.mrf.mxu0  ;;  %6357 = vmatmul.mubr.f32.gmra.mxu1 %v2971_v2  ;;  %6539 = vmatmul.mubr.f32.gmra.mxu0 %v8996_v17 }
 0x269   : > { %8995 = vst [vmem:[#allocation50_spill] sm:$0xff] %v8101_v12  ;;  %v2972_v21 = vmax.f32 %v2710_v48, 0.0  ;;  %6541 = vmatprep.mubr.f32.mxu0 %v8997_v29  ;;  %6581 = vmatpush3.msra.mxu1 %v4097_v39  ;;  %v2725_v10 = vadd.f32 %v6236_v40, %v8034_v56  ;;  %v4094_v48 = vld [vmem:[#allocation9 + $0x198] sm:$0xff] }
 0x26a   : > { %v8106_v0 = vpop.f32.mrf.mxu1  ;;  %v2719_v23 = vpop.f32.mrf.mxu0  ;;  %6582 = vmatprep.subr.mxu1 %v4096_v59 }
 0x26b   : > { %8998 = vst [vmem:[#allocation16_spill] sm:$0xff] %v8106_v0  ;;  %v2720_v34 = vadd.f32 %v8034_v56, %v2719_v23  ;;  %6359 = vmatprep.mubr.f32.mxu1 %v2972_v21  ;;  %6583 = vmatpush3.msra.mxu1 %v4096_v59  ;;  %v2975_v40 = vmax.f32 %v2725_v10, 0.0  ;;  %v4093_v21 = vld [vmem:[#allocation9 + $0x190] sm:$0xff] }
 0x26c   : > { %v8109_v37 = vpop.f32.mrf.mxu1  ;;  %v6239_v2 = vpop.f32.mrf.mxu0  ;;  %6360 = vmatmul.mubr.f32.gmra.mxu1 %v2973_v35  ;;  %6542 = vmatmul.mubr.f32.gmra.mxu0 %v9000_v4 }
 0x26d   : > { %8999 = vst [vmem:[#allocation17_spill] sm:$0xff] %v8109_v37  ;;  %v2974_v39 = vmax.f32 %v2720_v34, 0.0  ;;  %6544 = vmatprep.mubr.f32.mxu0 %v9001_v15  ;;  %6584 = vmatprep.subr.mxu1 %v4095_v46  ;;  %v2735_v17 = vadd.f32 %v6239_v2, %v8034_v56  ;;  %v9004_v34 = vld [vmem:[#allocation20_spill] sm:$0xff]  ;;  %v9005_v15 = vld [vmem:[#allocation21_spill] sm:$0xff] }
 0x26e   : > { %v8114_v29 = vpop.f32.mrf.mxu1  ;;  %v2729_v0 = vpop.f32.mrf.mxu0  ;;  %6585 = vmatpush3.msra.mxu1 %v4095_v46 }
 0x26f   : > { %9002 = vst [vmem:[#allocation18_spill] sm:$0xff] %v8114_v29  ;;  %v2730_v59 = vadd.f32 %v8034_v56, %v2729_v0  ;;  %6362 = vmatprep.mubr.f32.mxu1 %v2974_v39  ;;  %6586 = vmatprep.subr.mxu1 %v4094_v48  ;;  %v2977_v10 = vmax.f32 %v2735_v17, 0.0  ;;  %v4092_v0 = vld [vmem:[#allocation9 + $0x188] sm:$0xff]  ;;  %v9009_v17 = vld [vmem:[#allocation23_spill] sm:$0xff] }
 0x270   : > { %v8117_v35 = vpop.f32.mrf.mxu1  ;;  %v6242_v23 = vpop.f32.mrf.mxu0  ;;  %6363 = vmatmul.mubr.f32.gmra.mxu1 %v2975_v40  ;;  %6545 = vmatmul.mubr.f32.gmra.mxu0 %v9004_v34  ;;  %v4091_v34 = vld [vmem:[#allocation9 + $0x180] sm:$0xff] }
 0x271   : > { %9003 = vst [vmem:[#allocation19_spill] sm:$0xff] %v8117_v35  ;;  %v2976_v4 = vmax.f32 %v2730_v59, 0.0  ;;  %6547 = vmatprep.mubr.f32.mxu0 %v9005_v15  ;;  %6587 = vmatpush3.msra.mxu1 %v4094_v48  ;;  %v2745_v2 = vadd.f32 %v6242_v23, %v8034_v56  ;;  %v9008_v59 = vld [vmem:[#allocation22_spill] sm:$0xff] }
 0x272   : > { %v8122_v29 = vpop.f32.mrf.mxu1  ;;  %v2739_v46 = vpop.f32.mrf.mxu0  ;;  %6588 = vmatprep.subr.mxu1 %v4093_v21 }
 0x273   : > { %9006 = vst [vmem:[#allocation20_spill] sm:$0xff] %v8122_v29  ;;  %v2740_v39 = vadd.f32 %v8034_v56, %v2739_v46  ;;  %6365 = vmatprep.mubr.f32.mxu1 %v2976_v4  ;;  %6589 = vmatpush3.msra.mxu1 %v4093_v21  ;;  %v2979_v23 = vmax.f32 %v2745_v2, 0.0  ;;  %v9012_v46 = vld [vmem:[#allocation24_spill] sm:$0xff] }
 0x274   : > { %v8125_v35 = vpop.f32.mrf.mxu1  ;;  %v6245_v40 = vpop.f32.mrf.mxu0  ;;  %6366 = vmatmul.mubr.f32.gmra.mxu1 %v2977_v10  ;;  %6548 = vmatmul.mubr.f32.gmra.mxu0 %v9008_v59  ;;  %v9013_v59 = vld [vmem:[#allocation25_spill] sm:$0xff] }
 0x275   : > { %9007 = vst [vmem:[#allocation21_spill] sm:$0xff] %v8125_v35  ;;  %v2978_v48 = vmax.f32 %v2740_v39, 0.0  ;;  %6550 = vmatprep.mubr.f32.mxu0 %v9009_v17  ;;  %6590 = vmatprep.subr.mxu1 %v4092_v0  ;;  %v2755_v15 = vadd.f32 %v6245_v40, %v8034_v56 }
 0x276   : > { %v8130_v29 = vpop.f32.mrf.mxu1  ;;  %v2749_v37 = vpop.f32.mrf.mxu0  ;;  %6591 = vmatpush3.msra.mxu1 %v4092_v0 }
 0x277   : > { %9010 = vst [vmem:[#allocation22_spill] sm:$0xff] %v8130_v29  ;;  %v2750_v21 = vadd.f32 %v8034_v56, %v2749_v37  ;;  %6368 = vmatprep.mubr.f32.mxu1 %v2978_v48  ;;  %6592 = vmatprep.subr.mxu1 %v4091_v34  ;;  %v2981_v2 = vmax.f32 %v2755_v15, 0.0 }
 0x278   : > { %v8133_v4 = vpop.f32.mrf.mxu1  ;;  %v6248_v10 = vpop.f32.mrf.mxu0  ;;  %6369 = vmatmul.mubr.f32.gmra.mxu1 %v2979_v23  ;;  %6551 = vmatmul.mubr.f32.gmra.mxu0 %v9012_v46  ;;  %v9016_v23 = vld [vmem:[#allocation26_spill] sm:$0xff] }
 0x279   : > { %9011 = vst [vmem:[#allocation23_spill] sm:$0xff] %v8133_v4  ;;  %v2980_v39 = vmax.f32 %v2750_v21, 0.0  ;;  %6553 = vmatprep.mubr.f32.mxu0 %v9013_v59  ;;  %6593 = vmatpush3.msra.mxu1 %v4091_v34  ;;  %v2765_v40 = vadd.f32 %v6248_v10, %v8034_v56  ;;  %v9017_v21 = vld [vmem:[#allocation27_spill] sm:$0xff] }
 0x27a   : > { %v8138_v17 = vpop.f32.mrf.mxu1  ;;  %v2759_v0 = vpop.f32.mrf.mxu0 }
 0x27b   : > { %9014 = vst [vmem:[#allocation24_spill] sm:$0xff] %v8138_v17  ;;  %v2760_v37 = vadd.f32 %v8034_v56, %v2759_v0  ;;  %6371 = vmatprep.mubr.f32.mxu1 %v2980_v39  ;;  %v2983_v59 = vmax.f32 %v2765_v40, 0.0 }
 0x27c   : > { %v8141_v48 = vpop.f32.mrf.mxu1  ;;  %v6251_v4 = vpop.f32.mrf.mxu0  ;;  %6372 = vmatmul.mubr.f32.gmra.mxu1 %v2981_v2  ;;  %6554 = vmatmul.mubr.f32.gmra.mxu0 %v9016_v23  ;;  %v9021_v23 = vld [vmem:[#allocation29_spill] sm:$0xff] }
 0x27d   : > { %9015 = vst [vmem:[#allocation25_spill] sm:$0xff] %v8141_v48  ;;  %v2982_v46 = vmax.f32 %v2760_v37, 0.0  ;;  %6556 = vmatprep.mubr.f32.mxu0 %v9017_v21  ;;  %v2775_v34 = vadd.f32 %v6251_v4, %v8034_v56  ;;  %v9020_v48 = vld [vmem:[#allocation28_spill] sm:$0xff] }
 0x27e   : > { %v8146_v15 = vpop.f32.mrf.mxu1  ;;  %v2769_v10 = vpop.f32.mrf.mxu0 }
 0x27f   : > { %9018 = vst [vmem:[#allocation26_spill] sm:$0xff] %v8146_v15  ;;  %v2770_v17 = vadd.f32 %v8034_v56, %v2769_v10  ;;  %6374 = vmatprep.mubr.f32.mxu1 %v2982_v46  ;;  %v2985_v37 = vmax.f32 %v2775_v34, 0.0 }
 0x280   : > { %v8149_v0 = vpop.f32.mrf.mxu1  ;;  %v6254_v39 = vpop.f32.mrf.mxu0  ;;  %6375 = vmatmul.mubr.f32.gmra.mxu1 %v2983_v59  ;;  %6557 = vmatmul.mubr.f32.gmra.mxu0 %v9020_v48 }
 0x281   : > { %9019 = vst [vmem:[#allocation27_spill] sm:$0xff] %v8149_v0  ;;  %v2984_v2 = vmax.f32 %v2770_v17, 0.0  ;;  %6559 = vmatprep.mubr.f32.mxu0 %v9021_v23  ;;  %v2785_v40 = vadd.f32 %v6254_v39, %v8034_v56 }
 0x282   : > { %v8154_v21 = vpop.f32.mrf.mxu1  ;;  %v2779_v4 = vpop.f32.mrf.mxu0 }
 0x283   : > { %9022 = vst [vmem:[#allocation28_spill] sm:$0xff] %v8154_v21  ;;  %v2780_v15 = vadd.f32 %v8034_v56, %v2779_v4  ;;  %6377 = vmatprep.mubr.f32.mxu1 %v2984_v2  ;;  %v2987_v48 = vmax.f32 %v2785_v40, 0.0 }
 0x284   : > { %v8157_v10 = vpop.f32.mrf.mxu1  ;;  %v6257_v46 = vpop.f32.mrf.mxu0  ;;  %6378 = vmatmul.mubr.f32.gmra.mxu1 %v2985_v37  ;;  %6560 = vmatmul.mubr.f32.gmra.mxu0 %v7908_v20 }
 0x285   : > { %9023 = vst [vmem:[#allocation29_spill] sm:$0xff] %v8157_v10  ;;  %v2986_v59 = vmax.f32 %v2780_v15, 0.0  ;;  %v2795_v17 = vadd.f32 %v6257_v46, %v8034_v56 }
 0x286   : > { %v8161_v23 = vpop.f32.mrf.mxu1  ;;  %v2789_v34 = vpop.f32.mrf.mxu0 }
 0x287   : > { %9024 = vst [vmem:[#allocation51_spill] sm:$0xff] %v8161_v23  ;;  %v2790_v39 = vadd.f32 %v8034_v56, %v2789_v34  ;;  %6380 = vmatprep.mubr.f32.mxu1 %v2986_v59  ;;  %v2989_v10 = vmax.f32 %v2795_v17, 0.0 }
 0x288   : > { %v8164_v21 = vpop.f32.mrf.mxu1  ;;  %v6260_v4 = vpop.f32.mrf.mxu0  ;;  %6381 = vmatmul.mubr.f32.gmra.mxu1 %v2987_v48 }
 0x289   : > { %9025 = vst [vmem:[#allocation52_spill] sm:$0xff] %v8164_v21  ;;  %v2988_v2 = vmax.f32 %v2790_v39, 0.0  ;;  %v2805_v37 = vadd.f32 %v6260_v4, %v8034_v56 }
 0x28a   : > { %v8167_v0 = vpop.f32.mrf.mxu1  ;;  %v2799_v20 = vpop.f32.mrf.mxu0 }
 0x28b   : > { %9026 = vst [vmem:[#allocation53_spill] sm:$0xff] %v8167_v0  ;;  %v2800_v15 = vadd.f32 %v8034_v56, %v2799_v20  ;;  %6383 = vmatprep.mubr.f32.mxu1 %v2988_v2  ;;  %v2991_v59 = vmax.f32 %v2805_v37, 0.0 }
 0x28c   : > { %v8170_v40 = vpop.f32.mrf.mxu1  ;;  %v6263_v46 = vpop.f32.mrf.mxu0  ;;  %6384 = vmatmul.mubr.f32.gmra.mxu1 %v2989_v10 }
 0x28d   : > { %9027 = vst [vmem:[#allocation54_spill] sm:$0xff] %v8170_v40  ;;  %v2990_v34 = vmax.f32 %v2800_v15, 0.0  ;;  %v2815_v21 = vadd.f32 %v6263_v46, %v8034_v56 }
 0x28e   : > { %v8173_v23 = vpop.f32.mrf.mxu1  ;;  %v2809_v48 = vpop.f32.mrf.mxu0 }
 0x28f   : > { %9028 = vst [vmem:[#allocation55_spill] sm:$0xff] %v8173_v23  ;;  %v2810_v17 = vadd.f32 %v8034_v56, %v2809_v48  ;;  %6386 = vmatprep.mubr.f32.mxu1 %v2990_v34  ;;  %v2993_v2 = vmax.f32 %v2815_v21, 0.0 }
 0x290   : > { %v8176_v39 = vpop.f32.mrf.mxu1  ;;  %v6266_v4 = vpop.f32.mrf.mxu0  ;;  %6387 = vmatmul.mubr.f32.gmra.mxu1 %v2991_v59 }
 0x291   : > { %v2992_v20 = vmax.f32 %v2810_v17, 0.0  ;;  %v2825_v40 = vadd.f32 %v6266_v4, %v8034_v56 }
 0x292   : > { %v8179_v0 = vpop.f32.mrf.mxu1  ;;  %v2819_v10 = vpop.f32.mrf.mxu0 }
 0x293   : > { %v2820_v37 = vadd.f32 %v8034_v56, %v2819_v10  ;;  %6389 = vmatprep.mubr.f32.mxu1 %v2992_v20  ;;  %v2995_v34 = vmax.f32 %v2825_v40, 0.0 }
 0x294   : > { %v8182_v15 = vpop.f32.mrf.mxu1  ;;  %v6269_v46 = vpop.f32.mrf.mxu0  ;;  %6390 = vmatmul.mubr.f32.gmra.mxu1 %v2993_v2 }
 0x295   : > { %v2994_v48 = vmax.f32 %v2820_v37, 0.0  ;;  %v2835_v23 = vadd.f32 %v6269_v46, %v8034_v56 }
 0x296   : > { %v8185_v29 = vpop.f32.mrf.mxu1  ;;  %v2829_v59 = vpop.f32.mrf.mxu0 }
 0x297   : > { %v2830_v21 = vadd.f32 %v8034_v56, %v2829_v59  ;;  %6392 = vmatprep.mubr.f32.mxu1 %v2994_v48  ;;  %v2997_v20 = vmax.f32 %v2835_v23, 0.0 }
 0x298   : > { %v8188_v17 = vpop.f32.mrf.mxu1  ;;  %v6272_v4 = vpop.f32.mrf.mxu0  ;;  %6393 = vmatmul.mubr.f32.gmra.mxu1 %v2995_v34 }
 0x299   : > { %v2996_v10 = vmax.f32 %v2830_v21, 0.0  ;;  %v2845_v35 = vadd.f32 %v6272_v4, %v8034_v56 }
 0x29a   : > { %v8191_v12 = vpop.f32.mrf.mxu1  ;;  %v2839_v2 = vpop.f32.mrf.mxu0 }
 0x29b   : > { %v2840_v40 = vadd.f32 %v8034_v56, %v2839_v2  ;;  %6395 = vmatprep.mubr.f32.mxu1 %v2996_v10  ;;  %v2999_v48 = vmax.f32 %v2845_v35, 0.0 }
 0x29c   : > { %v8194_v37 = vpop.f32.mrf.mxu1  ;;  %v6275_v46 = vpop.f32.mrf.mxu0  ;;  %6396 = vmatmul.mubr.f32.gmra.mxu1 %v2997_v20 }
 0x29d   : > { %v2998_v59 = vmax.f32 %v2840_v40, 0.0  ;;  %v2855_v24 = vadd.f32 %v6275_v46, %v8034_v56 }
 0x29e   : > { %v8197_v28 = vpop.f32.mrf.mxu1  ;;  %v2849_v34 = vpop.f32.mrf.mxu0 }
 0x29f   : > { %v2850_v23 = vadd.f32 %v8034_v56, %v2849_v34  ;;  %6398 = vmatprep.mubr.f32.mxu1 %v2998_v59  ;;  %v3001_v10 = vmax.f32 %v2855_v24, 0.0 }
 0x2a0   : > { %v8200_v21 = vpop.f32.mrf.mxu1  ;;  %v6278_v4 = vpop.f32.mrf.mxu0  ;;  %6399 = vmatmul.mubr.f32.gmra.mxu1 %v2999_v48 }
 0x2a1   : > { %v3000_v2 = vmax.f32 %v2850_v23, 0.0  ;;  %v2865_v53 = vadd.f32 %v6278_v4, %v8034_v56 }
 0x2a2   : > { %v8203_v32 = vpop.f32.mrf.mxu1  ;;  %v2859_v20 = vpop.f32.mrf.mxu0 }
 0x2a3   : > { %v2860_v35 = vadd.f32 %v8034_v56, %v2859_v20  ;;  %6401 = vmatprep.mubr.f32.mxu1 %v3000_v2  ;;  %v3003_v59 = vmax.f32 %v2865_v53, 0.0 }
 0x2a4   : > { %v8206_v40 = vpop.f32.mrf.mxu1  ;;  %v6281_v46 = vpop.f32.mrf.mxu0  ;;  %6402 = vmatmul.mubr.f32.gmra.mxu1 %v3001_v10 }
 0x2a5   : > { %v3002_v34 = vmax.f32 %v2860_v35, 0.0  ;;  %v2875_v45 = vadd.f32 %v6281_v46, %v8034_v56 }
 0x2a6   : > { %v8209_v1 = vpop.f32.mrf.mxu1  ;;  %v2869_v48 = vpop.f32.mrf.mxu0 }
 0x2a7   : > { %v2870_v24 = vadd.f32 %v8034_v56, %v2869_v48  ;;  %6404 = vmatprep.mubr.f32.mxu1 %v3002_v34  ;;  %v3005_v2 = vmax.f32 %v2875_v45, 0.0 }
 0x2a8   : > { %v8212_v23 = vpop.f32.mrf.mxu1  ;;  %v6284_v4 = vpop.f32.mrf.mxu0  ;;  %6405 = vmatmul.mubr.f32.gmra.mxu1 %v3003_v59 }
 0x2a9   : > { %v3004_v20 = vmax.f32 %v2870_v24, 0.0  ;;  %v2885_v5 = vadd.f32 %v6284_v4, %v8034_v56 }
 0x2aa   : > { %v8215_v18 = vpop.f32.mrf.mxu1  ;;  %v2879_v10 = vpop.f32.mrf.mxu0 }
 0x2ab   : > { %v2880_v53 = vadd.f32 %v8034_v56, %v2879_v10  ;;  %6407 = vmatprep.mubr.f32.mxu1 %v3004_v20  ;;  %v3007_v34 = vmax.f32 %v2885_v5, 0.0 }
 0x2ac   : > { %v8218_v35 = vpop.f32.mrf.mxu1  ;;  %v6287_v46 = vpop.f32.mrf.mxu0  ;;  %6408 = vmatmul.mubr.f32.gmra.mxu1 %v3005_v2 }
 0x2ad   : > { %v3006_v48 = vmax.f32 %v2880_v53, 0.0  ;;  %v2895_v47 = vadd.f32 %v6287_v46, %v8034_v56 }
 0x2ae   : > { %v8221_v55 = vpop.f32.mrf.mxu1  ;;  %v2889_v59 = vpop.f32.mrf.mxu0 }
 0x2af   : > { %v2890_v45 = vadd.f32 %v8034_v56, %v2889_v59  ;;  %6410 = vmatprep.mubr.f32.mxu1 %v3006_v48  ;;  %v3009_v20 = vmax.f32 %v2895_v47, 0.0 }
 0x2b0   : > { %v8224_v24 = vpop.f32.mrf.mxu1  ;;  %v6290_v4 = vpop.f32.mrf.mxu0  ;;  %6411 = vmatmul.mubr.f32.gmra.mxu1 %v3007_v34 }
 0x2b1   : > { %v3008_v10 = vmax.f32 %v2890_v45, 0.0  ;;  %v2905_v14 = vadd.f32 %v6290_v4, %v8034_v56 }
 0x2b2   : > { %v8227_v58 = vpop.f32.mrf.mxu1  ;;  %v2899_v2 = vpop.f32.mrf.mxu0 }
 0x2b3   : > { %v2900_v5 = vadd.f32 %v8034_v56, %v2899_v2  ;;  %6413 = vmatprep.mubr.f32.mxu1 %v3008_v10  ;;  %v3011_v48 = vmax.f32 %v2905_v14, 0.0 }
 0x2b4   : > { %v8230_v53 = vpop.f32.mrf.mxu1  ;;  %v6293_v46 = vpop.f32.mrf.mxu0  ;;  %6414 = vmatmul.mubr.f32.gmra.mxu1 %v3009_v20 }
 0x2b5   : > { %v3010_v59 = vmax.f32 %v2900_v5, 0.0  ;;  %v2915_v42 = vadd.f32 %v6293_v46, %v8034_v56 }
 0x2b6   : > { %v8233_v7 = vpop.f32.mrf.mxu1  ;;  %v2909_v34 = vpop.f32.mrf.mxu0 }
 0x2b7   : > { %v2910_v47 = vadd.f32 %v8034_v56, %v2909_v34  ;;  %6416 = vmatprep.mubr.f32.mxu1 %v3010_v59  ;;  %v3013_v10 = vmax.f32 %v2915_v42, 0.0 }
 0x2b8   : > { %v8236_v45 = vpop.f32.mrf.mxu1  ;;  %v6296_v4 = vpop.f32.mrf.mxu0  ;;  %6417 = vmatmul.mubr.f32.gmra.mxu1 %v3011_v48 }
 0x2b9   : > { %v3012_v2 = vmax.f32 %v2910_v47, 0.0  ;;  %v2925_v11 = vadd.f32 %v6296_v4, %v8034_v56 }
 0x2ba   : > { %v8239_v27 = vpop.f32.mrf.mxu1  ;;  %v2919_v20 = vpop.f32.mrf.mxu0 }
 0x2bb   : > { %v2920_v14 = vadd.f32 %v8034_v56, %v2919_v20  ;;  %6419 = vmatprep.mubr.f32.mxu1 %v3012_v2  ;;  %v3015_v59 = vmax.f32 %v2925_v11, 0.0 }
 0x2bc   : > { %v8242_v5 = vpop.f32.mrf.mxu1  ;;  %v6299_v46 = vpop.f32.mrf.mxu0  ;;  %6420 = vmatmul.mubr.f32.gmra.mxu1 %v3013_v10 }
 0x2bd   : > { %v3014_v34 = vmax.f32 %v2920_v14, 0.0  ;;  %v2935_v9 = vadd.f32 %v6299_v46, %v8034_v56 }
 0x2be   : > { %v8245_v30 = vpop.f32.mrf.mxu1  ;;  %v2929_v48 = vpop.f32.mrf.mxu0 }
 0x2bf   : > { %9029 = vst [vmem:[#allocation56_spill] sm:$0xff] %v8245_v30  ;;  %v2930_v42 = vadd.f32 %v8034_v56, %v2929_v48  ;;  %6422 = vmatprep.mubr.f32.mxu1 %v3014_v34  ;;  %v3017_v2 = vmax.f32 %v2935_v9, 0.0 }
 0x2c0   : > { %v8248_v47 = vpop.f32.mrf.mxu1  ;;  %v6302_v4 = vpop.f32.mrf.mxu0  ;;  %6423 = vmatmul.mubr.f32.gmra.mxu1 %v3015_v59 }
 0x2c1   : > { %9030 = vst [vmem:[#allocation57_spill] sm:$0xff] %v8248_v47  ;;  %v3016_v20 = vmax.f32 %v2930_v42, 0.0  ;;  %v2945_v63 = vadd.f32 %v6302_v4, %v8034_v56  ;;  %v8260_v42 = vld [vmem:[#allocation8 + $0x3] ss:$0 sm:$0xff] }
 0x2c2   : > { %v8251_v44 = vpop.f32.mrf.mxu1  ;;  %v2939_v10 = vpop.f32.mrf.mxu0 }
 0x2c3   : > { %9031 = vst [vmem:[#allocation58_spill] sm:$0xff] %v8251_v44  ;;  %v2940_v11 = vadd.f32 %v8034_v56, %v2939_v10  ;;  %6425 = vmatprep.mubr.f32.mxu1 %v3016_v20  ;;  %v3019_v34 = vmax.f32 %v2945_v63, 0.0 }
 0x2c4   : > { %v8254_v14 = vpop.f32.mrf.mxu1  ;;  %v6305_v46 = vpop.f32.mrf.mxu0  ;;  %6426 = vmatmul.mubr.f32.gmra.mxu1 %v3017_v2 }
 0x2c5   : > { %9032 = vst [vmem:[#allocation59_spill] sm:$0xff] %v8254_v14  ;;  %v3018_v48 = vmax.f32 %v2940_v11, 0.0  ;;  %v2955_v47 = vadd.f32 %v6305_v46, %v8034_v56 }
 0x2c6   : > { %v8257_v30 = vpop.f32.mrf.mxu1  ;;  %v2949_v59 = vpop.f32.mrf.mxu0 }
 0x2c7   : > { %9033 = vst [vmem:[#allocation60_spill] sm:$0xff] %v8257_v30  ;;  %v2950_v9 = vadd.f32 %v8034_v56, %v2949_v59  ;;  %6428 = vmatprep.mubr.f32.mxu1 %v3018_v48  ;;  %v3021_v14 = vmax.f32 %v2955_v47, 0.0 }
 0x2c8   : > { %v8262_v4 = vpop.f32.mrf.mxu1  ;;  %6429 = vmatmul.mubr.f32.gmra.mxu1 %v3019_v34  ;;  %v6468_v20 = vpop.f32.mrf.mxu0 }
 0x2c9   : > { %9034 = vst [vmem:[#allocation61_spill] sm:$0xff] %v8262_v4  ;;  %v3020_v10 = vmax.f32 %v2950_v9, 0.0  ;;  %v3713_v2 = vadd.f32 %v6468_v20, %v8260_v42 }
 0x2ca   : > { %v8265_v11 = vpop.f32.mrf.mxu1  ;;  %v3707_v63 = vpop.f32.mrf.mxu0 }
 0x2cb   : > { %9035 = vst [vmem:[#allocation62_spill] sm:$0xff] %v8265_v11  ;;  %v3708_v46 = vadd.f32 %v8260_v42, %v3707_v63  ;;  %6431 = vmatprep.mubr.f32.mxu1 %v3020_v10  ;;  %v4027_v59 = vmax.f32 %v3713_v2, 0.0 }
 0x2cc   : > { %v8268_v30 = vpop.f32.mrf.mxu1  ;;  %6432 = vmatmul.mubr.f32.gmra.mxu1 %v3021_v14  ;;  %v6471_v56 = vpop.f32.mrf.mxu0 }
 0x2cd   : > { %9036 = vst [vmem:[#allocation63_spill] sm:$0xff] %v8268_v30  ;;  %v4026_v48 = vmax.f32 %v3708_v46, 0.0  ;;  %v3723_v4 = vadd.f32 %v6471_v56, %v8260_v42 }
 0x2ce   : > { %v8271_v34 = vpop.f32.mrf.mxu1  ;;  %v3717_v9 = vpop.f32.mrf.mxu0 }
 0x2cf   : > { %9037 = vst [vmem:[#allocation64_spill] sm:$0xff] %v8271_v34  ;;  %v3718_v47 = vadd.f32 %v8260_v42, %v3717_v9  ;;  %6594 = vmatprep.mubr.f32.mxu1 %v4026_v48  ;;  %v4029_v10 = vmax.f32 %v3723_v4, 0.0 }
 0x2d0   : > { %v8274_v20 = vpop.f32.mrf.mxu1  ;;  %v6474_v11 = vpop.f32.mrf.mxu0  ;;  %6595 = vmatmul.mubr.f32.vlgmr.msra.gmra.mxu1 %v4027_v59 }
 0x2d1   : > { %9038 = vst [vmem:[#allocation65_spill] sm:$0xff] %v8274_v20  ;;  %v4028_v63 = vmax.f32 %v3718_v47, 0.0  ;;  %v3733_v30 = vadd.f32 %v6474_v11, %v8260_v42 }
 0x2d2   : > { %v8277_v14 = vpop.f32.mrf.mxu1  ;;  %v3727_v46 = vpop.f32.mrf.mxu0 }
 0x2d3   : > { %9039 = vst [vmem:[#allocation66_spill] sm:$0xff] %v8277_v14  ;;  %v3728_v2 = vadd.f32 %v8260_v42, %v3727_v46  ;;  %6597 = vmatprep.mubr.f32.mxu1 %v4028_v63  ;;  %v4031_v48 = vmax.f32 %v3733_v30, 0.0 }
 0x2d4   : > { %v8280_v56 = vpop.f32.mrf.mxu1  ;;  %v6477_v34 = vpop.f32.mrf.mxu0  ;;  %6598 = vmatmul.mubr.f32.gmra.mxu1 %v4029_v10 }
 0x2d5   : > { %9040 = vst [vmem:[#allocation67_spill] sm:$0xff] %v8280_v56  ;;  %v4030_v9 = vmax.f32 %v3728_v2, 0.0  ;;  %v3743_v20 = vadd.f32 %v6477_v34, %v8260_v42 }
 0x2d6   : > { %v8283_v44 = vpop.f32.mrf.mxu1  ;;  %v3737_v59 = vpop.f32.mrf.mxu0 }
 0x2d7   : > { %9041 = vst [vmem:[#allocation68_spill] sm:$0xff] %v8283_v44  ;;  %v3738_v4 = vadd.f32 %v8260_v42, %v3737_v59  ;;  %6600 = vmatprep.mubr.f32.mxu1 %v4030_v9  ;;  %v4033_v63 = vmax.f32 %v3743_v20, 0.0 }
 0x2d8   : > { %v8286_v11 = vpop.f32.mrf.mxu1  ;;  %v6480_v47 = vpop.f32.mrf.mxu0  ;;  %6601 = vmatmul.mubr.f32.gmra.mxu1 %v4031_v48 }
 0x2d9   : > { %9042 = vst [vmem:[#allocation69_spill] sm:$0xff] %v8286_v11  ;;  %v4032_v46 = vmax.f32 %v3738_v4, 0.0  ;;  %v3753_v56 = vadd.f32 %v6480_v47, %v8260_v42 }
 0x2da   : > { %v8289_v14 = vpop.f32.mrf.mxu1  ;;  %v3747_v10 = vpop.f32.mrf.mxu0 }
 0x2db   : > { %9043 = vst [vmem:[#allocation70_spill] sm:$0xff] %v8289_v14  ;;  %v3748_v30 = vadd.f32 %v8260_v42, %v3747_v10  ;;  %6603 = vmatprep.mubr.f32.mxu1 %v4032_v46  ;;  %v4035_v9 = vmax.f32 %v3753_v56, 0.0 }
 0x2dc   : > { %v8292_v34 = vpop.f32.mrf.mxu1  ;;  %v6483_v2 = vpop.f32.mrf.mxu0  ;;  %6604 = vmatmul.mubr.f32.gmra.mxu1 %v4033_v63 }
 0x2dd   : > { %9044 = vst [vmem:[#allocation71_spill] sm:$0xff] %v8292_v34  ;;  %v4034_v59 = vmax.f32 %v3748_v30, 0.0  ;;  %v3763_v11 = vadd.f32 %v6483_v2, %v8260_v42 }
 0x2de   : > { %v8295_v44 = vpop.f32.mrf.mxu1  ;;  %v3757_v48 = vpop.f32.mrf.mxu0 }
 0x2df   : > { %9045 = vst [vmem:[#allocation72_spill] sm:$0xff] %v8295_v44  ;;  %v3758_v20 = vadd.f32 %v8260_v42, %v3757_v48  ;;  %6606 = vmatprep.mubr.f32.mxu1 %v4034_v59  ;;  %v4037_v46 = vmax.f32 %v3763_v11, 0.0 }
 0x2e0   : > { %v8298_v4 = vpop.f32.mrf.mxu1  ;;  %v6486_v47 = vpop.f32.mrf.mxu0  ;;  %6607 = vmatmul.mubr.f32.gmra.mxu1 %v4035_v9 }
 0x2e1   : > { %9046 = vst [vmem:[#allocation73_spill] sm:$0xff] %v8298_v4  ;;  %v4036_v10 = vmax.f32 %v3758_v20, 0.0  ;;  %v3773_v34 = vadd.f32 %v6486_v47, %v8260_v42 }
 0x2e2   : > { %v8301_v14 = vpop.f32.mrf.mxu1  ;;  %v3767_v63 = vpop.f32.mrf.mxu0 }
 0x2e3   : > { %9047 = vst [vmem:[#allocation74_spill] sm:$0xff] %v8301_v14  ;;  %v3768_v56 = vadd.f32 %v8260_v42, %v3767_v63  ;;  %6609 = vmatprep.mubr.f32.mxu1 %v4036_v10  ;;  %v4039_v59 = vmax.f32 %v3773_v34, 0.0 }
 0x2e4   : > { %v8304_v30 = vpop.f32.mrf.mxu1  ;;  %v6489_v2 = vpop.f32.mrf.mxu0  ;;  %6610 = vmatmul.mubr.f32.gmra.mxu1 %v4037_v46 }
 0x2e5   : > { %9048 = vst [vmem:[#allocation75_spill] sm:$0xff] %v8304_v30  ;;  %v4038_v48 = vmax.f32 %v3768_v56, 0.0  ;;  %v3783_v4 = vadd.f32 %v6489_v2, %v8260_v42 }
 0x2e6   : > { %v8307_v44 = vpop.f32.mrf.mxu1  ;;  %v3777_v9 = vpop.f32.mrf.mxu0 }
 0x2e7   : > { %9049 = vst [vmem:[#allocation76_spill] sm:$0xff] %v8307_v44  ;;  %v3778_v11 = vadd.f32 %v8260_v42, %v3777_v9  ;;  %6612 = vmatprep.mubr.f32.mxu1 %v4038_v48  ;;  %v4041_v10 = vmax.f32 %v3783_v4, 0.0 }
 0x2e8   : > { %v8310_v20 = vpop.f32.mrf.mxu1  ;;  %v6492_v47 = vpop.f32.mrf.mxu0  ;;  %6613 = vmatmul.mubr.f32.gmra.mxu1 %v4039_v59 }
 0x2e9   : > { %9050 = vst [vmem:[#allocation77_spill] sm:$0xff] %v8310_v20  ;;  %v4040_v63 = vmax.f32 %v3778_v11, 0.0  ;;  %v3793_v30 = vadd.f32 %v6492_v47, %v8260_v42 }
 0x2ea   : > { %v8313_v14 = vpop.f32.mrf.mxu1  ;;  %v3787_v46 = vpop.f32.mrf.mxu0 }
 0x2eb   : > { %9051 = vst [vmem:[#allocation78_spill] sm:$0xff] %v8313_v14  ;;  %v3788_v34 = vadd.f32 %v8260_v42, %v3787_v46  ;;  %6615 = vmatprep.mubr.f32.mxu1 %v4040_v63  ;;  %v4043_v48 = vmax.f32 %v3793_v30, 0.0 }
 0x2ec   : > { %v8316_v56 = vpop.f32.mrf.mxu1  ;;  %v6495_v2 = vpop.f32.mrf.mxu0  ;;  %6616 = vmatmul.mubr.f32.gmra.mxu1 %v4041_v10 }
 0x2ed   : > { %9052 = vst [vmem:[#allocation79_spill] sm:$0xff] %v8316_v56  ;;  %v4042_v9 = vmax.f32 %v3788_v34, 0.0  ;;  %v3803_v20 = vadd.f32 %v6495_v2, %v8260_v42 }
 0x2ee   : > { %v8319_v44 = vpop.f32.mrf.mxu1  ;;  %v3797_v59 = vpop.f32.mrf.mxu0 }
 0x2ef   : > { %9053 = vst [vmem:[#allocation80_spill] sm:$0xff] %v8319_v44  ;;  %v3798_v4 = vadd.f32 %v8260_v42, %v3797_v59  ;;  %6618 = vmatprep.mubr.f32.mxu1 %v4042_v9  ;;  %v4045_v63 = vmax.f32 %v3803_v20, 0.0 }
 0x2f0   : > { %v8322_v11 = vpop.f32.mrf.mxu1  ;;  %v6498_v47 = vpop.f32.mrf.mxu0  ;;  %6619 = vmatmul.mubr.f32.gmra.mxu1 %v4043_v48 }
 0x2f1   : > { %9054 = vst [vmem:[#allocation81_spill] sm:$0xff] %v8322_v11  ;;  %v4044_v46 = vmax.f32 %v3798_v4, 0.0  ;;  %v3813_v56 = vadd.f32 %v6498_v47, %v8260_v42 }
 0x2f2   : > { %v8325_v14 = vpop.f32.mrf.mxu1  ;;  %v3807_v10 = vpop.f32.mrf.mxu0 }
 0x2f3   : > { %9055 = vst [vmem:[#allocation82_spill] sm:$0xff] %v8325_v14  ;;  %v3808_v30 = vadd.f32 %v8260_v42, %v3807_v10  ;;  %6621 = vmatprep.mubr.f32.mxu1 %v4044_v46  ;;  %v4047_v9 = vmax.f32 %v3813_v56, 0.0 }
 0x2f4   : > { %v8328_v34 = vpop.f32.mrf.mxu1  ;;  %v6501_v2 = vpop.f32.mrf.mxu0  ;;  %6622 = vmatmul.mubr.f32.gmra.mxu1 %v4045_v63 }
 0x2f5   : > { %9056 = vst [vmem:[#allocation83_spill] sm:$0xff] %v8328_v34  ;;  %v4046_v59 = vmax.f32 %v3808_v30, 0.0  ;;  %v3823_v11 = vadd.f32 %v6501_v2, %v8260_v42 }
 0x2f6   : > { %v8331_v44 = vpop.f32.mrf.mxu1  ;;  %v3817_v48 = vpop.f32.mrf.mxu0 }
 0x2f7   : > { %9057 = vst [vmem:[#allocation84_spill] sm:$0xff] %v8331_v44  ;;  %v3818_v20 = vadd.f32 %v8260_v42, %v3817_v48  ;;  %6624 = vmatprep.mubr.f32.mxu1 %v4046_v59  ;;  %v4049_v46 = vmax.f32 %v3823_v11, 0.0 }
 0x2f8   : > { %v8334_v4 = vpop.f32.mrf.mxu1  ;;  %v6504_v47 = vpop.f32.mrf.mxu0  ;;  %6625 = vmatmul.mubr.f32.gmra.mxu1 %v4047_v9 }
 0x2f9   : > { %9058 = vst [vmem:[#allocation85_spill] sm:$0xff] %v8334_v4  ;;  %v4048_v10 = vmax.f32 %v3818_v20, 0.0  ;;  %v3833_v34 = vadd.f32 %v6504_v47, %v8260_v42 }
 0x2fa   : > { %v8337_v14 = vpop.f32.mrf.mxu1  ;;  %v3827_v63 = vpop.f32.mrf.mxu0 }
 0x2fb   : > { %9059 = vst [vmem:[#allocation86_spill] sm:$0xff] %v8337_v14  ;;  %v3828_v56 = vadd.f32 %v8260_v42, %v3827_v63  ;;  %6627 = vmatprep.mubr.f32.mxu1 %v4048_v10  ;;  %v4051_v59 = vmax.f32 %v3833_v34, 0.0 }
 0x2fc   : > { %v8340_v30 = vpop.f32.mrf.mxu1  ;;  %v6507_v2 = vpop.f32.mrf.mxu0  ;;  %6628 = vmatmul.mubr.f32.gmra.mxu1 %v4049_v46 }
 0x2fd   : > { %9060 = vst [vmem:[#allocation87_spill] sm:$0xff] %v8340_v30  ;;  %v4050_v48 = vmax.f32 %v3828_v56, 0.0  ;;  %v3843_v4 = vadd.f32 %v6507_v2, %v8260_v42 }
 0x2fe   : > { %v8343_v44 = vpop.f32.mrf.mxu1  ;;  %v3837_v9 = vpop.f32.mrf.mxu0 }
 0x2ff   : > { %9061 = vst [vmem:[#allocation88_spill] sm:$0xff] %v8343_v44  ;;  %v3838_v11 = vadd.f32 %v8260_v42, %v3837_v9  ;;  %6630 = vmatprep.mubr.f32.mxu1 %v4050_v48  ;;  %v4053_v10 = vmax.f32 %v3843_v4, 0.0 }
 0x300   : > { %v8346_v20 = vpop.f32.mrf.mxu1  ;;  %v6510_v47 = vpop.f32.mrf.mxu0  ;;  %6631 = vmatmul.mubr.f32.gmra.mxu1 %v4051_v59 }
 0x301   : > { %9062 = vst [vmem:[#allocation89_spill] sm:$0xff] %v8346_v20  ;;  %v4052_v63 = vmax.f32 %v3838_v11, 0.0  ;;  %v3853_v30 = vadd.f32 %v6510_v47, %v8260_v42 }
 0x302   : > { %v8349_v14 = vpop.f32.mrf.mxu1  ;;  %v3847_v46 = vpop.f32.mrf.mxu0 }
 0x303   : > { %9063 = vst [vmem:[#allocation90_spill] sm:$0xff] %v8349_v14  ;;  %v3848_v34 = vadd.f32 %v8260_v42, %v3847_v46  ;;  %6633 = vmatprep.mubr.f32.mxu1 %v4052_v63  ;;  %v4055_v48 = vmax.f32 %v3853_v30, 0.0 }
 0x304   : > { %v8352_v56 = vpop.f32.mrf.mxu1  ;;  %v6513_v2 = vpop.f32.mrf.mxu0  ;;  %6634 = vmatmul.mubr.f32.gmra.mxu1 %v4053_v10 }
 0x305   : > { %9064 = vst [vmem:[#allocation91_spill] sm:$0xff] %v8352_v56  ;;  %v4054_v9 = vmax.f32 %v3848_v34, 0.0  ;;  %v3863_v20 = vadd.f32 %v6513_v2, %v8260_v42 }
 0x306   : > { %v8355_v44 = vpop.f32.mrf.mxu1  ;;  %v3857_v59 = vpop.f32.mrf.mxu0 }
 0x307   : > { %9065 = vst [vmem:[#allocation92_spill] sm:$0xff] %v8355_v44  ;;  %v3858_v4 = vadd.f32 %v8260_v42, %v3857_v59  ;;  %6636 = vmatprep.mubr.f32.mxu1 %v4054_v9  ;;  %v4057_v63 = vmax.f32 %v3863_v20, 0.0  ;;  %v2421_v20 = vadd.f32 %v8176_v39, %v7922_v50  ;;  %v2423_v50 = vadd.f32 %v8182_v15, %v7930_v61 }
 0x308   : > { %v8358_v11 = vpop.f32.mrf.mxu1  ;;  %v6516_v47 = vpop.f32.mrf.mxu0  ;;  %6637 = vmatmul.mubr.f32.gmra.mxu1 %v4055_v48  ;;  %v2425_v61 = vadd.f32 %v8188_v17, %v7938_v57  ;;  %v2427_v57 = vadd.f32 %v8194_v37, %v7946_v52  ;;  %v2429_v52 = vadd.f32 %v8200_v21, %v7954_v13  ;;  %v2431_v13 = vadd.f32 %v8206_v40, %v7962_v38 }
 0x309   : > { %9066 = vst [vmem:[#allocation93_spill] sm:$0xff] %v8358_v11  ;;  %v4056_v46 = vmax.f32 %v3858_v4, 0.0  ;;  %v3873_v56 = vadd.f32 %v6516_v47, %v8260_v42  ;;  %v2433_v38 = vadd.f32 %v8212_v23, %v7970_v19  ;;  %v2435_v19 = vadd.f32 %v8218_v35, %v7978_v33 }
 0x30a   : > { %v8361_v14 = vpop.f32.mrf.mxu1  ;;  %v3867_v10 = vpop.f32.mrf.mxu0  ;;  %v2437_v33 = vadd.f32 %v8224_v24, %v7986_v49  ;;  %v2439_v49 = vadd.f32 %v8230_v53, %v7994_v60  ;;  %v2441_v60 = vadd.f32 %v8236_v45, %v8002_v16  ;;  %v2443_v16 = vadd.f32 %v8242_v5, %v8010_v26  ;;  %v9070_v26 = vld [vmem:[#allocation30_spill] sm:$0xff]  ;;  %v9071_v5 = vld [vmem:[#allocation57_spill] sm:$0xff] }
 0x30b   : > { %v3868_v30 = vadd.f32 %v8260_v42, %v3867_v10  ;;  %6639 = vmatprep.mubr.f32.mxu1 %v4056_v46  ;;  %v4059_v9 = vmax.f32 %v3873_v56, 0.0  ;;  %v2420_v46 = vadd.f32 %v8179_v0, %v7927_v62  ;;  %v2422_v62 = vadd.f32 %v8185_v29, %v7935_v25 }
 0x30c   : > { %v8364_v34 = vpop.f32.mrf.mxu1  ;;  %v6519_v2 = vpop.f32.mrf.mxu0  ;;  %6640 = vmatmul.mubr.f32.gmra.mxu1 %v4057_v63  ;;  %v2424_v25 = vadd.f32 %v8191_v12, %v7943_v6  ;;  %v2426_v6 = vadd.f32 %v8197_v28, %v7951_v3  ;;  %v2428_v3 = vadd.f32 %v8203_v32, %v7959_v54  ;;  %v2430_v54 = vadd.f32 %v8209_v1, %v7967_v41 }
 0x30d   : > { %9067 = vst [vmem:[#allocation94_spill] sm:$0xff] %v8364_v34  ;;  %v4058_v59 = vmax.f32 %v3868_v30, 0.0  ;;  %v3883_v11 = vadd.f32 %v6519_v2, %v8260_v42  ;;  %v2432_v41 = vadd.f32 %v8215_v18, %v7975_v36  ;;  %v2434_v36 = vadd.f32 %v8221_v55, %v7983_v22 }
 0x30e   : > { %v8367_v44 = vpop.f32.mrf.mxu1  ;;  %v3877_v48 = vpop.f32.mrf.mxu0  ;;  %v2436_v22 = vadd.f32 %v8227_v58, %v7991_v43  ;;  %v2438_v43 = vadd.f32 %v8233_v7, %v7999_v51  ;;  %v2440_v51 = vadd.f32 %v8239_v27, %v8007_v31  ;;  %v9069_v31 = vld [vmem:[#allocation56_spill] sm:$0xff] }
 0x30f   : > { %9068 = vst [vmem:[#allocation95_spill] sm:$0xff] %v8367_v44  ;;  %v3878_v4 = vadd.f32 %v8260_v42, %v3877_v48  ;;  %6642 = vmatprep.mubr.f32.mxu1 %v4058_v59  ;;  %v4061_v56 = vmax.f32 %v3883_v11, 0.0  ;;  %v2442_v27 = vadd.f32 %v9069_v31, %v8015_v8  ;;  %v9072_v8 = vld [vmem:[#allocation31_spill] sm:$0xff]  ;;  %v9078_v31 = vld [vmem:[#allocation34_spill] sm:$0xff] }
 0x310   : > { %v6340_v47 = vpop.f32.mrf.mxu1  ;;  %v6522_v10 = vpop.f32.mrf.mxu0  ;;  %6643 = vmatmul.mubr.f32.gmra.mxu1 %v4059_v9 }
 0x311   : > { %v4060_v63 = vmax.f32 %v3878_v4, 0.0  ;;  %v8374_v30 = vadd.f32 %v6340_v47, %v2421_v20  ;;  %v3893_v2 = vadd.f32 %v6522_v10, %v8260_v42 }
 0x312   : > { %v3169_v44 = vpop.f32.mrf.mxu1  ;;  %v3887_v34 = vpop.f32.mrf.mxu0 }
 0x313   : > { %v8379_v39 = vadd.f32 %v3169_v44, %v2420_v46  ;;  %v3888_v59 = vadd.f32 %v8260_v42, %v3887_v34  ;;  %6645 = vmatprep.mubr.f32.mxu1 %v4060_v63  ;;  %v4063_v20 = vmax.f32 %v3893_v2, 0.0 }
 0x314   : > { %v6343_v9 = vpop.f32.mrf.mxu1  ;;  %v6525_v48 = vpop.f32.mrf.mxu0  ;;  %6646 = vmatmul.mubr.f32.gmra.mxu1 %v4061_v56 }
 0x315   : > { %v4062_v0 = vmax.f32 %v3888_v59, 0.0  ;;  %v8384_v11 = vadd.f32 %v6343_v9, %v2423_v50  ;;  %v3903_v4 = vadd.f32 %v6525_v48, %v8260_v42 }
 0x316   : > { %v3179_v47 = vpop.f32.mrf.mxu1  ;;  %v3897_v10 = vpop.f32.mrf.mxu0 }
 0x317   : > { %v8389_v44 = vadd.f32 %v3179_v47, %v2422_v62  ;;  %v3898_v15 = vadd.f32 %v8260_v42, %v3897_v10  ;;  %6648 = vmatprep.mubr.f32.mxu1 %v4062_v0  ;;  %v4065_v56 = vmax.f32 %v3903_v4, 0.0 }
 0x318   : > { %v6346_v34 = vpop.f32.mrf.mxu1  ;;  %v6528_v46 = vpop.f32.mrf.mxu0  ;;  %6649 = vmatmul.mubr.f32.gmra.mxu1 %v4063_v20 }
 0x319   : > { %v4064_v29 = vmax.f32 %v3898_v15, 0.0  ;;  %v8394_v63 = vadd.f32 %v6346_v34, %v2425_v61  ;;  %v3913_v2 = vadd.f32 %v6528_v46, %v8260_v42 }
 0x31a   : > { %v3189_v50 = vpop.f32.mrf.mxu1  ;;  %v3907_v59 = vpop.f32.mrf.mxu0 }
 0x31b   : > { %v8399_v17 = vadd.f32 %v3189_v50, %v2424_v25  ;;  %v3908_v9 = vadd.f32 %v8260_v42, %v3907_v59  ;;  %6651 = vmatprep.mubr.f32.mxu1 %v4064_v29  ;;  %v4067_v20 = vmax.f32 %v3913_v2, 0.0 }
 0x31c   : > { %v6349_v48 = vpop.f32.mrf.mxu1  ;;  %v6531_v62 = vpop.f32.mrf.mxu0  ;;  %6652 = vmatmul.mubr.f32.gmra.mxu1 %v4065_v56 }
 0x31d   : > { %v4066_v12 = vmax.f32 %v3908_v9, 0.0  ;;  %v8404_v0 = vadd.f32 %v6349_v48, %v2427_v57  ;;  %v3923_v4 = vadd.f32 %v6531_v62, %v8260_v42 }
 0x31e   : > { %v3199_v47 = vpop.f32.mrf.mxu1  ;;  %v3917_v10 = vpop.f32.mrf.mxu0 }
 0x31f   : > { %v8409_v37 = vadd.f32 %v3199_v47, %v2426_v6  ;;  %v3918_v61 = vadd.f32 %v8260_v42, %v3917_v10  ;;  %6654 = vmatprep.mubr.f32.mxu1 %v4066_v12  ;;  %v4069_v25 = vmax.f32 %v3923_v4, 0.0 }
 0x320   : > { %v6352_v15 = vpop.f32.mrf.mxu1  ;;  %v6534_v34 = vpop.f32.mrf.mxu0  ;;  %6655 = vmatmul.mubr.f32.gmra.mxu1 %v4067_v20 }
 0x321   : > { %v4068_v28 = vmax.f32 %v3918_v61, 0.0  ;;  %v8414_v46 = vadd.f32 %v6352_v15, %v2429_v52  ;;  %v3933_v29 = vadd.f32 %v6534_v34, %v8260_v42 }
 0x322   : > { %v3209_v56 = vpop.f32.mrf.mxu1  ;;  %v3927_v2 = vpop.f32.mrf.mxu0 }
 0x323   : > { %v8419_v21 = vadd.f32 %v3209_v56, %v2428_v3  ;;  %v3928_v50 = vadd.f32 %v8260_v42, %v3927_v2  ;;  %6657 = vmatprep.mubr.f32.mxu1 %v4068_v28  ;;  %v4071_v48 = vmax.f32 %v3933_v29, 0.0 }
 0x324   : > { %v6355_v59 = vpop.f32.mrf.mxu1  ;;  %v6537_v57 = vpop.f32.mrf.mxu0  ;;  %6658 = vmatmul.mubr.f32.gmra.mxu1 %v4069_v25 }
 0x325   : > { %v4070_v32 = vmax.f32 %v3928_v50, 0.0  ;;  %v8424_v9 = vadd.f32 %v6355_v59, %v2431_v13  ;;  %v3943_v62 = vadd.f32 %v6537_v57, %v8260_v42 }
 0x326   : > { %v3219_v6 = vpop.f32.mrf.mxu1  ;;  %v3937_v12 = vpop.f32.mrf.mxu0 }
 0x327   : > { %v8429_v40 = vadd.f32 %v3219_v6, %v2430_v54  ;;  %v3938_v20 = vadd.f32 %v8260_v42, %v3937_v12  ;;  %6660 = vmatprep.mubr.f32.mxu1 %v4070_v32  ;;  %v4073_v52 = vmax.f32 %v3943_v62, 0.0 }
 0x328   : > { %v6358_v4 = vpop.f32.mrf.mxu1  ;;  %v6540_v47 = vpop.f32.mrf.mxu0  ;;  %6661 = vmatmul.mubr.f32.gmra.mxu1 %v4071_v48 }
 0x329   : > { %v4072_v1 = vmax.f32 %v3938_v20, 0.0  ;;  %v8434_v10 = vadd.f32 %v6358_v4, %v2433_v38  ;;  %v3953_v61 = vadd.f32 %v6540_v47, %v8260_v42 }
 0x32a   : > { %v3229_v15 = vpop.f32.mrf.mxu1  ;;  %v3947_v34 = vpop.f32.mrf.mxu0 }
 0x32b   : > { %v8439_v23 = vadd.f32 %v3229_v15, %v2432_v41  ;;  %v3948_v3 = vadd.f32 %v8260_v42, %v3947_v34  ;;  %6663 = vmatprep.mubr.f32.mxu1 %v4072_v1  ;;  %v4075_v56 = vmax.f32 %v3953_v61, 0.0 }
 0x32c   : > { %v6361_v28 = vpop.f32.mrf.mxu1  ;;  %v6543_v25 = vpop.f32.mrf.mxu0  ;;  %6664 = vmatmul.mubr.f32.gmra.mxu1 %v4073_v52 }
 0x32d   : > { %v4074_v18 = vmax.f32 %v3948_v3, 0.0  ;;  %v8444_v29 = vadd.f32 %v6361_v28, %v2435_v19  ;;  %v3963_v2 = vadd.f32 %v6543_v25, %v8260_v42 }
 0x32e   : > { %v3239_v13 = vpop.f32.mrf.mxu1  ;;  %v3957_v50 = vpop.f32.mrf.mxu0 }
 0x32f   : > { %v8449_v35 = vadd.f32 %v3239_v13, %v2434_v36  ;;  %v3958_v59 = vadd.f32 %v8260_v42, %v3957_v50  ;;  %6666 = vmatprep.mubr.f32.mxu1 %v4074_v18  ;;  %v4077_v48 = vmax.f32 %v3963_v2, 0.0 }
 0x330   : > { %v6364_v57 = vpop.f32.mrf.mxu1  ;;  %v6546_v54 = vpop.f32.mrf.mxu0  ;;  %6667 = vmatmul.mubr.f32.gmra.mxu1 %v4075_v56 }
 0x331   : > { %v4076_v55 = vmax.f32 %v3958_v59, 0.0  ;;  %v8454_v32 = vadd.f32 %v6364_v57, %v2437_v33  ;;  %v3973_v62 = vadd.f32 %v6546_v54, %v8260_v42 }
 0x332   : > { %v3249_v6 = vpop.f32.mrf.mxu1  ;;  %v3967_v12 = vpop.f32.mrf.mxu0 }
 0x333   : > { %v8459_v24 = vadd.f32 %v3249_v6, %v2436_v22  ;;  %v3968_v38 = vadd.f32 %v8260_v42, %v3967_v12  ;;  %6669 = vmatprep.mubr.f32.mxu1 %v4076_v55  ;;  %v4079_v41 = vmax.f32 %v3973_v62, 0.0  ;;  %v2445_v55 = vadd.f32 %v9071_v5, %v9070_v26  ;;  %v9081_v26 = vld [vmem:[#allocation62_spill] sm:$0xff] }
 0x334   : > { %v6367_v20 = vpop.f32.mrf.mxu1  ;;  %v6549_v4 = vpop.f32.mrf.mxu0  ;;  %6670 = vmatmul.mubr.f32.gmra.mxu1 %v4077_v48 }
 0x335   : > { %v4078_v58 = vmax.f32 %v3968_v38, 0.0  ;;  %v8464_v47 = vadd.f32 %v6367_v20, %v2439_v49  ;;  %v3983_v1 = vadd.f32 %v6549_v4, %v8260_v42  ;;  %v9073_v49 = vld [vmem:[#allocation58_spill] sm:$0xff] }
 0x336   : > { %v3259_v52 = vpop.f32.mrf.mxu1  ;;  %v3977_v61 = vpop.f32.mrf.mxu0  ;;  %v2444_v38 = vadd.f32 %v9073_v49, %v9072_v8  ;;  %v9082_v8 = vld [vmem:[#allocation36_spill] sm:$0xff]  ;;  %v9083_v49 = vld [vmem:[#allocation63_spill] sm:$0xff] }
 0x337   : > { %v8469_v53 = vadd.f32 %v3259_v52, %v2438_v43  ;;  %v3978_v15 = vadd.f32 %v8260_v42, %v3977_v61  ;;  %6672 = vmatprep.mubr.f32.mxu1 %v4078_v58  ;;  %v4081_v28 = vmax.f32 %v3983_v1, 0.0  ;;  %v9074_v52 = vld [vmem:[#allocation32_spill] sm:$0xff]  ;;  %v9075_v61 = vld [vmem:[#allocation59_spill] sm:$0xff] }
 0x338   : > { %v6370_v34 = vpop.f32.mrf.mxu1  ;;  %v6552_v19 = vpop.f32.mrf.mxu0  ;;  %6673 = vmatmul.mubr.f32.gmra.mxu1 %v4079_v41 }
 0x339   : > { %v4080_v7 = vmax.f32 %v3978_v15, 0.0  ;;  %v8474_v3 = vadd.f32 %v6370_v34, %v2441_v60  ;;  %v3993_v25 = vadd.f32 %v6552_v19, %v8260_v42  ;;  %v2447_v60 = vadd.f32 %v9075_v61, %v9074_v52  ;;  %v9086_v61 = vld [vmem:[#allocation38_spill] sm:$0xff] }
 0x33a   : > { %v3269_v36 = vpop.f32.mrf.mxu1  ;;  %v3987_v18 = vpop.f32.mrf.mxu0 }
 0x33b   : > { %v8479_v45 = vadd.f32 %v3269_v36, %v2440_v51  ;;  %v3988_v56 = vadd.f32 %v8260_v42, %v3987_v18  ;;  %6675 = vmatprep.mubr.f32.mxu1 %v4080_v7  ;;  %v4083_v59 = vmax.f32 %v3993_v25, 0.0  ;;  %v9076_v7 = vld [vmem:[#allocation33_spill] sm:$0xff] }
 0x33c   : > { %v6373_v2 = vpop.f32.mrf.mxu1  ;;  %v6555_v13 = vpop.f32.mrf.mxu0  ;;  %6676 = vmatmul.mubr.f32.gmra.mxu1 %v4081_v28  ;;  %v9077_v28 = vld [vmem:[#allocation60_spill] sm:$0xff] }
 0x33d   : > { %v4082_v50 = vmax.f32 %v3988_v56, 0.0  ;;  %v8484_v33 = vadd.f32 %v6373_v2, %v2443_v16  ;;  %v4003_v57 = vadd.f32 %v6555_v13, %v8260_v42  ;;  %v2446_v25 = vadd.f32 %v9077_v28, %v9076_v7  ;;  %v9088_v7 = vld [vmem:[#allocation39_spill] sm:$0xff]  ;;  %v9089_v28 = vld [vmem:[#allocation66_spill] sm:$0xff] }
 0x33e   : > { %v3279_v54 = vpop.f32.mrf.mxu1  ;;  %v3997_v22 = vpop.f32.mrf.mxu0 }
 0x33f   : > { %v8489_v48 = vadd.f32 %v3279_v54, %v2442_v27  ;;  %v3998_v62 = vadd.f32 %v8260_v42, %v3997_v22  ;;  %6678 = vmatprep.mubr.f32.mxu1 %v4082_v50  ;;  %v4085_v43 = vmax.f32 %v4003_v57, 0.0  ;;  %v9079_v27 = vld [vmem:[#allocation61_spill] sm:$0xff]  ;;  %v9080_v22 = vld [vmem:[#allocation35_spill] sm:$0xff] }
 0x340   : > { %v6376_v6 = vpop.f32.mrf.mxu1  ;;  %v6558_v12 = vpop.f32.mrf.mxu0  ;;  %6679 = vmatmul.mubr.f32.gmra.mxu1 %v4083_v59  ;;  %v2449_v50 = vadd.f32 %v9079_v27, %v9078_v31  ;;  %v2448_v5 = vadd.f32 %v9081_v26, %v9080_v22 }
 0x341   : > { %v4084_v20 = vmax.f32 %v3998_v62, 0.0  ;;  %v8494_v4 = vadd.f32 %v6376_v6, %v2445_v55  ;;  %v4013_v58 = vadd.f32 %v6558_v12, %v8260_v42 }
 0x342   : > { %v3289_v41 = vpop.f32.mrf.mxu1  ;;  %v4007_v1 = vpop.f32.mrf.mxu0 }
 0x343   : > { %v8499_v15 = vadd.f32 %v3289_v41, %v2444_v38  ;;  %v4008_v34 = vadd.f32 %v8260_v42, %v4007_v1  ;;  %6681 = vmatprep.mubr.f32.mxu1 %v4084_v20  ;;  %v4087_v16 = vmax.f32 %v4013_v58, 0.0  ;;  %v2451_v38 = vadd.f32 %v9083_v49, %v9082_v8  ;;  %v9085_v58 = vld [vmem:[#allocation64_spill] sm:$0xff]  ;;  %v9096_v49 = vld [vmem:[#allocation43_spill] sm:$0xff] }
 0x344   : > { %v6379_v19 = vpop.f32.mrf.mxu1  ;;  %v6561_v51 = vpop.f32.mrf.mxu0  ;;  %6682 = vmatmul.mubr.f32.gmra.mxu1 %v4085_v43 }
 0x345   : > { %v4086_v36 = vmax.f32 %v4008_v34, 0.0  ;;  %v8504_v18 = vadd.f32 %v6379_v19, %v2447_v60  ;;  %v4023_v56 = vadd.f32 %v6561_v51, %v8260_v42  ;;  %v9087_v60 = vld [vmem:[#allocation65_spill] sm:$0xff] }
 0x346   : > { %v3299_v2 = vpop.f32.mrf.mxu1  ;;  %v4017_v13 = vpop.f32.mrf.mxu0  ;;  %v2453_v34 = vadd.f32 %v9087_v60, %v9086_v61 }
 0x347   : > { %v8509_v59 = vadd.f32 %v3299_v2, %v2446_v25  ;;  %v4018_v57 = vadd.f32 %v8260_v42, %v4017_v13  ;;  %6684 = vmatprep.mubr.f32.mxu1 %v4086_v36  ;;  %v4089_v6 = vmax.f32 %v4023_v56, 0.0  ;;  %v9084_v42 = vld [vmem:[#allocation37_spill] sm:$0xff]  ;;  %v2452_v25 = vadd.f32 %v9089_v28, %v9088_v7  ;;  %v9090_v56 = vld [vmem:[#allocation40_spill] sm:$0xff]  ;;  %v9091_v2 = vld [vmem:[#allocation67_spill] sm:$0xff] }
 0x348   : > { %v6382_v54 = vpop.f32.mrf.mxu1  ;;  %6685 = vmatmul.mubr.f32.gmra.mxu1 %v4087_v16  ;;  %v2450_v41 = vadd.f32 %v9085_v58, %v9084_v42  ;;  %v2455_v13 = vadd.f32 %v9091_v2, %v9090_v56  ;;  %v9101_v7 = vld [vmem:[#allocation72_spill] sm:$0xff]  ;;  %v9102_v56 = vld [vmem:[#allocation46_spill] sm:$0xff]  ;;  %v9103_v2 = vld [vmem:[#allocation73_spill] sm:$0xff] }
 0x349   : > { %v4088_v55 = vmax.f32 %v4018_v57, 0.0  ;;  %v8514_v62 = vadd.f32 %v6382_v54, %v2449_v50  ;;  %v9092_v50 = vld [vmem:[#allocation41_spill] sm:$0xff]  ;;  %v9093_v57 = vld [vmem:[#allocation68_spill] sm:$0xff] }
 0x34a   : > { %v3309_v12 = vpop.f32.mrf.mxu1  ;;  %v2454_v54 = vadd.f32 %v9093_v57, %v9092_v50  ;;  %v9104_v57 = vld [vmem:[#allocation47_spill] sm:$0xff] }
 0x34b   : > { %v8518_v20 = vadd.f32 %v3309_v12, %v2448_v5  ;;  %6687 = vmatprep.mubr.f32.mxu1 %v4088_v55  ;;  %v9094_v5 = vld [vmem:[#allocation42_spill] sm:$0xff]  ;;  %v9095_v55 = vld [vmem:[#allocation69_spill] sm:$0xff] }
 0x34c   : > { %v6385_v43 = vpop.f32.mrf.mxu1  ;;  %6688 = vmatmul.mubr.f32.gmra.mxu1 %v4089_v6  ;;  %v2457_v6 = vadd.f32 %v9095_v55, %v9094_v5 }
 0x34d   : > { %v8522_v1 = vadd.f32 %v6385_v43, %v2451_v38  ;;  %v9097_v38 = vld [vmem:[#allocation70_spill] sm:$0xff] }
 0x34e   : > { %v3319_v52 = vpop.f32.mrf.mxu1  ;;  %v2456_v43 = vadd.f32 %v9097_v38, %v9096_v49 }
 0x34f   : > { %v8526_v19 = vadd.f32 %v3319_v52, %v2450_v41  ;;  %v9098_v41 = vld [vmem:[#allocation44_spill] sm:$0xff]  ;;  %v9099_v52 = vld [vmem:[#allocation71_spill] sm:$0xff] }
 0x350   : > { %v6388_v51 = vpop.f32.mrf.mxu1  ;;  %v2459_v61 = vadd.f32 %v9099_v52, %v9098_v41  ;;  %v9109_v41 = vld [vmem:[#allocation76_spill] sm:$0xff] }
 0x351   : > { %v8530_v36 = vadd.f32 %v6388_v51, %v2453_v34  ;;  %v9100_v51 = vld [vmem:[#allocation45_spill] sm:$0xff] }
 0x352   : > { %v3329_v16 = vpop.f32.mrf.mxu1  ;;  %v2458_v28 = vadd.f32 %v9101_v7, %v9100_v51  ;;  %v9111_v51 = vld [vmem:[#allocation50_spill] sm:$0xff]  ;;  %v9112_v7 = vld [vmem:[#allocation77_spill] sm:$0xff] }
 0x353   : > { %v8534_v31 = vadd.f32 %v3329_v16, %v2452_v25 }
 0x354   : > { %v6391_v27 = vpop.f32.mrf.mxu1 }
 0x355   : > { %v8538_v22 = vadd.f32 %v6391_v27, %v2455_v13  ;;  %v2461_v13 = vadd.f32 %v9103_v2, %v9102_v56  ;;  %v9114_v2 = vld [vmem:[#allocation16_spill] sm:$0xff] }
 0x356   : > { %v3339_v26 = vpop.f32.mrf.mxu1 }
 0x357   : > { %v8542_v12 = vadd.f32 %v3339_v26, %v2454_v54  ;;  %v9105_v54 = vld [vmem:[#allocation74_spill] sm:$0xff] }
 0x358   : > { %v6394_v8 = vpop.f32.mrf.mxu1  ;;  %v2460_v26 = vadd.f32 %v9105_v54, %v9104_v57 }
 0x359   : > { %v8546_v42 = vadd.f32 %v6394_v8, %v2457_v6  ;;  %v9106_v6 = vld [vmem:[#allocation48_spill] sm:$0xff]  ;;  %v9107_v8 = vld [vmem:[#allocation75_spill] sm:$0xff] }
 0x35a   : > { %v3349_v58 = vpop.f32.mrf.mxu1  ;;  %v2463_v49 = vadd.f32 %v9107_v8, %v9106_v6 }
 0x35b   : > { %v8550_v60 = vadd.f32 %v3349_v58, %v2456_v43  ;;  %v9108_v58 = vld [vmem:[#allocation49_spill] sm:$0xff] }
 0x35c   : > { %v6397_v34 = vpop.f32.mrf.mxu1  ;;  %v2462_v52 = vadd.f32 %v9109_v41, %v9108_v58  ;;  %v9121_v58 = vld [vmem:[#allocation80_spill] sm:$0xff] }
 0x35d   : > { %v8554_v25 = vadd.f32 %v6397_v34, %v2459_v61 }
 0x35e   : > { %v3359_v16 = vpop.f32.mrf.mxu1 }
 0x35f   : > { %v8558_v27 = vadd.f32 %v3359_v16, %v2458_v28  ;;  %v2465_v28 = vadd.f32 %v9112_v7, %v9111_v51  ;;  %v9124_v51 = vld [vmem:[#allocation81_spill] sm:$0xff] }
 0x360   : > { %v6400_v50 = vpop.f32.mrf.mxu1 }
 0x361   : > { %v8562_v5 = vadd.f32 %v6400_v50, %v2461_v13  ;;  %v9115_v13 = vld [vmem:[#allocation78_spill] sm:$0xff] }
 0x362   : > { %v3369_v55 = vpop.f32.mrf.mxu1  ;;  %v2464_v50 = vadd.f32 %v9115_v13, %v9114_v2  ;;  %v9127_v2 = vld [vmem:[#allocation82_spill] sm:$0xff] }
 0x363   : > { %v8566_v38 = vadd.f32 %v3369_v55, %v2460_v26  ;;  %v9117_v26 = vld [vmem:[#allocation17_spill] sm:$0xff]  ;;  %v9118_v55 = vld [vmem:[#allocation79_spill] sm:$0xff] }
 0x364   : > { %v6403_v43 = vpop.f32.mrf.mxu1  ;;  %v2467_v6 = vadd.f32 %v9118_v55, %v9117_v26  ;;  %v9130_v26 = vld [vmem:[#allocation83_spill] sm:$0xff] }
 0x365   : > { %v8570_v61 = vadd.f32 %v6403_v43, %v2463_v49  ;;  %v9120_v43 = vld [vmem:[#allocation18_spill] sm:$0xff] }
 0x366   : > { %v3379_v34 = vpop.f32.mrf.mxu1  ;;  %v2466_v41 = vadd.f32 %v9121_v58, %v9120_v43  ;;  %v9133_v43 = vld [vmem:[#allocation84_spill] sm:$0xff] }
 0x367   : > { %9110 = vst [vmem:[#allocation56_spill] sm:$0xff] %v8570_v61  ;;  %v8574_v16 = vadd.f32 %v3379_v34, %v2462_v52  ;;  %v9123_v34 = vld [vmem:[#allocation19_spill] sm:$0xff] }
 0x368   : > { %v6406_v56 = vpop.f32.mrf.mxu1  ;;  %v2469_v7 = vadd.f32 %v9124_v51, %v9123_v34  ;;  %v9136_v34 = vld [vmem:[#allocation85_spill] sm:$0xff] }
 0x369   : > { %9113 = vst [vmem:[#allocation30_spill] sm:$0xff] %v8574_v16  ;;  %v8578_v57 = vadd.f32 %v6406_v56, %v2465_v28  ;;  %v9126_v56 = vld [vmem:[#allocation20_spill] sm:$0xff] }
 0x36a   : > { %v3389_v54 = vpop.f32.mrf.mxu1  ;;  %v2468_v13 = vadd.f32 %v9127_v2, %v9126_v56  ;;  %v9139_v56 = vld [vmem:[#allocation86_spill] sm:$0xff] }
 0x36b   : > { %9116 = vst [vmem:[#allocation57_spill] sm:$0xff] %v8578_v57  ;;  %v8582_v8 = vadd.f32 %v3389_v54, %v2464_v50  ;;  %v9129_v54 = vld [vmem:[#allocation21_spill] sm:$0xff] }
 0x36c   : > { %v6409_v49 = vpop.f32.mrf.mxu1  ;;  %v2471_v55 = vadd.f32 %v9130_v26, %v9129_v54  ;;  %v9142_v54 = vld [vmem:[#allocation87_spill] sm:$0xff] }
 0x36d   : > { %9119 = vst [vmem:[#allocation31_spill] sm:$0xff] %v8582_v8  ;;  %v8586_v61 = vadd.f32 %v6409_v49, %v2467_v6  ;;  %v9132_v49 = vld [vmem:[#allocation22_spill] sm:$0xff] }
 0x36e   : > { %v3399_v52 = vpop.f32.mrf.mxu1  ;;  %v2470_v58 = vadd.f32 %v9133_v43, %v9132_v49  ;;  %v9145_v49 = vld [vmem:[#allocation88_spill] sm:$0xff] }
 0x36f   : > { %9122 = vst [vmem:[#allocation58_spill] sm:$0xff] %v8586_v61  ;;  %v8590_v16 = vadd.f32 %v3399_v52, %v2466_v41  ;;  %v9135_v52 = vld [vmem:[#allocation23_spill] sm:$0xff] }
 0x370   : > { %v6412_v28 = vpop.f32.mrf.mxu1  ;;  %v2473_v51 = vadd.f32 %v9136_v34, %v9135_v52  ;;  %v9148_v52 = vld [vmem:[#allocation89_spill] sm:$0xff] }
 0x371   : > { %9125 = vst [vmem:[#allocation32_spill] sm:$0xff] %v8590_v16  ;;  %v8594_v57 = vadd.f32 %v6412_v28, %v2469_v7  ;;  %v9138_v28 = vld [vmem:[#allocation24_spill] sm:$0xff] }
 0x372   : > { %v3409_v50 = vpop.f32.mrf.mxu1  ;;  %v2472_v2 = vadd.f32 %v9139_v56, %v9138_v28  ;;  %v9151_v28 = vld [vmem:[#allocation90_spill] sm:$0xff] }
 0x373   : > { %9128 = vst [vmem:[#allocation59_spill] sm:$0xff] %v8594_v57  ;;  %v8598_v8 = vadd.f32 %v3409_v50, %v2468_v13  ;;  %v9141_v50 = vld [vmem:[#allocation25_spill] sm:$0xff] }
 0x374   : > { %v6415_v6 = vpop.f32.mrf.mxu1  ;;  %v2475_v26 = vadd.f32 %v9142_v54, %v9141_v50  ;;  %v9153_v50 = vld [vmem:[#allocation91_spill] sm:$0xff] }
 0x375   : > { %9131 = vst [vmem:[#allocation33_spill] sm:$0xff] %v8598_v8  ;;  %v8602_v61 = vadd.f32 %v6415_v6, %v2471_v55  ;;  %v9144_v6 = vld [vmem:[#allocation26_spill] sm:$0xff] }
 0x376   : > { %v3419_v41 = vpop.f32.mrf.mxu1  ;;  %v2474_v43 = vadd.f32 %v9145_v49, %v9144_v6  ;;  %v9155_v6 = vld [vmem:[#allocation92_spill] sm:$0xff] }
 0x377   : > { %9134 = vst [vmem:[#allocation60_spill] sm:$0xff] %v8602_v61  ;;  %v8606_v16 = vadd.f32 %v3419_v41, %v2470_v58  ;;  %v9147_v41 = vld [vmem:[#allocation27_spill] sm:$0xff] }
 0x378   : > { %v6418_v7 = vpop.f32.mrf.mxu1  ;;  %v2477_v34 = vadd.f32 %v9148_v52, %v9147_v41  ;;  %v9158_v41 = vld [vmem:[#allocation93_spill] sm:$0xff] }
 0x379   : > { %9137 = vst [vmem:[#allocation34_spill] sm:$0xff] %v8606_v16  ;;  %v8610_v57 = vadd.f32 %v6418_v7, %v2473_v51  ;;  %v9150_v7 = vld [vmem:[#allocation28_spill] sm:$0xff] }
 0x37a   : > { %v3429_v13 = vpop.f32.mrf.mxu1  ;;  %v2476_v56 = vadd.f32 %v9151_v28, %v9150_v7 }
 0x37b   : > { %9140 = vst [vmem:[#allocation61_spill] sm:$0xff] %v8610_v57  ;;  %v8614_v8 = vadd.f32 %v3429_v13, %v2472_v2  ;;  %v9152_v13 = vld [vmem:[#allocation29_spill] sm:$0xff] }
 0x37c   : > { %v6421_v55 = vpop.f32.mrf.mxu1  ;;  %v2479_v54 = vadd.f32 %v9153_v50, %v9152_v13  ;;  %v9161_v13 = vld [vmem:[#allocation94_spill] sm:$0xff] }
 0x37d   : > { %9143 = vst [vmem:[#allocation35_spill] sm:$0xff] %v8614_v8  ;;  %v8618_v61 = vadd.f32 %v6421_v55, %v2475_v26  ;;  %v9154_v55 = vld [vmem:[#allocation51_spill] sm:$0xff] }
 0x37e   : > { %v3439_v58 = vpop.f32.mrf.mxu1  ;;  %v2478_v49 = vadd.f32 %v9155_v6, %v9154_v55  ;;  %v9163_v6 = vld [vmem:[#allocation95_spill] sm:$0xff] }
 0x37f   : > { %9146 = vst [vmem:[#allocation62_spill] sm:$0xff] %v8618_v61  ;;  %v8622_v16 = vadd.f32 %v3439_v58, %v2474_v43  ;;  %v9157_v58 = vld [vmem:[#allocation52_spill] sm:$0xff] }
 0x380   : > { %v6424_v51 = vpop.f32.mrf.mxu1  ;;  %v2481_v52 = vadd.f32 %v9158_v41, %v9157_v58 }
 0x381   : > { %9149 = vst [vmem:[#allocation36_spill] sm:$0xff] %v8622_v16  ;;  %v8626_v57 = vadd.f32 %v6424_v51, %v2477_v34  ;;  %v9159_v51 = vld [vmem:[#allocation53_spill] sm:$0xff] }
 0x382   : > { %v3449_v2 = vpop.f32.mrf.mxu1  ;;  %v2480_v7 = vadd.f32 %v8361_v14, %v9159_v51  ;;  %v8657_v14 = vld [vmem:[%s8908_s4] ss:$0 sm:$0xff] }
 0x383   : > { %v8630_v8 = vadd.f32 %v3449_v2, %v2476_v56  ;;  %v9160_v2 = vld [vmem:[#allocation54_spill] sm:$0xff] }
 0x384   : > { %v6427_v26 = vpop.f32.mrf.mxu1  ;;  %v2483_v50 = vadd.f32 %v9161_v13, %v9160_v2 }
 0x385   : > { %v8634_v61 = vadd.f32 %v6427_v26, %v2479_v54  ;;  %v9162_v26 = vld [vmem:[#allocation55_spill] sm:$0xff] }
 0x386   : > { %v3459_v43 = vpop.f32.mrf.mxu1 }
 0x387   : > { %9156 = vst [vmem:[#allocation63_spill] sm:$0xff] %v8634_v61  ;;  %v8638_v16 = vadd.f32 %v3459_v43, %v2478_v49  ;;  %v2482_v61 = vadd.f32 %v9163_v6, %v9162_v26 }
 0x388   : > { %v6430_v34 = vpop.f32.mrf.mxu1 }
 0x389   : > { %v8642_v28 = vadd.f32 %v6430_v34, %v2481_v52 }
 0x38a   : > { %v3469_v56 = vpop.f32.mrf.mxu1 }
 0x38b   : > { %v8646_v55 = vadd.f32 %v3469_v56, %v2480_v7 }
 0x38c   : > { %v6433_v54 = vpop.f32.mrf.mxu1 }
 0x38d   : > { %v8650_v58 = vadd.f32 %v6433_v54, %v2483_v50 }
 0x38e   : > { %v3479_v49 = vpop.f32.mrf.mxu1 }
 0x38f   : > { %v8652_v43 = vadd.f32 %v3479_v49, %v2482_v61 }
 0x390   : > { %v6596_v41 = vpop.f32.mrf.mxu1 }
 0x391   : > { %v4557_v52 = vadd.f32 %v6596_v41, %v8374_v30 }
 0x392   : > { %v4237_v34 = vpop.f32.mrf.mxu1 }
 0x393   : > { %v4756_v51 = vadd.f32 %v8657_v14, %v4557_v52  ;;  %v4556_v7 = vadd.f32 %v4237_v34, %v8379_v39 }
 0x394   : > { %v6599_v56 = vpop.f32.mrf.mxu1 }
 0x395   : > { %4820 = vst [vmem:[%s8664_s27 + $0x8] sm:$0xff] %v4756_v51  ;;  %v4755_v61 = vadd.f32 %v8657_v14, %v4556_v7  ;;  %v4559_v2 = vadd.f32 %v6599_v56, %v8384_v11 }
 0x396   : > { %v4247_v30 = vpop.f32.mrf.mxu1 }
 0x397   : > { %4819 = vst [vmem:[%s8664_s27] sm:$0xff] %v4755_v61  ;;  %v4758_v13 = vadd.f32 %v8657_v14, %v4559_v2  ;;  %v4558_v39 = vadd.f32 %v4247_v30, %v8389_v44 }
 0x398   : > { %v6602_v50 = vpop.f32.mrf.mxu1 }
 0x399   : > { %4822 = vst [vmem:[%s8664_s27 + $0x18] sm:$0xff] %v4758_v13  ;;  %v4757_v54 = vadd.f32 %v8657_v14, %v4558_v39  ;;  %v4561_v26 = vadd.f32 %v6602_v50, %v8394_v63 }
 0x39a   : > { %v4257_v6 = vpop.f32.mrf.mxu1 }
 0x39b   : > { %4821 = vst [vmem:[%s8664_s27 + $0x10] sm:$0xff] %v4757_v54  ;;  %v4760_v49 = vadd.f32 %v8657_v14, %v4561_v26  ;;  %v4560_v11 = vadd.f32 %v4257_v6, %v8399_v17 }
 0x39c   : > { %v6605_v41 = vpop.f32.mrf.mxu1 }
 0x39d   : > { %4824 = vst [vmem:[%s8664_s27 + $0x28] sm:$0xff] %v4760_v49  ;;  %v4759_v52 = vadd.f32 %v8657_v14, %v4560_v11  ;;  %v4563_v44 = vadd.f32 %v6605_v41, %v8404_v0 }
 0x39e   : > { %v4267_v34 = vpop.f32.mrf.mxu1 }
 0x39f   : > { %4823 = vst [vmem:[%s8664_s27 + $0x20] sm:$0xff] %v4759_v52  ;;  %v4762_v51 = vadd.f32 %v8657_v14, %v4563_v44  ;;  %v4562_v63 = vadd.f32 %v4267_v34, %v8409_v37 }
 0x3a0   : > { %v6608_v7 = vpop.f32.mrf.mxu1 }
 0x3a1   : > { %4826 = vst [vmem:[%s8664_s27 + $0x38] sm:$0xff] %v4762_v51  ;;  %v4761_v56 = vadd.f32 %v8657_v14, %v4562_v63  ;;  %v4565_v17 = vadd.f32 %v6608_v7, %v8414_v46 }
 0x3a2   : > { %v4277_v61 = vpop.f32.mrf.mxu1 }
 0x3a3   : > { %4825 = vst [vmem:[%s8664_s27 + $0x30] sm:$0xff] %v4761_v56  ;;  %v4764_v2 = vadd.f32 %v8657_v14, %v4565_v17  ;;  %v4564_v0 = vadd.f32 %v4277_v61, %v8419_v21 }
 0x3a4   : > { %v6611_v30 = vpop.f32.mrf.mxu1 }
 0x3a5   : > { %4828 = vst [vmem:[%s8664_s27 + $0x48] sm:$0xff] %v4764_v2  ;;  %v4763_v13 = vadd.f32 %v8657_v14, %v4564_v0  ;;  %v4567_v37 = vadd.f32 %v6611_v30, %v8424_v9 }
 0x3a6   : > { %v4287_v39 = vpop.f32.mrf.mxu1 }
 0x3a7   : > { %4827 = vst [vmem:[%s8664_s27 + $0x40] sm:$0xff] %v4763_v13  ;;  %v4766_v50 = vadd.f32 %v8657_v14, %v4567_v37  ;;  %v4566_v46 = vadd.f32 %v4287_v39, %v8429_v40 }
 0x3a8   : > { %v6614_v54 = vpop.f32.mrf.mxu1 }
 0x3a9   : > { %4830 = vst [vmem:[%s8664_s27 + $0x58] sm:$0xff] %v4766_v50  ;;  %v4765_v26 = vadd.f32 %v8657_v14, %v4566_v46  ;;  %v4569_v21 = vadd.f32 %v6614_v54, %v8434_v10 }
 0x3aa   : > { %v4297_v6 = vpop.f32.mrf.mxu1 }
 0x3ab   : > { %4829 = vst [vmem:[%s8664_s27 + $0x50] sm:$0xff] %v4765_v26  ;;  %v4768_v49 = vadd.f32 %v8657_v14, %v4569_v21  ;;  %v4568_v9 = vadd.f32 %v4297_v6, %v8439_v23 }
 0x3ac   : > { %v6617_v11 = vpop.f32.mrf.mxu1 }
 0x3ad   : > { %4832 = vst [vmem:[%s8664_s27 + $0x68] sm:$0xff] %v4768_v49  ;;  %v4767_v41 = vadd.f32 %v8657_v14, %v4568_v9  ;;  %v4571_v40 = vadd.f32 %v6617_v11, %v8444_v29 }
 0x3ae   : > { %v4307_v52 = vpop.f32.mrf.mxu1 }
 0x3af   : > { %4831 = vst [vmem:[%s8664_s27 + $0x60] sm:$0xff] %v4767_v41  ;;  %v4770_v44 = vadd.f32 %v8657_v14, %v4571_v40  ;;  %v4570_v10 = vadd.f32 %v4307_v52, %v8449_v35 }
 0x3b0   : > { %v6620_v34 = vpop.f32.mrf.mxu1 }
 0x3b1   : > { %4834 = vst [vmem:[%s8664_s27 + $0x78] sm:$0xff] %v4770_v44  ;;  %v4769_v51 = vadd.f32 %v8657_v14, %v4570_v10  ;;  %v4573_v23 = vadd.f32 %v6620_v34, %v8454_v32 }
 0x3b2   : > { %v4317_v63 = vpop.f32.mrf.mxu1 }
 0x3b3   : > { %4833 = vst [vmem:[%s8664_s27 + $0x70] sm:$0xff] %v4769_v51  ;;  %v4772_v7 = vadd.f32 %v8657_v14, %v4573_v23  ;;  %v4572_v29 = vadd.f32 %v4317_v63, %v8459_v24 }
 0x3b4   : > { %v6623_v56 = vpop.f32.mrf.mxu1 }
 0x3b5   : > { %4836 = vst [vmem:[%s8664_s27 + $0x88] sm:$0xff] %v4772_v7  ;;  %v4771_v17 = vadd.f32 %v8657_v14, %v4572_v29  ;;  %v4575_v35 = vadd.f32 %v6623_v56, %v8464_v47 }
 0x3b6   : > { %v4327_v61 = vpop.f32.mrf.mxu1 }
 0x3b7   : > { %4835 = vst [vmem:[%s8664_s27 + $0x80] sm:$0xff] %v4771_v17  ;;  %v4774_v2 = vadd.f32 %v8657_v14, %v4575_v35  ;;  %v4574_v32 = vadd.f32 %v4327_v61, %v8469_v53 }
 0x3b8   : > { %v6626_v0 = vpop.f32.mrf.mxu1 }
 0x3b9   : > { %4838 = vst [vmem:[%s8664_s27 + $0x98] sm:$0xff] %v4774_v2  ;;  %v4773_v30 = vadd.f32 %v8657_v14, %v4574_v32  ;;  %v4577_v24 = vadd.f32 %v6626_v0, %v8474_v3 }
 0x3ba   : > { %v4337_v13 = vpop.f32.mrf.mxu1 }
 0x3bb   : > { %4837 = vst [vmem:[%s8664_s27 + $0x90] sm:$0xff] %v4773_v30  ;;  %v4776_v37 = vadd.f32 %v8657_v14, %v4577_v24  ;;  %v4576_v47 = vadd.f32 %v4337_v13, %v8479_v45 }
 0x3bc   : > { %v6629_v39 = vpop.f32.mrf.mxu1 }
 0x3bd   : > { %4840 = vst [vmem:[%s8664_s27 + $0xa8] sm:$0xff] %v4776_v37  ;;  %v4775_v50 = vadd.f32 %v8657_v14, %v4576_v47  ;;  %v4579_v53 = vadd.f32 %v6629_v39, %v8484_v33 }
 0x3be   : > { %v4347_v46 = vpop.f32.mrf.mxu1 }
 0x3bf   : > { %4839 = vst [vmem:[%s8664_s27 + $0xa0] sm:$0xff] %v4775_v50  ;;  %v4778_v54 = vadd.f32 %v8657_v14, %v4579_v53  ;;  %v4578_v3 = vadd.f32 %v4347_v46, %v8489_v48 }
 0x3c0   : > { %v6632_v26 = vpop.f32.mrf.mxu1 }
 0x3c1   : > { %4842 = vst [vmem:[%s8664_s27 + $0xb8] sm:$0xff] %v4778_v54  ;;  %v4777_v21 = vadd.f32 %v8657_v14, %v4578_v3  ;;  %v4581_v45 = vadd.f32 %v6632_v26, %v8494_v4 }
 0x3c2   : > { %v4357_v6 = vpop.f32.mrf.mxu1 }
 0x3c3   : > { %4841 = vst [vmem:[%s8664_s27 + $0xb0] sm:$0xff] %v4777_v21  ;;  %v4780_v49 = vadd.f32 %v8657_v14, %v4581_v45  ;;  %v4580_v33 = vadd.f32 %v4357_v6, %v8499_v15 }
 0x3c4   : > { %v6635_v9 = vpop.f32.mrf.mxu1 }
 0x3c5   : > { %4844 = vst [vmem:[%s8664_s27 + $0xc8] sm:$0xff] %v4780_v49  ;;  %v4779_v11 = vadd.f32 %v8657_v14, %v4580_v33  ;;  %v4583_v48 = vadd.f32 %v6635_v9, %v8504_v18 }
 0x3c6   : > { %v4367_v41 = vpop.f32.mrf.mxu1 }
 0x3c7   : > { %4843 = vst [vmem:[%s8664_s27 + $0xc0] sm:$0xff] %v4779_v11  ;;  %v4782_v40 = vadd.f32 %v8657_v14, %v4583_v48  ;;  %v4582_v4 = vadd.f32 %v4367_v41, %v8509_v59 }
 0x3c8   : > { %v6638_v52 = vpop.f32.mrf.mxu1 }
 0x3c9   : > { %4846 = vst [vmem:[%s8664_s27 + $0xd8] sm:$0xff] %v4782_v40  ;;  %v4781_v44 = vadd.f32 %v8657_v14, %v4582_v4  ;;  %v4585_v15 = vadd.f32 %v6638_v52, %v8514_v62  ;;  %v9167_v52 = vld [vmem:[#allocation31_spill] sm:$0xff] }
 0x3ca   : > { %v4377_v10 = vpop.f32.mrf.mxu1 }
 0x3cb   : > { %4845 = vst [vmem:[%s8664_s27 + $0xd0] sm:$0xff] %v4781_v44  ;;  %v4784_v34 = vadd.f32 %v8657_v14, %v4585_v15  ;;  %v4584_v18 = vadd.f32 %v4377_v10, %v8518_v20 }
 0x3cc   : > { %v6641_v51 = vpop.f32.mrf.mxu1 }
 0x3cd   : > { %4848 = vst [vmem:[%s8664_s27 + $0xe8] sm:$0xff] %v4784_v34  ;;  %v4783_v23 = vadd.f32 %v8657_v14, %v4584_v18  ;;  %v4587_v59 = vadd.f32 %v6641_v51, %v8522_v1  ;;  %v9168_v34 = vld [vmem:[#allocation58_spill] sm:$0xff] }
 0x3ce   : > { %v4387_v63 = vpop.f32.mrf.mxu1 }
 0x3cf   : > { %4847 = vst [vmem:[%s8664_s27 + $0xe0] sm:$0xff] %v4783_v23  ;;  %v4786_v7 = vadd.f32 %v8657_v14, %v4587_v59  ;;  %v4586_v62 = vadd.f32 %v4387_v63, %v8526_v19  ;;  %v9169_v59 = vld [vmem:[#allocation32_spill] sm:$0xff] }
 0x3d0   : > { %v6644_v29 = vpop.f32.mrf.mxu1 }
 0x3d1   : > { %4850 = vst [vmem:[%s8664_s27 + $0xf8] sm:$0xff] %v4786_v7  ;;  %v4785_v56 = vadd.f32 %v8657_v14, %v4586_v62  ;;  %v4589_v20 = vadd.f32 %v6644_v29, %v8530_v36  ;;  %v9170_v29 = vld [vmem:[#allocation59_spill] sm:$0xff] }
 0x3d2   : > { %v4397_v17 = vpop.f32.mrf.mxu1 }
 0x3d3   : > { %4849 = vst [vmem:[%s8664_s27 + $0xf0] sm:$0xff] %v4785_v56  ;;  %v4788_v35 = vadd.f32 %v8657_v14, %v4589_v20  ;;  %v4588_v1 = vadd.f32 %v4397_v17, %v8534_v31 }
 0x3d4   : > { %v6647_v61 = vpop.f32.mrf.mxu1 }
 0x3d5   : > { %4852 = vst [vmem:[%s8664_s27 + $0x108] sm:$0xff] %v4788_v35  ;;  %v4787_v2 = vadd.f32 %v8657_v14, %v4588_v1  ;;  %v4591_v19 = vadd.f32 %v6647_v61, %v8538_v22  ;;  %v9171_v35 = vld [vmem:[#allocation33_spill] sm:$0xff] }
 0x3d6   : > { %v4407_v32 = vpop.f32.mrf.mxu1 }
 0x3d7   : > { %4851 = vst [vmem:[%s8664_s27 + $0x100] sm:$0xff] %v4787_v2  ;;  %v4790_v0 = vadd.f32 %v8657_v14, %v4591_v19  ;;  %v4590_v36 = vadd.f32 %v4407_v32, %v8542_v12  ;;  %v9172_v19 = vld [vmem:[#allocation60_spill] sm:$0xff] }
 0x3d8   : > { %v6650_v30 = vpop.f32.mrf.mxu1 }
 0x3d9   : > { %4854 = vst [vmem:[%s8664_s27 + $0x118] sm:$0xff] %v4790_v0  ;;  %v4789_v24 = vadd.f32 %v8657_v14, %v4590_v36  ;;  %v4593_v31 = vadd.f32 %v6650_v30, %v8546_v42  ;;  %v9173_v30 = vld [vmem:[#allocation34_spill] sm:$0xff] }
 0x3da   : > { %v4417_v13 = vpop.f32.mrf.mxu1 }
 0x3db   : > { %4853 = vst [vmem:[%s8664_s27 + $0x110] sm:$0xff] %v4789_v24  ;;  %v4792_v37 = vadd.f32 %v8657_v14, %v4593_v31  ;;  %v4592_v22 = vadd.f32 %v4417_v13, %v8550_v60 }
 0x3dc   : > { %v6653_v47 = vpop.f32.mrf.mxu1 }
 0x3dd   : > { %4856 = vst [vmem:[%s8664_s27 + $0x128] sm:$0xff] %v4792_v37  ;;  %v4791_v39 = vadd.f32 %v8657_v14, %v4592_v22  ;;  %v4595_v12 = vadd.f32 %v6653_v47, %v8554_v25  ;;  %v9174_v37 = vld [vmem:[#allocation61_spill] sm:$0xff] }
 0x3de   : > { %v4427_v50 = vpop.f32.mrf.mxu1 }
 0x3df   : > { %4855 = vst [vmem:[%s8664_s27 + $0x120] sm:$0xff] %v4791_v39  ;;  %v4794_v53 = vadd.f32 %v8657_v14, %v4595_v12  ;;  %v4594_v42 = vadd.f32 %v4427_v50, %v8558_v27  ;;  %v9164_v27 = vld [vmem:[#allocation56_spill] sm:$0xff]  ;;  %v9175_v12 = vld [vmem:[#allocation35_spill] sm:$0xff] }
 0x3e0   : > { %v6656_v46 = vpop.f32.mrf.mxu1 }
 0x3e1   : > { %4858 = vst [vmem:[%s8664_s27 + $0x138] sm:$0xff] %v4794_v53  ;;  %v4793_v54 = vadd.f32 %v8657_v14, %v4594_v42  ;;  %v4597_v60 = vadd.f32 %v6656_v46, %v8562_v5  ;;  %v9165_v5 = vld [vmem:[#allocation30_spill] sm:$0xff] }
 0x3e2   : > { %v4437_v3 = vpop.f32.mrf.mxu1  ;;  %v9176_v46 = vld [vmem:[#allocation62_spill] sm:$0xff] }
 0x3e3   : > { %4857 = vst [vmem:[%s8664_s27 + $0x130] sm:$0xff] %v4793_v54  ;;  %v4796_v26 = vadd.f32 %v8657_v14, %v4597_v60  ;;  %v4596_v25 = vadd.f32 %v4437_v3, %v8566_v38  ;;  %v9166_v38 = vld [vmem:[#allocation57_spill] sm:$0xff] }
 0x3e4   : > { %v6659_v21 = vpop.f32.mrf.mxu1 }
 0x3e5   : > { %4860 = vst [vmem:[%s8664_s27 + $0x148] sm:$0xff] %v4796_v26  ;;  %v4795_v45 = vadd.f32 %v8657_v14, %v4596_v25  ;;  %v4599_v6 = vadd.f32 %v6659_v21, %v9164_v27  ;;  %v9177_v26 = vld [vmem:[#allocation36_spill] sm:$0xff] }
 0x3e6   : > { %v4447_v49 = vpop.f32.mrf.mxu1 }
 0x3e7   : > { %4859 = vst [vmem:[%s8664_s27 + $0x140] sm:$0xff] %v4795_v45  ;;  %v4798_v33 = vadd.f32 %v8657_v14, %v4599_v6  ;;  %v4598_v9 = vadd.f32 %v4447_v49, %v9165_v5 }
 0x3e8   : > { %v6662_v11 = vpop.f32.mrf.mxu1 }
 0x3e9   : > { %4862 = vst [vmem:[%s8664_s27 + $0x158] sm:$0xff] %v4798_v33  ;;  %v4797_v48 = vadd.f32 %v8657_v14, %v4598_v9  ;;  %v4601_v41 = vadd.f32 %v6662_v11, %v9166_v38  ;;  %v9178_v11 = vld [vmem:[#allocation63_spill] sm:$0xff] }
 0x3ea   : > { %v4457_v40 = vpop.f32.mrf.mxu1 }
 0x3eb   : > { %4861 = vst [vmem:[%s8664_s27 + $0x150] sm:$0xff] %v4797_v48  ;;  %v4800_v4 = vadd.f32 %v8657_v14, %v4601_v41  ;;  %v4600_v44 = vadd.f32 %v4457_v40, %v9167_v52 }
 0x3ec   : > { %v6665_v15 = vpop.f32.mrf.mxu1 }
 0x3ed   : > { %4864 = vst [vmem:[%s8664_s27 + $0x168] sm:$0xff] %v4800_v4  ;;  %v4799_v10 = vadd.f32 %v8657_v14, %v4600_v44  ;;  %v4603_v18 = vadd.f32 %v6665_v15, %v9168_v34 }
 0x3ee   : > { %v4467_v51 = vpop.f32.mrf.mxu1 }
 0x3ef   : > { %4863 = vst [vmem:[%s8664_s27 + $0x160] sm:$0xff] %v4799_v10  ;;  %v4802_v23 = vadd.f32 %v8657_v14, %v4603_v18  ;;  %v4602_v63 = vadd.f32 %v4467_v51, %v9169_v59 }
 0x3f0   : > { %v6668_v7 = vpop.f32.mrf.mxu1 }
 0x3f1   : > { %4866 = vst [vmem:[%s8664_s27 + $0x178] sm:$0xff] %v4802_v23  ;;  %v4801_v62 = vadd.f32 %v8657_v14, %v4602_v63  ;;  %v4605_v56 = vadd.f32 %v6668_v7, %v9170_v29 }
 0x3f2   : > { %v4477_v20 = vpop.f32.mrf.mxu1 }
 0x3f3   : > { %4865 = vst [vmem:[%s8664_s27 + $0x170] sm:$0xff] %v4801_v62  ;;  %v4804_v17 = vadd.f32 %v8657_v14, %v4605_v56  ;;  %v4604_v1 = vadd.f32 %v4477_v20, %v9171_v35 }
 0x3f4   : > { %v6671_v61 = vpop.f32.mrf.mxu1 }
 0x3f5   : > { %4868 = vst [vmem:[%s8664_s27 + $0x188] sm:$0xff] %v4804_v17  ;;  %v4803_v2 = vadd.f32 %v8657_v14, %v4604_v1  ;;  %v4607_v32 = vadd.f32 %v6671_v61, %v9172_v19 }
 0x3f6   : > { %v4487_v0 = vpop.f32.mrf.mxu1 }
 0x3f7   : > { %4867 = vst [vmem:[%s8664_s27 + $0x180] sm:$0xff] %v4803_v2  ;;  %v4806_v36 = vadd.f32 %v8657_v14, %v4607_v32  ;;  %v4606_v24 = vadd.f32 %v4487_v0, %v9173_v30 }
 0x3f8   : > { %v6674_v31 = vpop.f32.mrf.mxu1 }
 0x3f9   : > { %4870 = vst [vmem:[%s8664_s27 + $0x198] sm:$0xff] %v4806_v36  ;;  %v4805_v13 = vadd.f32 %v8657_v14, %v4606_v24  ;;  %v4609_v22 = vadd.f32 %v6674_v31, %v9174_v37 }
 0x3fa   : > { %v4497_v47 = vpop.f32.mrf.mxu1 }
 0x3fb   : > { %4869 = vst [vmem:[%s8664_s27 + $0x190] sm:$0xff] %v4805_v13  ;;  %v4808_v39 = vadd.f32 %v8657_v14, %v4609_v22  ;;  %v4608_v50 = vadd.f32 %v4497_v47, %v9175_v12 }
 0x3fc   : > { %v6677_v53 = vpop.f32.mrf.mxu1 }
 0x3fd   : > { %4872 = vst [vmem:[%s8664_s27 + $0x1a8] sm:$0xff] %v4808_v39  ;;  %v4807_v42 = vadd.f32 %v8657_v14, %v4608_v50  ;;  %v4611_v54 = vadd.f32 %v6677_v53, %v9176_v46 }
 0x3fe   : > { %v4507_v60 = vpop.f32.mrf.mxu1 }
 0x3ff   : > { %4871 = vst [vmem:[%s8664_s27 + $0x1a0] sm:$0xff] %v4807_v42  ;;  %v4810_v3 = vadd.f32 %v8657_v14, %v4611_v54  ;;  %v4610_v25 = vadd.f32 %v4507_v60, %v9177_v26 }
 0x400   : > { %v6680_v21 = vpop.f32.mrf.mxu1 }
 0x401   : > { %4874 = vst [vmem:[%s8664_s27 + $0x1b8] sm:$0xff] %v4810_v3  ;;  %v4809_v45 = vadd.f32 %v8657_v14, %v4610_v25  ;;  %v4613_v27 = vadd.f32 %v6680_v21, %v8626_v57 }
 0x402   : > { %v4517_v6 = vpop.f32.mrf.mxu1 }
 0x403   : > { %4873 = vst [vmem:[%s8664_s27 + $0x1b0] sm:$0xff] %v4809_v45  ;;  %v4812_v49 = vadd.f32 %v8657_v14, %v4613_v27  ;;  %v4612_v33 = vadd.f32 %v4517_v6, %v8630_v8 }
 0x404   : > { %v6683_v5 = vpop.f32.mrf.mxu1 }
 0x405   : > { %4876 = vst [vmem:[%s8664_s27 + $0x1c8] sm:$0xff] %v4812_v49  ;;  %v4811_v9 = vadd.f32 %v8657_v14, %v4612_v33  ;;  %v4615_v48 = vadd.f32 %v6683_v5, %v9178_v11 }
 0x406   : > { %v4527_v38 = vpop.f32.mrf.mxu1 }
 0x407   : > { %4875 = vst [vmem:[%s8664_s27 + $0x1c0] sm:$0xff] %v4811_v9  ;;  %v4814_v57 = vadd.f32 %v8657_v14, %v4615_v48  ;;  %v4614_v41 = vadd.f32 %v4527_v38, %v8638_v16 }
 0x408   : > { %v6686_v40 = vpop.f32.mrf.mxu1 }
 0x409   : > { %4878 = vst [vmem:[%s8664_s27 + $0x1d8] sm:$0xff] %v4814_v57  ;;  %v4813_v8 = vadd.f32 %v8657_v14, %v4614_v41  ;;  %v4617_v4 = vadd.f32 %v6686_v40, %v8642_v28 }
 0x40a   : > { %v4537_v52 = vpop.f32.mrf.mxu1 }
 0x40b   : > { %4877 = vst [vmem:[%s8664_s27 + $0x1d0] sm:$0xff] %v4813_v8  ;;  %v4816_v44 = vadd.f32 %v8657_v14, %v4617_v4  ;;  %v4616_v15 = vadd.f32 %v4537_v52, %v8646_v55 }
 0x40c   : > { %v6689_v10 = vpop.f32.mrf.mxu1 }
 0x40d   : > { %4880 = vst [vmem:[%s8664_s27 + $0x1e8] sm:$0xff] %v4816_v44  ;;  %v4815_v16 = vadd.f32 %v8657_v14, %v4616_v15  ;;  %v4619_v34 = vadd.f32 %v6689_v10, %v8650_v58 }
 0x40e   : > { %v4547_v18 = vpop.f32.mrf.mxu1 }
 0x40f   : > { %4879 = vst [vmem:[%s8664_s27 + $0x1e0] sm:$0xff] %v4815_v16  ;;  %v4818_v28 = vadd.f32 %v8657_v14, %v4619_v34  ;;  %v4618_v51 = vadd.f32 %v4547_v18, %v8652_v43 }
 0x411   : > { %4882 = vst [vmem:[%s8664_s27 + $0x1f8] sm:$0xff] %v4818_v28  ;;  %v4817_v55 = vadd.f32 %v8657_v14, %v4618_v51 }
 0x413   : > { %4881 = vst [vmem:[%s8664_s27 + $0x1f0] sm:$0xff] %v4817_v55 }
 0x414   : > { %6956 = shalt.err (!%p6953_p9)
}
 0x415   : > { %s6957_s23 = scalar_lea.hbm %s8857_s14, 8192  ;;  %s6961_s24 = scalar_lea.hbm %s8909_s5, 32768 }
 0x416   : > { %p6958_p1 = scmp.ne.s32.totalorder %s8857_s14, %s6957_s23  ;;  %p6962_p10 = scmp.lt.s32.totalorder %s8857_s14, %s8909_s5 }
 0x417   : > { %p6963_p12 = scmp.lt.s32.totalorder %s6961_s24, %s6957_s23 }
 0x418   : > { %p6959_p8 = pnand %p6958_p1, %p9179_p6 }
 0x419   : > { %p6964_p2 = por %p6963_p12, %p6962_p10 }
 0x41a   : > { %p6960_p5 = pneg %p6959_p8 }
 0x41c   : > { %p6965_p4 = pnand %p6964_p2, %p6960_p5 }
 0x41e   : > { %6968 = shalt.err (!%p6965_p4)
}
 0x41f   : > { %s7026_s15 = smov 128   ;;  %s7027_s30 = smov 8  }
 0x420   : > { %6704 = dma.vmem_to_hbm [thread:$0]  (%p9179_p6), %s8859_s17, 8192, %s8857_s14, %s4884_s22, %s7026_s15, %s7026_s15, %s7027_s30  }
 0x421 PF: > { %p6731_p11 = scmp.ge.s32.totalorder %s7015_s21, 2  ;;  %s4912_s13 = sand.u32 1, %s7003_s18  }
 0x422   : > { %p9180_p13 = scmp.ne.s32.totalorder %s8936_s25, 0  ;;  %s4913_s11 = scalar_lea.sflag [#allocation5], %s4912_s13 }
 0x424   : > { %p6721_p3 = pnand %p6731_p11, %p9180_p13 }
 0x426   : > { %p6722_p0 = pneg %p6721_p3 }
 0x428   : > { %6998 = dma.done.wait (%p6722_p0), %s4913_s11, 8192  }
 0x429   : > { %7000 = vsyncadd (%p6722_p0), %s4913_s11, 4294959104  ;;  %p20_p7 = scmp.ge.s32.totalorder %s7140_s6, 6   ;;  %s9181_s18 = smov %s7007_s19 }
 0x42a   : > { %s9182_s19 = smov %s7011_s20  ;;  %s9183_s20 = smov %s7150_s10 }
 0x42b   : > { %s9184_s21 = smov %s7140_s6  ;;  %22 = sbr.rel (!%p20_p7) target bundleno = 7 (0x7), region = 106 }
 0x430   :  { %4918 = vsyncpa [#allocation4], 1 }
 0x431   :  { %4920 = vsyncpa [#allocation4 + $0x1], 1 }
 0x432   :  { %4921 = vsyncpa [#allocation7], 1 }
 0x433   :  { %4922 = vsyncpa [#allocation10], 1 }
 0x434   :  { %4923 = vsyncpa [#allocation5], 1 }
 0x435   :  { %4925 = vsyncpa [#allocation5 + $0x1], 1 }

</bundles_post_ra>
